<compile_context>
chip_gen: v5e
topology: v5e:2x2
jax: 0.10.0
libtpu: 0.0.40
codegen_flags: <defaults>
</compile_context>

<pallas_src>
import jax
import jax.numpy as jnp
import numpy as np
from jax import lax
from jax.experimental import pallas as pl
from jax.experimental.pallas import tpu as pltpu

EPS = 1e-5


def _extractor_mlp_kernel(seg_ref, f12_ref, w1_ref, b1_ref, w2_ref, b2_ref,
                          w3_ref, b3_ref, out_ref,
                          s1_sum_ref, s1_sq_ref, s2_sum_ref, s2_sq_ref, cnt_ref):
    p = pl.program_id(0)          # pass: 0 = layer-1 stats, 1 = layer-2 stats, 2 = output
    i = pl.program_id(1)          # edge tile index

    te = seg_ref.shape[1]
    n_graphs = cnt_ref.shape[1]

    # Zero the persistent per-graph accumulators once, at the very first grid step.
    @pl.when(jnp.logical_and(p == 0, i == 0))
    def _init():
        s1_sum_ref[...] = jnp.zeros_like(s1_sum_ref)
        s1_sq_ref[...] = jnp.zeros_like(s1_sq_ref)
        s2_sum_ref[...] = jnp.zeros_like(s2_sum_ref)
        s2_sq_ref[...] = jnp.zeros_like(s2_sq_ref)
        cnt_ref[...] = jnp.zeros_like(cnt_ref)

    # One-hot graph membership [G, TE]: graphs on sublanes, edges on lanes.
    # Padded edges carry seg = -1 -> all-zero column -> excluded from stats.
    seg = seg_ref[...]                                                       # [1, TE] int32
    oh = (lax.broadcasted_iota(jnp.int32, (n_graphs, te), 0) == seg)
    oh = oh.astype(jnp.bfloat16)                                             # exact 0/1

    # Layer-1 pre-activation, transposed: [4H, TE] f32 (recomputed every pass; cheap,
    # the kernel is HBM-bound).
    h1 = (jnp.dot(w1_ref[...], f12_ref[...], preferred_element_type=jnp.float32)
          + b1_ref[...])

    def accum_stats(h, sum_ref, sq_ref):
        # Per-graph sum / sum-of-squares, contracting over the edge (lane) axis.
        hb = h.astype(jnp.bfloat16)
        hb2 = (h * h).astype(jnp.bfloat16)
        sum_ref[...] += lax.dot_general(hb, oh, (((1,), (1,)), ((), ())),
                                        preferred_element_type=jnp.float32)   # [C, G]
        sq_ref[...] += lax.dot_general(hb2, oh, (((1,), (1,)), ((), ())),
                                       preferred_element_type=jnp.float32)    # [C, G]

    def norm_relu(h, sum_ref, sq_ref):
        # Tiny [C, G] math from the accumulated moments (f32 throughout).
        inv_cnt = 1.0 / jnp.maximum(cnt_ref[...], 1.0)                        # [1, G]
        mean_g = sum_ref[...] * inv_cnt                                       # [C, G]
        var_g = jnp.maximum(sq_ref[...] * inv_cnt - mean_g * mean_g, 0.0)     # biased var
        rstd_g = lax.rsqrt(var_g + EPS)
        shift_g = -mean_g * rstd_g
        # Broadcast back to edges with natural K=G matmuls (bf16 operands, f32 acc).
        scale_e = jnp.dot(rstd_g.astype(jnp.bfloat16), oh,
                          preferred_element_type=jnp.float32)                 # [C, TE]
        shift_e = jnp.dot(shift_g.astype(jnp.bfloat16), oh,
                          preferred_element_type=jnp.float32)                 # [C, TE]
        return jnp.maximum(h * scale_e + shift_e, 0.0)                        # ReLU (dropout=id)

    def layer2(h1n):
        return (jnp.dot(w2_ref[...], h1n.astype(jnp.bfloat16),
                        preferred_element_type=jnp.float32) + b2_ref[...])    # [H, TE]

    @pl.when(p == 0)
    def _pass0():
        ones = jnp.ones((1, te), jnp.bfloat16)
        cnt_ref[...] += lax.dot_general(ones, oh, (((1,), (1,)), ((), ())),
                                        preferred_element_type=jnp.float32)   # [1, G]
        accum_stats(h1, s1_sum_ref, s1_sq_ref)

    @pl.when(p == 1)
    def _pass1():
        accum_stats(layer2(norm_relu(h1, s1_sum_ref, s1_sq_ref)),
                    s2_sum_ref, s2_sq_ref)

    @pl.when(p == 2)
    def _pass2():
        h1n = norm_relu(h1, s1_sum_ref, s1_sq_ref)
        h2n = norm_relu(layer2(h1n), s2_sum_ref, s2_sq_ref)
        out_ref[...] = (jnp.dot(w3_ref[...], h2n.astype(jnp.bfloat16),
                                preferred_element_type=jnp.float32)
                        + b3_ref[...])                                        # [1, TE]


def extractor_mlp_forward(emb, edge_index, batch, params,
                          num_graphs_padded=8, tile_e=4096):
    """Gather/transpose glue in JAX; the tiled multi-pass MLP runs in one Pallas kernel."""
    col, row = edge_index[0], edge_index[1]

    # Any edge with graph id >= num_graphs_padded would be silently dropped from the
    # stats; catch it whenever the data is concrete (skip under jit tracing).
    try:
        assert int(jax.device_get(jnp.max(batch))) < num_graphs_padded, \
            "num_graphs_padded must be >= the true number of graphs"
    except (jax.errors.ConcretizationTypeError, jax.errors.TracerIntegerConversionError):
        pass

    (w1, b1), (w2, b2), (w3, b3) = params
    H = emb.shape[1]
    H2, H4 = 2 * H, 4 * H
    G = num_graphs_padded
    E = int(col.shape[0])

    # Fused gather + concat, then transposed so edges live on lanes inside the kernel.
    f12t = jnp.concatenate([emb[col], emb[row]], axis=-1).astype(jnp.bfloat16).T  # [2H, E]
    seg = batch[col].astype(jnp.int32).reshape(1, -1)                             # [1, E]

    tile_e = max(128, min(tile_e, ((E + 127) // 128) * 128))
    assert tile_e % 128 == 0, "edge tile must be a multiple of 128 (lane constraint)"
    n_tiles = -(-E // tile_e)
    E_pad = n_tiles * tile_e
    pad = E_pad - E
    if pad:
        f12t = jnp.pad(f12t, ((0, 0), (0, pad)))
        seg = jnp.pad(seg, ((0, 0), (0, pad)), constant_values=-1)   # -1 -> no graph

    # Weights transposed / biases as columns for the channels-on-sublanes layout.
    w1t = w1.T.astype(jnp.bfloat16)                    # [4H, 2H]
    w2t = w2.T.astype(jnp.bfloat16)                    # [H, 4H]
    w3t = w3.T.astype(jnp.bfloat16)                    # [1, H]
    b1c = b1.reshape(-1, 1).astype(jnp.float32)        # [4H, 1]
    b2c = b2.reshape(-1, 1).astype(jnp.float32)        # [H, 1]
    b3c = b3.reshape(1, 1).astype(jnp.float32)         # [1, 1]

    grid = (3, n_tiles)   # (pass, edge-tile); both sequential (shared VMEM stats scratch)

    in_specs = [
        pl.BlockSpec((1, tile_e), lambda p, i: (0, i)),     # seg   (int32, lane-dense)
        pl.BlockSpec((H2, tile_e), lambda p, i: (0, i)),    # f12^T (bf16, lane-dense)
        pl.BlockSpec((H4, H2), lambda p, i: (0, 0)),        # w1^T  (resident)
        pl.BlockSpec((H4, 1), lambda p, i: (0, 0)),         # b1
        pl.BlockSpec((H, H4), lambda p, i: (0, 0)),         # w2^T
        pl.BlockSpec((H, 1), lambda p, i: (0, 0)),          # b2
        pl.BlockSpec((1, H), lambda p, i: (0, 0)),          # w3^T
        pl.BlockSpec((1, 1), lambda p, i: (0, 0)),          # b3
    ]
    out_specs = pl.BlockSpec((1, tile_e), lambda p, i: (0, i))   # lane-dense output row

    scratch_shapes = [
        pltpu.VMEM((H4, G), jnp.float32),   # layer-1 per-graph sum
        pltpu.VMEM((H4, G), jnp.float32),   # layer-1 per-graph sum of squares
        pltpu.VMEM((H, G), jnp.float32),    # layer-2 per-graph sum
        pltpu.VMEM((H, G), jnp.float32),    # layer-2 per-graph sum of squares
        pltpu.VMEM((1, G), jnp.float32),    # per-graph edge counts
    ]

    flops = int(
        3 * 2 * E_pad * H2 * H4             # layer-1 matmul, recomputed on 3 passes
        + 2 * 2 * E_pad * H4 * H            # layer-2 matmul, passes 1 & 2
        + 2 * E_pad * H                     # final projection
        + 8 * E_pad * G * (H4 + H)          # stats + broadcast-back matmuls (rough)
    )
    bytes_accessed = int(
        3 * (E_pad * H2 * 2 + E_pad * 4)    # f12^T (bf16) + seg, streamed each pass
        + 3 * E_pad * 4                     # output block writeback each pass
        + 2 * (w1t.size + w2t.size + w3t.size)
        + 4 * (b1c.size + b2c.size + b3c.size)
    )
    transcendentals = int(3 * n_tiles * G * (H4 + H))   # rsqrt per tile per norm (rough)

    out = pl.pallas_call(
        _extractor_mlp_kernel,
        grid=grid,
        in_specs=in_specs,
        out_specs=out_specs,
        out_shape=jax.ShapeDtypeStruct((1, E_pad), jnp.float32),
        scratch_shapes=scratch_shapes,
        compiler_params=pltpu.CompilerParams(
            # Both axes sequential: per-graph stats live in a single core's VMEM scratch.
            dimension_semantics=("arbitrary", "arbitrary"),
            # Explicit limit: v5e default scoped VMEM is only 16 MiB.
            vmem_limit_bytes=32 * 1024 * 1024,
        ),
        cost_estimate=pl.CostEstimate(flops=flops,
                                      transcendentals=transcendentals,
                                      bytes_accessed=bytes_accessed),
    )(seg, f12t, w1t, b1c, w2t, b2c, w3t, b3c)
    return out[0, :E].reshape(-1, 1)


# ---------------- pure-JAX f32 reference (for correctness check) ----------------
def _instance_norm_ref(x, seg, num_graphs):
    ones = jnp.ones((x.shape[0], 1), jnp.float32)
    cnt = jnp.maximum(jax.ops.segment_sum(ones, seg, num_graphs), 1.0)    # [G,1]
    mean = jax.ops.segment_sum(x, seg, num_graphs) / cnt                   # [G,C]
    centered = x - mean[seg]
    var = jax.ops.segment_sum(centered * centered, seg, num_graphs) / cnt
    return centered / jnp.sqrt(var[seg] + EPS)


def extractor_mlp_reference(emb, edge_index, batch, params, num_graphs_padded=8):
    col, row = edge_index[0], edge_index[1]
    f12 = jnp.concatenate([emb[col], emb[row]], axis=-1)
    seg = batch[col]
    (w1, b1), (w2, b2), (w3, b3) = params
    h = f12 @ w1 + b1
    h = jnp.maximum(_instance_norm_ref(h, seg, num_graphs_padded), 0.0)
    h = h @ w2 + b2
    h = jnp.maximum(_instance_norm_ref(h, seg, num_graphs_padded), 0.0)
    return h @ w3 + b3


# ---------------- deterministic parameter init (nn.Linear style) ------------
def _init_linear(key, fan_in, fan_out):
    kw, kb = jax.random.split(key)
    bound = 1.0 / np.sqrt(fan_in)
    w = jax.random.uniform(kw, (fan_in, fan_out), jnp.float32, -bound, bound)
    b = jax.random.uniform(kb, (fan_out,), jnp.float32, -bound, bound)
    return w, b


if __name__ == "__main__":
    hidden = 32            # config.model.dim_hidden
    num_nodes = 64
    num_edges = 500        # deliberately not a multiple of the tile (exercises padding)
    num_graphs = 4
    num_graphs_padded = 8
    tile_e = 128           # -> grid (3 passes, 4 edge tiles)

    key = jax.random.PRNGKey(0)
    k_emb, k_col, k_row, k1, k2, k3 = jax.random.split(key, 6)

    emb = jax.random.normal(k_emb, (num_nodes, hidden), jnp.float32)
    col = jax.random.randint(k_col, (num_edges,), 0, num_nodes)
    row = jax.random.randint(k_row, (num_edges,), 0, num_nodes)
    edge_index = jnp.stack([col, row], axis=0)                      # [2, E]
    batch = (jnp.arange(num_nodes) // (num_nodes // num_graphs)).astype(jnp.int32)

    # MLP([2H, 4H, H, 1]) -> three Linear layers
    params = (
        _init_linear(k1, 2 * hidden, 4 * hidden),
        _init_linear(k2, 4 * hidden, hidden),
        _init_linear(k3, hidden, 1),
    )

    out = extractor_mlp_forward(emb, edge_index, batch, params,
                                num_graphs_padded=num_graphs_padded, tile_e=tile_e)
    out = jax.block_until_ready(out)

    ref = extractor_mlp_reference(emb, edge_index, batch, params, num_graphs_padded)
    # bf16 matmul operands (f32 accumulation / f32 norm stats math) -> looser tolerance.
    np.testing.assert_allclose(np.asarray(out), np.asarray(ref), rtol=3e-2, atol=3e-2)

    print("KERNEL_OK")
</pallas_src>

<mosaic_0001>
module attributes {stable_mosaic.version = 11 : i64} {
  func.func @_extractor_mlp_kernel(%arg0: i32, %arg1: i32, %arg2: memref<1x128xi32, #tpu.memory_space<vmem>>, %arg3: memref<64x128xbf16, #tpu.memory_space<vmem>>, %arg4: memref<128x64xbf16, #tpu.memory_space<vmem>>, %arg5: memref<128x1xf32, #tpu.memory_space<vmem>>, %arg6: memref<32x128xbf16, #tpu.memory_space<vmem>>, %arg7: memref<32x1xf32, #tpu.memory_space<vmem>>, %arg8: memref<1x32xbf16, #tpu.memory_space<vmem>>, %arg9: memref<1x1xf32, #tpu.memory_space<vmem>>, %arg10: memref<1x128xf32, #tpu.memory_space<vmem>>, %arg11: memref<128x8xf32, #tpu.memory_space<vmem>>, %arg12: memref<128x8xf32, #tpu.memory_space<vmem>>, %arg13: memref<32x8xf32, #tpu.memory_space<vmem>>, %arg14: memref<32x8xf32, #tpu.memory_space<vmem>>, %arg15: memref<1x8xf32, #tpu.memory_space<vmem>>) attributes {dimension_semantics = [#tpu.dimension_semantics<arbitrary>, #tpu.dimension_semantics<arbitrary>], iteration_bounds = array<i64: 3, 4>, scalar_prefetch = 0 : i64, scratch_operands = 5 : i64, tpu.core_type = #tpu.core_type<tc>, window_params = [{transform_indices = @transform_0, window_bounds = array<i64: 1, 128>}, {transform_indices = @transform_1, window_bounds = array<i64: 64, 128>}, {pipeline_mode = #tpu.pipeline_mode<synchronous>, transform_indices = @transform_2, window_bounds = array<i64: 128, 64>}, {pipeline_mode = #tpu.pipeline_mode<synchronous>, transform_indices = @transform_3, window_bounds = array<i64: 128, 1>}, {pipeline_mode = #tpu.pipeline_mode<synchronous>, transform_indices = @transform_4, window_bounds = array<i64: 32, 128>}, {pipeline_mode = #tpu.pipeline_mode<synchronous>, transform_indices = @transform_5, window_bounds = array<i64: 32, 1>}, {pipeline_mode = #tpu.pipeline_mode<synchronous>, transform_indices = @transform_6, window_bounds = array<i64: 1, 32>}, {pipeline_mode = #tpu.pipeline_mode<synchronous>, transform_indices = @transform_7, window_bounds = array<i64: 1, 1>}, {transform_indices = @transform_8, window_bounds = array<i64: 1, 128>}]} {
    %c0_i32 = arith.constant 0 : i32
    %0 = arith.cmpi eq, %arg0, %c0_i32 : i32
    %c0_i32_0 = arith.constant 0 : i32
    %1 = arith.cmpi eq, %arg1, %c0_i32_0 : i32
    %2 = arith.andi %0, %1 : i1
    %3 = arith.extui %2 : i1 to i32
    %c0_i32_1 = arith.constant 0 : i32
    %4 = arith.cmpi ne, %3, %c0_i32_1 : i32
    scf.if %4 {
      %cst_13 = arith.constant 0.000000e+00 : f32
      %27 = vector.broadcast %cst_13 : f32 to vector<128x8xf32>
      %c0_14 = arith.constant 0 : index
      %c0_15 = arith.constant 0 : index
      %28 = vector.load %arg11[%c0_14, %c0_15] : memref<128x8xf32, #tpu.memory_space<vmem>>, vector<128x8xf32>
      tpu.vector_store %arg11[%c0_14, %c0_15], %27 {strides = array<i32>} : memref<128x8xf32, #tpu.memory_space<vmem>>, vector<128x8xf32>,
      %cst_16 = arith.constant 0.000000e+00 : f32
      %29 = vector.broadcast %cst_16 : f32 to vector<128x8xf32>
      %c0_17 = arith.constant 0 : index
      %c0_18 = arith.constant 0 : index
      %30 = vector.load %arg12[%c0_17, %c0_18] : memref<128x8xf32, #tpu.memory_space<vmem>>, vector<128x8xf32>
      tpu.vector_store %arg12[%c0_17, %c0_18], %29 {strides = array<i32>} : memref<128x8xf32, #tpu.memory_space<vmem>>, vector<128x8xf32>,
      %cst_19 = arith.constant 0.000000e+00 : f32
      %31 = vector.broadcast %cst_19 : f32 to vector<32x8xf32>
      %c0_20 = arith.constant 0 : index
      %c0_21 = arith.constant 0 : index
      %32 = vector.load %arg13[%c0_20, %c0_21] : memref<32x8xf32, #tpu.memory_space<vmem>>, vector<32x8xf32>
      tpu.vector_store %arg13[%c0_20, %c0_21], %31 {strides = array<i32>} : memref<32x8xf32, #tpu.memory_space<vmem>>, vector<32x8xf32>,
      %cst_22 = arith.constant 0.000000e+00 : f32
      %33 = vector.broadcast %cst_22 : f32 to vector<32x8xf32>
      %c0_23 = arith.constant 0 : index
      %c0_24 = arith.constant 0 : index
      %34 = vector.load %arg14[%c0_23, %c0_24] : memref<32x8xf32, #tpu.memory_space<vmem>>, vector<32x8xf32>
      tpu.vector_store %arg14[%c0_23, %c0_24], %33 {strides = array<i32>} : memref<32x8xf32, #tpu.memory_space<vmem>>, vector<32x8xf32>,
      %cst_25 = arith.constant 0.000000e+00 : f32
      %35 = vector.broadcast %cst_25 : f32 to vector<1x8xf32>
      %c0_26 = arith.constant 0 : index
      %c0_27 = arith.constant 0 : index
      %36 = vector.load %arg15[%c0_26, %c0_27] : memref<1x8xf32, #tpu.memory_space<vmem>>, vector<1x8xf32>
      tpu.vector_store %arg15[%c0_26, %c0_27], %35 {strides = array<i32>} : memref<1x8xf32, #tpu.memory_space<vmem>>, vector<1x8xf32>,
    } else {
    }
    %c0 = arith.constant 0 : index
    %c0_2 = arith.constant 0 : index
    %5 = vector.load %arg2[%c0, %c0_2] : memref<1x128xi32, #tpu.memory_space<vmem>>, vector<1x128xi32>
    %6 = tpu.iota {dimensions = array<i32: 0>} : vector<8x128xi32>
    %7 = vector.broadcast %5 : vector<1x128xi32> to vector<8x128xi32>
    %8 = arith.cmpi eq, %6, %7 : vector<8x128xi32>
    %9 = arith.extui %8 : vector<8x128xi1> to vector<8x128xi32>
    %10 = arith.sitofp %9 : vector<8x128xi32> to vector<8x128xf32>
    %11 = arith.truncf %10 : vector<8x128xf32> to vector<8x128xbf16>
    %c0_3 = arith.constant 0 : index
    %c0_4 = arith.constant 0 : index
    %12 = vector.load %arg4[%c0_3, %c0_4] : memref<128x64xbf16, #tpu.memory_space<vmem>>, vector<128x64xbf16>
    %c0_5 = arith.constant 0 : index
    %c0_6 = arith.constant 0 : index
    %13 = vector.load %arg3[%c0_5, %c0_6] : memref<64x128xbf16, #tpu.memory_space<vmem>>, vector<64x128xbf16>
    %cst = arith.constant dense<0.000000e+00> : vector<128x128xf32>
    %14 = tpu.matmul %12, %13, %cst {dimension_numbers = #tpu.dot_dimension_numbers<[1], [0], [0], [1], [0, 0, 1, 1], [], []>} : vector<128x64xbf16>, vector<64x128xbf16>, vector<128x128xf32> -> vector<128x128xf32>
    %c0_7 = arith.constant 0 : index
    %c0_8 = arith.constant 0 : index
    %15 = vector.load %arg5[%c0_7, %c0_8] : memref<128x1xf32, #tpu.memory_space<vmem>>, vector<128x1xf32>
    %16 = vector.broadcast %15 : vector<128x1xf32> to vector<128x128xf32>
    %17 = arith.addf %14, %16 : vector<128x128xf32>
    %c0_i32_9 = arith.constant 0 : i32
    %18 = arith.cmpi eq, %arg0, %c0_i32_9 : i32
    %19 = arith.extui %18 : i1 to i32
    %c0_i32_10 = arith.constant 0 : i32
    %20 = arith.cmpi ne, %19, %c0_i32_10 : i32
    scf.if %20 {
      %cst_13 = arith.constant 1.000000e+00 : bf16
      %27 = vector.broadcast %cst_13 : bf16 to vector<1x128xbf16>
      %c0_14 = arith.constant 0 : index
      %c0_15 = arith.constant 0 : index
      %28 = vector.load %arg15[%c0_14, %c0_15] : memref<1x8xf32, #tpu.memory_space<vmem>>, vector<1x8xf32>
      %cst_16 = arith.constant dense<0.000000e+00> : vector<1x8xf32>
      %29 = tpu.matmul %27, %11, %cst_16 {dimension_numbers = #tpu.dot_dimension_numbers<[1], [1], [0], [0], [0, 0, 1, 0], [], []>} : vector<1x128xbf16>, vector<8x128xbf16>, vector<1x8xf32> -> vector<1x8xf32>
      %30 = arith.addf %28, %29 : vector<1x8xf32>
      %c0_17 = arith.constant 0 : index
      %c0_18 = arith.constant 0 : index
      %31 = vector.load %arg15[%c0_17, %c0_18] : memref<1x8xf32, #tpu.memory_space<vmem>>, vector<1x8xf32>
      tpu.vector_store %arg15[%c0_17, %c0_18], %30 {strides = array<i32>} : memref<1x8xf32, #tpu.memory_space<vmem>>, vector<1x8xf32>,
      %32 = arith.truncf %17 : vector<128x128xf32> to vector<128x128xbf16>
      %33 = arith.mulf %17, %17 : vector<128x128xf32>
      %34 = arith.truncf %33 : vector<128x128xf32> to vector<128x128xbf16>
      %c0_19 = arith.constant 0 : index
      %c0_20 = arith.constant 0 : index
      %35 = vector.load %arg11[%c0_19, %c0_20] : memref<128x8xf32, #tpu.memory_space<vmem>>, vector<128x8xf32>
      %cst_21 = arith.constant dense<0.000000e+00> : vector<128x8xf32>
      %36 = tpu.matmul %32, %11, %cst_21 {dimension_numbers = #tpu.dot_dimension_numbers<[1], [1], [0], [0], [0, 0, 1, 0], [], []>} : vector<128x128xbf16>, vector<8x128xbf16>, vector<128x8xf32> -> vector<128x8xf32>
      %37 = arith.addf %35, %36 : vector<128x8xf32>
      %c0_22 = arith.constant 0 : index
      %c0_23 = arith.constant 0 : index
      %38 = vector.load %arg11[%c0_22, %c0_23] : memref<128x8xf32, #tpu.memory_space<vmem>>, vector<128x8xf32>
      tpu.vector_store %arg11[%c0_22, %c0_23], %37 {strides = array<i32>} : memref<128x8xf32, #tpu.memory_space<vmem>>, vector<128x8xf32>,
      %c0_24 = arith.constant 0 : index
      %c0_25 = arith.constant 0 : index
      %39 = vector.load %arg12[%c0_24, %c0_25] : memref<128x8xf32, #tpu.memory_space<vmem>>, vector<128x8xf32>
      %cst_26 = arith.constant dense<0.000000e+00> : vector<128x8xf32>
      %40 = tpu.matmul %34, %11, %cst_26 {dimension_numbers = #tpu.dot_dimension_numbers<[1], [1], [0], [0], [0, 0, 1, 0], [], []>} : vector<128x128xbf16>, vector<8x128xbf16>, vector<128x8xf32> -> vector<128x8xf32>
      %41 = arith.addf %39, %40 : vector<128x8xf32>
      %c0_27 = arith.constant 0 : index
      %c0_28 = arith.constant 0 : index
      %42 = vector.load %arg12[%c0_27, %c0_28] : memref<128x8xf32, #tpu.memory_space<vmem>>, vector<128x8xf32>
      tpu.vector_store %arg12[%c0_27, %c0_28], %41 {strides = array<i32>} : memref<128x8xf32, #tpu.memory_space<vmem>>, vector<128x8xf32>,
    } else {
    }
    %c1_i32 = arith.constant 1 : i32
    %21 = arith.cmpi eq, %arg0, %c1_i32 : i32
    %22 = arith.extui %21 : i1 to i32
    %c0_i32_11 = arith.constant 0 : i32
    %23 = arith.cmpi ne, %22, %c0_i32_11 : i32
    scf.if %23 {
      %c0_13 = arith.constant 0 : index
      %c0_14 = arith.constant 0 : index
      %27 = vector.load %arg15[%c0_13, %c0_14] : memref<1x8xf32, #tpu.memory_space<vmem>>, vector<1x8xf32>
      %cst_15 = arith.constant 1.000000e+00 : f32
      %28 = vector.broadcast %cst_15 : f32 to vector<1x8xf32>
      %29 = arith.maximumf %27, %28 : vector<1x8xf32>
      %cst_16 = arith.constant 1.000000e+00 : f32
      %30 = vector.broadcast %cst_16 : f32 to vector<1x8xf32>
      %31 = arith.divf %30, %29 : vector<1x8xf32>
      %c0_17 = arith.constant 0 : index
      %c0_18 = arith.constant 0 : index
      %32 = vector.load %arg11[%c0_17, %c0_18] : memref<128x8xf32, #tpu.memory_space<vmem>>, vector<128x8xf32>
      %33 = vector.broadcast %31 : vector<1x8xf32> to vector<128x8xf32>
      %34 = arith.mulf %32, %33 : vector<128x8xf32>
      %c0_19 = arith.constant 0 : index
      %c0_20 = arith.constant 0 : index
      %35 = vector.load %arg12[%c0_19, %c0_20] : memref<128x8xf32, #tpu.memory_space<vmem>>, vector<128x8xf32>
      %36 = vector.broadcast %31 : vector<1x8xf32> to vector<128x8xf32>
      %37 = arith.mulf %35, %36 : vector<128x8xf32>
      %38 = arith.mulf %34, %34 : vector<128x8xf32>
      %39 = arith.subf %37, %38 : vector<128x8xf32>
      %cst_21 = arith.constant 0.000000e+00 : f32
      %40 = vector.broadcast %cst_21 : f32 to vector<128x8xf32>
      %41 = arith.maximumf %39, %40 : vector<128x8xf32>
      %cst_22 = arith.constant 9.99999974E-6 : f32
      %42 = vector.broadcast %cst_22 : f32 to vector<128x8xf32>
      %43 = arith.addf %41, %42 : vector<128x8xf32>
      %44 = math.rsqrt %43 : vector<128x8xf32>
      %cst_23 = arith.constant 0.000000e+00 : f32
      %45 = vector.broadcast %cst_23 : f32 to vector<128x8xf32>
      %46 = arith.subf %45, %34 : vector<128x8xf32>
      %47 = arith.mulf %46, %44 : vector<128x8xf32>
      %48 = arith.truncf %44 : vector<128x8xf32> to vector<128x8xbf16>
      %cst_24 = arith.constant dense<0.000000e+00> : vector<128x128xf32>
      %49 = tpu.matmul %48, %11, %cst_24 {dimension_numbers = #tpu.dot_dimension_numbers<[1], [0], [0], [1], [0, 0, 1, 1], [], []>} : vector<128x8xbf16>, vector<8x128xbf16>, vector<128x128xf32> -> vector<128x128xf32>
      %50 = arith.truncf %47 : vector<128x8xf32> to vector<128x8xbf16>
      %cst_25 = arith.constant dense<0.000000e+00> : vector<128x128xf32>
      %51 = tpu.matmul %50, %11, %cst_25 {dimension_numbers = #tpu.dot_dimension_numbers<[1], [0], [0], [1], [0, 0, 1, 1], [], []>} : vector<128x8xbf16>, vector<8x128xbf16>, vector<128x128xf32> -> vector<128x128xf32>
      %52 = arith.mulf %17, %49 : vector<128x128xf32>
      %53 = arith.addf %52, %51 : vector<128x128xf32>
      %cst_26 = arith.constant 0.000000e+00 : f32
      %54 = vector.broadcast %cst_26 : f32 to vector<128x128xf32>
      %55 = arith.maximumf %53, %54 : vector<128x128xf32>
      %c0_27 = arith.constant 0 : index
      %c0_28 = arith.constant 0 : index
      %56 = vector.load %arg6[%c0_27, %c0_28] : memref<32x128xbf16, #tpu.memory_space<vmem>>, vector<32x128xbf16>
      %57 = arith.truncf %55 : vector<128x128xf32> to vector<128x128xbf16>
      %cst_29 = arith.constant dense<0.000000e+00> : vector<32x128xf32>
      %58 = tpu.matmul %56, %57, %cst_29 {dimension_numbers = #tpu.dot_dimension_numbers<[1], [0], [0], [1], [0, 0, 1, 1], [], []>} : vector<32x128xbf16>, vector<128x128xbf16>, vector<32x128xf32> -> vector<32x128xf32>
      %c0_30 = arith.constant 0 : index
      %c0_31 = arith.constant 0 : index
      %59 = vector.load %arg7[%c0_30, %c0_31] : memref<32x1xf32, #tpu.memory_space<vmem>>, vector<32x1xf32>
      %60 = vector.broadcast %59 : vector<32x1xf32> to vector<32x128xf32>
      %61 = arith.addf %58, %60 : vector<32x128xf32>
      %62 = arith.truncf %61 : vector<32x128xf32> to vector<32x128xbf16>
      %63 = arith.mulf %61, %61 : vector<32x128xf32>
      %64 = arith.truncf %63 : vector<32x128xf32> to vector<32x128xbf16>
      %c0_32 = arith.constant 0 : index
      %c0_33 = arith.constant 0 : index
      %65 = vector.load %arg13[%c0_32, %c0_33] : memref<32x8xf32, #tpu.memory_space<vmem>>, vector<32x8xf32>
      %cst_34 = arith.constant dense<0.000000e+00> : vector<32x8xf32>
      %66 = tpu.matmul %62, %11, %cst_34 {dimension_numbers = #tpu.dot_dimension_numbers<[1], [1], [0], [0], [0, 0, 1, 0], [], []>} : vector<32x128xbf16>, vector<8x128xbf16>, vector<32x8xf32> -> vector<32x8xf32>
      %67 = arith.addf %65, %66 : vector<32x8xf32>
      %c0_35 = arith.constant 0 : index
      %c0_36 = arith.constant 0 : index
      %68 = vector.load %arg13[%c0_35, %c0_36] : memref<32x8xf32, #tpu.memory_space<vmem>>, vector<32x8xf32>
      tpu.vector_store %arg13[%c0_35, %c0_36], %67 {strides = array<i32>} : memref<32x8xf32, #tpu.memory_space<vmem>>, vector<32x8xf32>,
      %c0_37 = arith.constant 0 : index
      %c0_38 = arith.constant 0 : index
      %69 = vector.load %arg14[%c0_37, %c0_38] : memref<32x8xf32, #tpu.memory_space<vmem>>, vector<32x8xf32>
      %cst_39 = arith.constant dense<0.000000e+00> : vector<32x8xf32>
      %70 = tpu.matmul %64, %11, %cst_39 {dimension_numbers = #tpu.dot_dimension_numbers<[1], [1], [0], [0], [0, 0, 1, 0], [], []>} : vector<32x128xbf16>, vector<8x128xbf16>, vector<32x8xf32> -> vector<32x8xf32>
      %71 = arith.addf %69, %70 : vector<32x8xf32>
      %c0_40 = arith.constant 0 : index
      %c0_41 = arith.constant 0 : index
      %72 = vector.load %arg14[%c0_40, %c0_41] : memref<32x8xf32, #tpu.memory_space<vmem>>, vector<32x8xf32>
      tpu.vector_store %arg14[%c0_40, %c0_41], %71 {strides = array<i32>} : memref<32x8xf32, #tpu.memory_space<vmem>>, vector<32x8xf32>,
    } else {
    }
    %c2_i32 = arith.constant 2 : i32
    %24 = arith.cmpi eq, %arg0, %c2_i32 : i32
    %25 = arith.extui %24 : i1 to i32
    %c0_i32_12 = arith.constant 0 : i32
    %26 = arith.cmpi ne, %25, %c0_i32_12 : i32
    scf.if %26 {
      %c0_13 = arith.constant 0 : index
      %c0_14 = arith.constant 0 : index
      %27 = vector.load %arg15[%c0_13, %c0_14] : memref<1x8xf32, #tpu.memory_space<vmem>>, vector<1x8xf32>
      %cst_15 = arith.constant 1.000000e+00 : f32
      %28 = vector.broadcast %cst_15 : f32 to vector<1x8xf32>
      %29 = arith.maximumf %27, %28 : vector<1x8xf32>
      %cst_16 = arith.constant 1.000000e+00 : f32
      %30 = vector.broadcast %cst_16 : f32 to vector<1x8xf32>
      %31 = arith.divf %30, %29 : vector<1x8xf32>
      %c0_17 = arith.constant 0 : index
      %c0_18 = arith.constant 0 : index
      %32 = vector.load %arg11[%c0_17, %c0_18] : memref<128x8xf32, #tpu.memory_space<vmem>>, vector<128x8xf32>
      %33 = vector.broadcast %31 : vector<1x8xf32> to vector<128x8xf32>
      %34 = arith.mulf %32, %33 : vector<128x8xf32>
      %c0_19 = arith.constant 0 : index
      %c0_20 = arith.constant 0 : index
      %35 = vector.load %arg12[%c0_19, %c0_20] : memref<128x8xf32, #tpu.memory_space<vmem>>, vector<128x8xf32>
      %36 = vector.broadcast %31 : vector<1x8xf32> to vector<128x8xf32>
      %37 = arith.mulf %35, %36 : vector<128x8xf32>
      %38 = arith.mulf %34, %34 : vector<128x8xf32>
      %39 = arith.subf %37, %38 : vector<128x8xf32>
      %cst_21 = arith.constant 0.000000e+00 : f32
      %40 = vector.broadcast %cst_21 : f32 to vector<128x8xf32>
      %41 = arith.maximumf %39, %40 : vector<128x8xf32>
      %cst_22 = arith.constant 9.99999974E-6 : f32
      %42 = vector.broadcast %cst_22 : f32 to vector<128x8xf32>
      %43 = arith.addf %41, %42 : vector<128x8xf32>
      %44 = math.rsqrt %43 : vector<128x8xf32>
      %cst_23 = arith.constant 0.000000e+00 : f32
      %45 = vector.broadcast %cst_23 : f32 to vector<128x8xf32>
      %46 = arith.subf %45, %34 : vector<128x8xf32>
      %47 = arith.mulf %46, %44 : vector<128x8xf32>
      %48 = arith.truncf %44 : vector<128x8xf32> to vector<128x8xbf16>
      %cst_24 = arith.constant dense<0.000000e+00> : vector<128x128xf32>
      %49 = tpu.matmul %48, %11, %cst_24 {dimension_numbers = #tpu.dot_dimension_numbers<[1], [0], [0], [1], [0, 0, 1, 1], [], []>} : vector<128x8xbf16>, vector<8x128xbf16>, vector<128x128xf32> -> vector<128x128xf32>
      %50 = arith.truncf %47 : vector<128x8xf32> to vector<128x8xbf16>
      %cst_25 = arith.constant dense<0.000000e+00> : vector<128x128xf32>
      %51 = tpu.matmul %50, %11, %cst_25 {dimension_numbers = #tpu.dot_dimension_numbers<[1], [0], [0], [1], [0, 0, 1, 1], [], []>} : vector<128x8xbf16>, vector<8x128xbf16>, vector<128x128xf32> -> vector<128x128xf32>
      %52 = arith.mulf %17, %49 : vector<128x128xf32>
      %53 = arith.addf %52, %51 : vector<128x128xf32>
      %cst_26 = arith.constant 0.000000e+00 : f32
      %54 = vector.broadcast %cst_26 : f32 to vector<128x128xf32>
      %55 = arith.maximumf %53, %54 : vector<128x128xf32>
      %c0_27 = arith.constant 0 : index
      %c0_28 = arith.constant 0 : index
      %56 = vector.load %arg6[%c0_27, %c0_28] : memref<32x128xbf16, #tpu.memory_space<vmem>>, vector<32x128xbf16>
      %57 = arith.truncf %55 : vector<128x128xf32> to vector<128x128xbf16>
      %cst_29 = arith.constant dense<0.000000e+00> : vector<32x128xf32>
      %58 = tpu.matmul %56, %57, %cst_29 {dimension_numbers = #tpu.dot_dimension_numbers<[1], [0], [0], [1], [0, 0, 1, 1], [], []>} : vector<32x128xbf16>, vector<128x128xbf16>, vector<32x128xf32> -> vector<32x128xf32>
      %c0_30 = arith.constant 0 : index
      %c0_31 = arith.constant 0 : index
      %59 = vector.load %arg7[%c0_30, %c0_31] : memref<32x1xf32, #tpu.memory_space<vmem>>, vector<32x1xf32>
      %60 = vector.broadcast %59 : vector<32x1xf32> to vector<32x128xf32>
      %61 = arith.addf %58, %60 : vector<32x128xf32>
      %c0_32 = arith.constant 0 : index
      %c0_33 = arith.constant 0 : index
      %62 = vector.load %arg15[%c0_32, %c0_33] : memref<1x8xf32, #tpu.memory_space<vmem>>, vector<1x8xf32>
      %cst_34 = arith.constant 1.000000e+00 : f32
      %63 = vector.broadcast %cst_34 : f32 to vector<1x8xf32>
      %64 = arith.maximumf %62, %63 : vector<1x8xf32>
      %cst_35 = arith.constant 1.000000e+00 : f32
      %65 = vector.broadcast %cst_35 : f32 to vector<1x8xf32>
      %66 = arith.divf %65, %64 : vector<1x8xf32>
      %c0_36 = arith.constant 0 : index
      %c0_37 = arith.constant 0 : index
      %67 = vector.load %arg13[%c0_36, %c0_37] : memref<32x8xf32, #tpu.memory_space<vmem>>, vector<32x8xf32>
      %68 = vector.broadcast %66 : vector<1x8xf32> to vector<32x8xf32>
      %69 = arith.mulf %67, %68 : vector<32x8xf32>
      %c0_38 = arith.constant 0 : index
      %c0_39 = arith.constant 0 : index
      %70 = vector.load %arg14[%c0_38, %c0_39] : memref<32x8xf32, #tpu.memory_space<vmem>>, vector<32x8xf32>
      %71 = vector.broadcast %66 : vector<1x8xf32> to vector<32x8xf32>
      %72 = arith.mulf %70, %71 : vector<32x8xf32>
      %73 = arith.mulf %69, %69 : vector<32x8xf32>
      %74 = arith.subf %72, %73 : vector<32x8xf32>
      %cst_40 = arith.constant 0.000000e+00 : f32
      %75 = vector.broadcast %cst_40 : f32 to vector<32x8xf32>
      %76 = arith.maximumf %74, %75 : vector<32x8xf32>
      %cst_41 = arith.constant 9.99999974E-6 : f32
      %77 = vector.broadcast %cst_41 : f32 to vector<32x8xf32>
      %78 = arith.addf %76, %77 : vector<32x8xf32>
      %79 = math.rsqrt %78 : vector<32x8xf32>
      %cst_42 = arith.constant 0.000000e+00 : f32
      %80 = vector.broadcast %cst_42 : f32 to vector<32x8xf32>
      %81 = arith.subf %80, %69 : vector<32x8xf32>
      %82 = arith.mulf %81, %79 : vector<32x8xf32>
      %83 = arith.truncf %79 : vector<32x8xf32> to vector<32x8xbf16>
      %cst_43 = arith.constant dense<0.000000e+00> : vector<32x128xf32>
      %84 = tpu.matmul %83, %11, %cst_43 {dimension_numbers = #tpu.dot_dimension_numbers<[1], [0], [0], [1], [0, 0, 1, 1], [], []>} : vector<32x8xbf16>, vector<8x128xbf16>, vector<32x128xf32> -> vector<32x128xf32>
      %85 = arith.truncf %82 : vector<32x8xf32> to vector<32x8xbf16>
      %cst_44 = arith.constant dense<0.000000e+00> : vector<32x128xf32>
      %86 = tpu.matmul %85, %11, %cst_44 {dimension_numbers = #tpu.dot_dimension_numbers<[1], [0], [0], [1], [0, 0, 1, 1], [], []>} : vector<32x8xbf16>, vector<8x128xbf16>, vector<32x128xf32> -> vector<32x128xf32>
      %87 = arith.mulf %61, %84 : vector<32x128xf32>
      %88 = arith.addf %87, %86 : vector<32x128xf32>
      %cst_45 = arith.constant 0.000000e+00 : f32
      %89 = vector.broadcast %cst_45 : f32 to vector<32x128xf32>
      %90 = arith.maximumf %88, %89 : vector<32x128xf32>
      %c0_46 = arith.constant 0 : index
      %c0_47 = arith.constant 0 : index
      %91 = vector.load %arg8[%c0_46, %c0_47] : memref<1x32xbf16, #tpu.memory_space<vmem>>, vector<1x32xbf16>
      %92 = arith.truncf %90 : vector<32x128xf32> to vector<32x128xbf16>
      %cst_48 = arith.constant dense<0.000000e+00> : vector<1x128xf32>
      %93 = tpu.matmul %91, %92, %cst_48 {dimension_numbers = #tpu.dot_dimension_numbers<[1], [0], [0], [1], [0, 0, 1, 1], [], []>} : vector<1x32xbf16>, vector<32x128xbf16>, vector<1x128xf32> -> vector<1x128xf32>
      %c0_49 = arith.constant 0 : index
      %c0_50 = arith.constant 0 : index
      %94 = vector.load %arg9[%c0_49, %c0_50] : memref<1x1xf32, #tpu.memory_space<vmem>>, vector<1x1xf32>
      %95 = vector.broadcast %94 : vector<1x1xf32> to vector<1x128xf32>
      %96 = arith.addf %93, %95 : vector<1x128xf32>
      %c0_51 = arith.constant 0 : index
      %c0_52 = arith.constant 0 : index
      %97 = vector.load %arg10[%c0_51, %c0_52] : memref<1x128xf32, #tpu.memory_space<vmem>>, vector<1x128xf32>
      tpu.vector_store %arg10[%c0_51, %c0_52], %96 {strides = array<i32>} : memref<1x128xf32, #tpu.memory_space<vmem>>, vector<1x128xf32>,
    } else {
    }
    return
  }
  func.func @transform_0(%arg0: i32, %arg1: i32) -> (i32, i32) {
    %c0_i32 = arith.constant 0 : i32
    %c0_i32_0 = arith.constant 0 : i32
    return %c0_i32, %arg1 : i32, i32
  }
  func.func @transform_1(%arg0: i32, %arg1: i32) -> (i32, i32) {
    %c0_i32 = arith.constant 0 : i32
    %c0_i32_0 = arith.constant 0 : i32
    return %c0_i32, %arg1 : i32, i32
  }
  func.func @transform_2(%arg0: i32, %arg1: i32) -> (i32, i32) {
    %c0_i32 = arith.constant 0 : i32
    %c0_i32_0 = arith.constant 0 : i32
    %c0_i32_1 = arith.constant 0 : i32
    return %c0_i32, %c0_i32_0 : i32, i32
  }
  func.func @transform_3(%arg0: i32, %arg1: i32) -> (i32, i32) {
    %c0_i32 = arith.constant 0 : i32
    %c0_i32_0 = arith.constant 0 : i32
    %c0_i32_1 = arith.constant 0 : i32
    return %c0_i32, %c0_i32_0 : i32, i32
  }
  func.func @transform_4(%arg0: i32, %arg1: i32) -> (i32, i32) {
    %c0_i32 = arith.constant 0 : i32
    %c0_i32_0 = arith.constant 0 : i32
    %c0_i32_1 = arith.constant 0 : i32
    return %c0_i32, %c0_i32_0 : i32, i32
  }
  func.func @transform_5(%arg0: i32, %arg1: i32) -> (i32, i32) {
    %c0_i32 = arith.constant 0 : i32
    %c0_i32_0 = arith.constant 0 : i32
    %c0_i32_1 = arith.constant 0 : i32
    return %c0_i32, %c0_i32_0 : i32, i32
  }
  func.func @transform_6(%arg0: i32, %arg1: i32) -> (i32, i32) {
    %c0_i32 = arith.constant 0 : i32
    %c0_i32_0 = arith.constant 0 : i32
    %c0_i32_1 = arith.constant 0 : i32
    return %c0_i32, %c0_i32_0 : i32, i32
  }
  func.func @transform_7(%arg0: i32, %arg1: i32) -> (i32, i32) {
    %c0_i32 = arith.constant 0 : i32
    %c0_i32_0 = arith.constant 0 : i32
    %c0_i32_1 = arith.constant 0 : i32
    return %c0_i32, %c0_i32_0 : i32, i32
  }
  func.func @transform_8(%arg0: i32, %arg1: i32) -> (i32, i32) {
    %c0_i32 = arith.constant 0 : i32
    %c0_i32_0 = arith.constant 0 : i32
    return %c0_i32, %arg1 : i32, i32
  }
}

</mosaic_0001>

<bundles_post_ra>
// kernel: tpu_custom_call.1
= control target key start
LH: loop header
LB: loop body
LE: loop exit
PB: predicated region body
PF: predicated region fallthrough
CT: control target
= control target key end

     0   :  { %s4194_s0 = inlined_call_operand.vmem [shape: s32[1,512], index: 0, kind: input, shape index: {}]   ;;  %s4195_s1 = inlined_call_operand.vmem [shape: bf16[64,512], index: 1, kind: input, shape index: {}]   ;;  %s4196_s2 = inlined_call_operand.vmem [shape: bf16[128,64], index: 2, kind: input, shape index: {}]   ;;  %s4197_s3 = inlined_call_operand.vmem [shape: f32[128,1], index: 3, kind: input, shape index: {}]   ;;  %s4198_s4 = inlined_call_operand.vmem [shape: bf16[32,128], index: 4, kind: input, shape index: {}]   ;;  %s4199_s5 = inlined_call_operand.vmem [shape: f32[32,1], index: 5, kind: input, shape index: {}]   ;;  %s4200_s6 = inlined_call_operand.vmem [shape: bf16[1,32], index: 6, kind: input, shape index: {}]   ;;  %s4201_s7 = inlined_call_operand.<no memory space> [shape: f32[1,1], index: 7, kind: input, shape index: {}]   ;;  %s4202_s8 = inlined_call_operand.hbm [shape: f32[1,512], index: 8, kind: output, shape index: {}]  }
   0x1   :  { %4203 = sst [smem:[#allocation12_spill]] %s4194_s0  ;;  %v13_v0 = vstv %s4201_s7 }
   0x2   :  { %4204 = sst [smem:[#allocation13_spill]] %s4195_s1  ;;  %14 = vst [vmem:[#allocation7] sm:$0x1] %v13_v0 }
   0x3   :  { %15 = vsyncpa [#allocation10], 0 }
   0x4   :  { %17 = vsyncpa [#allocation10 + $0x1], 0  ;;  %s3040_s29 = smov 0   ;;  %s3042_s30 = smov 0  }
   0x5   :  { %s3044_s9 = smov 0   ;;  %s3046_s10 = smov 0  }
   0x6   :  { %s3048_s11 = smov 0   ;;  %s3050_s12 = smov 0  }
   0x7   :  { %s3052_s13 = smov 0   ;;  %s3054_s14 = smov 0  }
   0x8 LB: > { %s2556_s7 = sadd.s32 4294967295, %s2982_s14   ;;  %s2557_s15 = sadd.s32 4294967294, %s2982_s14   ;;  %s2982_s14 = sphi %s3054_s14, %s23_s14   ;;  %s2978_s13 = sphi %s3052_s13, %s4234_s13   ;;  %s2974_s12 = sphi %s3050_s12, %s4233_s12   ;;  %s2970_s11 = sphi %s3048_s11, %s4232_s11   ;;  %s2966_s10 = sphi %s3046_s10, %s4231_s10   ;;  %s2962_s9 = sphi %s3044_s9, %s4230_s9   ;;  %s2958_s30 = sphi %s3042_s30, %s4229_s30   ;;  %s2954_s29 = sphi %s3040_s29, %s4228_s29  }
   0x9   : > { %s32_s16 = sadd.s32 1, %s2974_s12  ;;  %s35_s17 = sadd.s32 1, %s2978_s13 }
   0xa   : > { %p33_p0 = scmp.ge.s32.totalorder %s32_s16, 4  ;;  %s68_s18 = sadd.s32 1, %s2962_s9 }
   0xb   : > { %p75_p1 = scmp.ne.s32.totalorder %s2962_s9, %s2958_s30  ;;  %p76_p2 = scmp.eq.s32.totalorder %s2982_s14, 0 }
   0xc   : > { %s4236_s16 = smov (%p33_p0, %s32_s16), 0  ;;  %s4238_s17 = smov (!%p33_p0, %s35_s17), %s2978_s13 }
   0xd   : > { %s65_s19 = ssub.s32 %s2974_s12, %s4236_s16  ;;  %p77_p3 = por %p76_p2, %p75_p1 }
   0xe   : > { %p37_p4 = scmp.ge.s32.totalorder %s4238_s17, 3  ;;  %p66_p5 = scmp.eq.s32.totalorder %s65_s19, 0 }
   0xf   : > { %p231_p6 = scmp.eq.s32.totalorder %s2556_s7, 11  ;;  %p236_p7 = scmp.ne.s32.totalorder %s2958_s30, %s2954_s29 }
  0x10   : > { %s4240_s17 = smov (%p37_p4, %s4238_s17), 0  ;;  %p237_p9 = scmp.eq.s32.totalorder %s2557_s15, 11 }
  0x11   : > { %s3098_s20 = scalar_select %p66_p5, %s2962_s9, %s68_s18  }
  0x12   : > { %p3100_p8 = por %p231_p6, %p75_p1  ;;  %p3104_p10 = por %p237_p9, %p236_p7 }
  0x13   : > { %p2559_p11 = scmp.ge.s32.totalorder %s2982_s14, 12 }
  0x15   : > { %271 = sbr.rel (%p2559_p11) target bundleno = 44 (0x2c), region = 40 }
  0x1a   : > { %280 = sbr.rel (!%p77_p3) target bundleno = 44 (0x2c), region = 48  ;;  %s282_s23 = sand.u32 (%p77_p3), 1, %s2962_s9  }
  0x1b   : > { %s2561_s24 = sshll.u32 (%p77_p3), %s2974_s12, 2  ;;  %s2560_s25 = sshll.u32 (%p77_p3), %s282_s23, 5 }
  0x1c   : > { %s4207_s1 = sld [smem:[#allocation13_spill]] (%p77_p3)  ;;  %s284_s7 = scalar_lea.vmem (%p77_p3), [#allocation8], %s2560_s25 }
  0x22   : > { %s286_s28 = scalar_lea.vmem %s4207_s1, %s2561_s24 }
  0x23   : > { %v303_v1 = vld [vmem:[%s286_s28] sm:$0xf]  ;;  %v305_v2 = vld [vmem:[%s286_s28 + $0x10] sm:$0xf] }
  0x24   : > { %304 = vst [vmem:[%s284_s7] sm:$0xf] %v303_v1  ;;  %v307_v3 = vld [vmem:[%s286_s28 + $0x20] sm:$0xf]  ;;  %v309_v4 = vld [vmem:[%s286_s28 + $0x30] sm:$0xf] }
  0x25   : > { %306 = vst [vmem:[%s284_s7 + $0x4] sm:$0xf] %v305_v2  ;;  %v311_v5 = vld [vmem:[%s286_s28 + $0x40] sm:$0xf]  ;;  %v313_v6 = vld [vmem:[%s286_s28 + $0x50] sm:$0xf] }
  0x26   : > { %308 = vst [vmem:[%s284_s7 + $0x8] sm:$0xf] %v307_v3  ;;  %v315_v7 = vld [vmem:[%s286_s28 + $0x60] sm:$0xf]  ;;  %v317_v8 = vld [vmem:[%s286_s28 + $0x70] sm:$0xf] }
  0x27   : > { %310 = vst [vmem:[%s284_s7 + $0xc] sm:$0xf] %v309_v4 }
  0x28   : > { %312 = vst [vmem:[%s284_s7 + $0x10] sm:$0xf] %v311_v5 }
  0x29   : > { %314 = vst [vmem:[%s284_s7 + $0x14] sm:$0xf] %v313_v6 }
  0x2a   : > { %316 = vst [vmem:[%s284_s7 + $0x18] sm:$0xf] %v315_v7 }
  0x2b   : > { %318 = vst [vmem:[%s284_s7 + $0x1c] sm:$0xf] %v317_v8 }
  0x2c PF: > { %p2562_p12 = scmp.ge.s32.totalorder %s2982_s14, 1  ;;  %p357_p13 = scmp.lt.s32.totalorder %s2982_s14, 13 }
  0x2e   : > { %p358_p0 = pnand %p2562_p12, %p357_p13 }
  0x2f   : > { %s3117_s15 = sand.u32 (!%p358_p0), 1, %s2958_s30   ;;  %p399_p1 = scmp.lt.s32.totalorder (!%p358_p0), %s2966_s10, 3 }
  0x30   : > { %361 = sbr.rel (%p358_p0) target bundleno = 1765 (0x6e5), region = 89  ;;  %s2563_s18 = sshll.u32 (!%p358_p0), %s3117_s15, 5 }
  0x31   : > { %p404_p2 = scmp.eq.s32.totalorder (!%p358_p0), %s2970_s11, 0  ;;  %p405_p3 = scmp.eq.s32.totalorder (!%p358_p0), %s2966_s10, 0 }
  0x32   : > { %s4208_s0 = sld [smem:[#allocation12_spill]] (!%p358_p0)  ;;  %s3130_s26 = scalar_lea.vmem (!%p358_p0), [#allocation8], %s2563_s18 }
  0x33   : > { %p406_p4 = pnand (!%p358_p0), %p405_p3, %p404_p2 }
  0x35   : > { %s3123_s19 = scalar_select %p399_p1, %s2966_s10, 3 }
  0x36   : > { %409 = sbr.rel (%p406_p4) target bundleno = 101 (0x65), region = 97 }
  0x38   : > { %s401_s25 = scalar_lea.vmem %s4208_s0, %s3123_s19 }
  0x3b   : > { %vm410_vm0 = vcmask 64512   ;;  %v2984_v9 = vmov 0.0   ;;  %vm451_vm1 = vcmask 57344  }
  0x3c   : > { %411 = vst.msk [vmem:[#allocation2] sm:$0xff] %vm410_vm0, %v2984_v9 }
  0x3d   : > { %412 = vst.msk [vmem:[#allocation2 + $0x8] sm:$0xff] %vm410_vm0, %v2984_v9 }
  0x3e   : > { %413 = vst.msk [vmem:[#allocation2 + $0x10] sm:$0xff] %vm410_vm0, %v2984_v9 }
  0x3f   : > { %414 = vst.msk [vmem:[#allocation2 + $0x18] sm:$0xff] %vm410_vm0, %v2984_v9 }
  0x40   : > { %415 = vst.msk [vmem:[#allocation2 + $0x20] sm:$0xff] %vm410_vm0, %v2984_v9 }
  0x41   : > { %416 = vst.msk [vmem:[#allocation2 + $0x28] sm:$0xff] %vm410_vm0, %v2984_v9 }
  0x42   : > { %417 = vst.msk [vmem:[#allocation2 + $0x30] sm:$0xff] %vm410_vm0, %v2984_v9 }
  0x43   : > { %418 = vst.msk [vmem:[#allocation2 + $0x38] sm:$0xff] %vm410_vm0, %v2984_v9 }
  0x44   : > { %419 = vst.msk [vmem:[#allocation2 + $0x40] sm:$0xff] %vm410_vm0, %v2984_v9 }
  0x45   : > { %420 = vst.msk [vmem:[#allocation2 + $0x48] sm:$0xff] %vm410_vm0, %v2984_v9 }
  0x46   : > { %421 = vst.msk [vmem:[#allocation2 + $0x50] sm:$0xff] %vm410_vm0, %v2984_v9 }
  0x47   : > { %422 = vst.msk [vmem:[#allocation2 + $0x58] sm:$0xff] %vm410_vm0, %v2984_v9 }
  0x48   : > { %423 = vst.msk [vmem:[#allocation2 + $0x60] sm:$0xff] %vm410_vm0, %v2984_v9 }
  0x49   : > { %424 = vst.msk [vmem:[#allocation2 + $0x68] sm:$0xff] %vm410_vm0, %v2984_v9 }
  0x4a   : > { %425 = vst.msk [vmem:[#allocation2 + $0x70] sm:$0xff] %vm410_vm0, %v2984_v9 }
  0x4b   : > { %426 = vst.msk [vmem:[#allocation2 + $0x78] sm:$0xff] %vm410_vm0, %v2984_v9 }
  0x4c   : > { %427 = vst.msk [vmem:[#allocation3] sm:$0xff] %vm410_vm0, %v2984_v9 }
  0x4d   : > { %428 = vst.msk [vmem:[#allocation3 + $0x8] sm:$0xff] %vm410_vm0, %v2984_v9 }
  0x4e   : > { %429 = vst.msk [vmem:[#allocation3 + $0x10] sm:$0xff] %vm410_vm0, %v2984_v9 }
  0x4f   : > { %430 = vst.msk [vmem:[#allocation3 + $0x18] sm:$0xff] %vm410_vm0, %v2984_v9 }
  0x50   : > { %431 = vst.msk [vmem:[#allocation3 + $0x20] sm:$0xff] %vm410_vm0, %v2984_v9 }
  0x51   : > { %432 = vst.msk [vmem:[#allocation3 + $0x28] sm:$0xff] %vm410_vm0, %v2984_v9 }
  0x52   : > { %433 = vst.msk [vmem:[#allocation3 + $0x30] sm:$0xff] %vm410_vm0, %v2984_v9 }
  0x53   : > { %434 = vst.msk [vmem:[#allocation3 + $0x38] sm:$0xff] %vm410_vm0, %v2984_v9 }
  0x54   : > { %435 = vst.msk [vmem:[#allocation3 + $0x40] sm:$0xff] %vm410_vm0, %v2984_v9 }
  0x55   : > { %436 = vst.msk [vmem:[#allocation3 + $0x48] sm:$0xff] %vm410_vm0, %v2984_v9 }
  0x56   : > { %437 = vst.msk [vmem:[#allocation3 + $0x50] sm:$0xff] %vm410_vm0, %v2984_v9 }
  0x57   : > { %438 = vst.msk [vmem:[#allocation3 + $0x58] sm:$0xff] %vm410_vm0, %v2984_v9 }
  0x58   : > { %439 = vst.msk [vmem:[#allocation3 + $0x60] sm:$0xff] %vm410_vm0, %v2984_v9 }
  0x59   : > { %440 = vst.msk [vmem:[#allocation3 + $0x68] sm:$0xff] %vm410_vm0, %v2984_v9 }
  0x5a   : > { %441 = vst.msk [vmem:[#allocation3 + $0x70] sm:$0xff] %vm410_vm0, %v2984_v9 }
  0x5b   : > { %442 = vst.msk [vmem:[#allocation3 + $0x78] sm:$0xff] %vm410_vm0, %v2984_v9 }
  0x5c   : > { %443 = vst.msk [vmem:[#allocation4] sm:$0xff] %vm410_vm0, %v2984_v9 }
  0x5d   : > { %444 = vst.msk [vmem:[#allocation4 + $0x8] sm:$0xff] %vm410_vm0, %v2984_v9 }
  0x5e   : > { %445 = vst.msk [vmem:[#allocation4 + $0x10] sm:$0xff] %vm410_vm0, %v2984_v9 }
  0x5f   : > { %446 = vst.msk [vmem:[#allocation4 + $0x18] sm:$0xff] %vm410_vm0, %v2984_v9 }
  0x60   : > { %447 = vst.msk [vmem:[#allocation5] sm:$0xff] %vm410_vm0, %v2984_v9 }
  0x61   : > { %448 = vst.msk [vmem:[#allocation5 + $0x8] sm:$0xff] %vm410_vm0, %v2984_v9 }
  0x62   : > { %449 = vst.msk [vmem:[#allocation5 + $0x10] sm:$0xff] %vm410_vm0, %v2984_v9 }
  0x63   : > { %450 = vst.msk [vmem:[#allocation5 + $0x18] sm:$0xff] %vm410_vm0, %v2984_v9 }
  0x64   : > { %452 = vst.msk [vmem:[#allocation6] sm:$0x1] %vm451_vm1, %v2984_v9 }
  0x65 PF: > { %v487_v10 = vld [vmem:[%s4197_s3 + $0x10] sm:$0xff]  ;;  %v485_v11 = vld [vmem:[%s4197_s3] sm:$0xff]  ;;  %v454_v12 = vlaneseq  ;;  %v2985_v13 = vmov 0   ;;  %v2986_v19 = vmov 0.0   ;;  %v488_v23 = vld [vmem:[%s4197_s3 + $0x18] sm:$0xff]  ;;  %vm645_vm3 = vcmask 523264  }
  0x66   : > { %2804 = vset.pattern.permute.xlu1 %v2985_v13  ;;  %2803 = vset.pattern.permute.xlu0 %v2985_v13  ;;  %v2806_v14 = vld [vmem:[%s401_s25] ss:$0 sm:$0xff]  ;;  %v2699_v17 = vld [vmem:[%s3130_s26 + $0x10] sm:$0xff]  ;;  %v486_v24 = vld [vmem:[%s4197_s3 + $0x8] sm:$0xff]  ;;  %p2621_p5 = scmp.ne.s32.totalorder %s2970_s11, 0 }
  0x67   : > { %v2700_v15 = vld [vmem:[%s3130_s26 + $0x18] sm:$0xff]  ;;  %513 = vperm.xlu1 %2804, %v487_v10   ;;  %503 = vperm.xlu0 %2803, %v485_v11   ;;  %v455_v16 = vshrl.u32 %v454_v12, 7  ;;  %v2698_v25 = vld [vmem:[%s3130_s26 + $0x8] sm:$0xff]  ;;  %v2697_v26 = vld [vmem:[%s3130_s26] sm:$0xff] }
  0x68   : > { %674 = vmatpush.bf16.msra.mxu0 %v2700_v15  ;;  %2705 = vmatpush.bf16.msra.mxu1 %v2700_v15  ;;  %v489_v21 = vld [vmem:[%s4197_s3 + $0x20] sm:$0xff]  ;;  %v490_v27 = vld [vmem:[%s4197_s3 + $0x28] sm:$0xff]  ;;  %v492_v28 = vld [vmem:[%s4197_s3 + $0x38] sm:$0xff] }
  0x69   : > { %vm3186_vm2 = vcmp.eq.s32.totalorder %v455_v16, %v2806_v14  ;;  %2706 = vmatpush.bf16.msra.mxu2 %v2700_v15  ;;  %2707 = vmatpush.bf16.msra.mxu3 %v2700_v15  ;;  %v491_v29 = vld [vmem:[%s4197_s3 + $0x30] sm:$0xff]  ;;  %v2689_v30 = vld [vmem:[%s4196_s2] sm:$0xff]  ;;  %v494_v36 = vld [vmem:[%s4197_s3 + $0x48] sm:$0xff] }
  0x6a   : > { %v2564_v20 = vsel %vm3186_vm2, 1.0, %v2986_v19  ;;  %2805 = vset.pattern.permute.xlu2 %v2985_v13  ;;  %v2691_v31 = vld [vmem:[%s4196_s2 + $0x10] sm:$0xff]  ;;  %v2693_v32 = vld [vmem:[%s4196_s2 + $0x20] sm:$0xff]  ;;  %v496_v37 = vld [vmem:[%s4197_s3 + $0x58] sm:$0xff] }
  0x6b   : > { %v3195_v22 = vpack.c.bf16 %v2564_v20, %v2564_v20  ;;  %523 = vperm.xlu2 %2805, %v489_v21   ;;  %v2695_v33 = vld [vmem:[%s4196_s2 + $0x30] sm:$0xff]  ;;  %v493_v34 = vld [vmem:[%s4197_s3 + $0x40] sm:$0xff]  ;;  %v498_v38 = vld [vmem:[%s4197_s3 + $0x68] sm:$0xff] }
  0x6c   : > { %675 = vmatpush.bf16.msra.mxu0 %v2699_v17  ;;  %2708 = vmatpush.bf16.msra.mxu1 %v2699_v17  ;;  %v495_v35 = vld [vmem:[%s4197_s3 + $0x50] sm:$0xff]  ;;  %v497_v39 = vld [vmem:[%s4197_s3 + $0x60] sm:$0xff]  ;;  %v2690_v40 = vld [vmem:[%s4196_s2 + $0x8] sm:$0xff] }
  0x6d   : > { %2709 = vmatpush.bf16.msra.mxu2 %v2699_v17  ;;  %2710 = vmatpush.bf16.msra.mxu3 %v2699_v17  ;;  %v2692_v41 = vld [vmem:[%s4196_s2 + $0x18] sm:$0xff]  ;;  %v2694_v42 = vld [vmem:[%s4196_s2 + $0x28] sm:$0xff]  ;;  %v499_v44 = vld [vmem:[%s4197_s3 + $0x70] sm:$0xff] }
  0x6e   : > { %v2696_v43 = vld [vmem:[%s4196_s2 + $0x38] sm:$0xff] }
  0x6f   : > { %518 = vperm.xlu1 %2804, %v488_v23   ;;  %508 = vperm.xlu0 %2803, %v486_v24   ;;  %v500_v45 = vld [vmem:[%s4197_s3 + $0x78] sm:$0xff] }
  0x70   : > { %676 = vmatpush.bf16.msra.mxu0 %v2698_v25  ;;  %2711 = vmatpush.bf16.msra.mxu1 %v2698_v25 }
  0x71   : > { %2712 = vmatpush.bf16.msra.mxu2 %v2698_v25  ;;  %2713 = vmatpush.bf16.msra.mxu3 %v2698_v25 }
  0x73   : > { %528 = vperm.xlu2 %2805, %v490_v27  }
  0x74   : > { %677 = vmatpush.bf16.msra.mxu0 %v2697_v26  ;;  %2714 = vmatpush.bf16.msra.mxu1 %v2697_v26 }
  0x75   : > { %2715 = vmatpush.bf16.msra.mxu2 %v2697_v26  ;;  %2716 = vmatpush.bf16.msra.mxu3 %v2697_v26 }
  0x77   : > { %538 = vperm.xlu1 %2804, %v492_v28   ;;  %533 = vperm.xlu0 %2803, %v491_v29  }
  0x78   : > { %2613 = vmatmul.msk.bf16.vlgmr.msra.gmra.mxu0 %vm645_vm3, %v2689_v30  ;;  %2615 = vmatmul.msk.bf16.vlgmr.msra.gmra.mxu1 %vm645_vm3, %v2691_v31 }
  0x79   : > { %2617 = vmatmul.msk.bf16.vlgmr.msra.gmra.mxu2 %vm645_vm3, %v2693_v32  ;;  %2619 = vmatmul.msk.bf16.vlgmr.msra.gmra.mxu3 %vm645_vm3, %v2695_v33 }
  0x7b   : > { %543 = vperm.xlu2 %2805, %v493_v34  }
  0x7f   : > { %553 = vperm.xlu1 %2804, %v495_v35   ;;  %548 = vperm.xlu0 %2803, %v494_v36  }
  0x83   : > { %558 = vperm.xlu2 %2805, %v496_v37  }
  0x87   : > { %568 = vperm.xlu1 %2804, %v498_v38   ;;  %563 = vperm.xlu0 %2803, %v497_v39  }
  0x88   : > { %2614 = vmatmul.msk.bf16.gmra.mxu0 %vm645_vm3, %v2690_v40  ;;  %2616 = vmatmul.msk.bf16.gmra.mxu1 %vm645_vm3, %v2692_v41 }
  0x89   : > { %2618 = vmatmul.msk.bf16.gmra.mxu2 %vm645_vm3, %v2694_v42  ;;  %2620 = vmatmul.msk.bf16.gmra.mxu3 %vm645_vm3, %v2696_v43 }
  0x8b   : > { %573 = vperm.xlu2 %2805, %v499_v44  }
  0x8f   : > { %578 = vperm.xlu0 %2803, %v500_v45  }
  0xc5   : > { %v524_v49 = vpop.permute.xlu2 %523 }
  0xcd   : > { %v529_v52 = vpop.permute.xlu2 %528 }
  0xd5   : > { %v544_v59 = vpop.permute.xlu2 %543 }
  0xd9   : > { %v504_v46 = vpop.permute.xlu0 %503  ;;  %v514_v47 = vpop.permute.xlu1 %513 }
  0xdd   : > { %v559_v6 = vpop.permute.xlu2 %558 }
  0xe1   : > { %v509_v48 = vpop.permute.xlu0 %508  ;;  %v519_v50 = vpop.permute.xlu1 %518 }
  0xe5   : > { %v574_v16 = vpop.permute.xlu2 %573 }
  0xe9   : > { %v534_v51 = vpop.permute.xlu0 %533  ;;  %v539_v53 = vpop.permute.xlu1 %538 }
  0xf1   : > { %v549_v54 = vpop.permute.xlu0 %548  ;;  %v554_v60 = vpop.permute.xlu1 %553 }
  0xf5   : > { %v679_v55 = vpop.f32.mrf.mxu0  ;;  %v689_v56 = vpop.f32.mrf.mxu1 }
  0xf6   : > { %v3270_v57 = vadd.f32 %v679_v55, %v504_v46  ;;  %v3272_v58 = vadd.f32 %v689_v56, %v524_v49 }
  0xf9   : > { %v564_v61 = vpop.permute.xlu0 %563  ;;  %v569_v7 = vpop.permute.xlu1 %568 }
  0xfc   : > { %v699_v62 = vpop.f32.mrf.mxu2  ;;  %v709_v63 = vpop.f32.mrf.mxu3 }
  0xfd   : > { %v3274_v0 = vadd.f32 %v699_v62, %v544_v59  ;;  %v3276_v1 = vadd.f32 %v709_v63, %v564_v61  ;;  %v681_v2 = vpop.f32.mrf.mxu0  ;;  %v691_v3 = vpop.f32.mrf.mxu1 }
  0xfe   : > { %v3278_v4 = vadd.f32 %v681_v2, %v509_v48  ;;  %v3280_v5 = vadd.f32 %v691_v3, %v529_v52 }
 0x101   : > { %v579_v27 = vpop.permute.xlu0 %578 }
 0x104   : > { %v701_v8 = vpop.f32.mrf.mxu2  ;;  %v711_v9 = vpop.f32.mrf.mxu3 }
 0x105   : > { %v3282_v10 = vadd.f32 %v701_v8, %v549_v54  ;;  %v3284_v11 = vadd.f32 %v711_v9, %v569_v7  ;;  %v684_v12 = vpop.f32.mrf.mxu0  ;;  %v694_v13 = vpop.f32.mrf.mxu1 }
 0x106   : > { %v3286_v14 = vadd.f32 %v684_v12, %v514_v47  ;;  %v3288_v15 = vadd.f32 %v694_v13, %v534_v51 }
 0x10c   : > { %v704_v17 = vpop.f32.mrf.mxu2  ;;  %v714_v19 = vpop.f32.mrf.mxu3 }
 0x10d   : > { %v3290_v20 = vadd.f32 %v704_v17, %v554_v60  ;;  %v3292_v21 = vadd.f32 %v714_v19, %v574_v16  ;;  %v686_v23 = vpop.f32.mrf.mxu0  ;;  %v696_v24 = vpop.f32.mrf.mxu1 }
 0x10e   : > { %v3294_v25 = vadd.f32 %v686_v23, %v519_v50  ;;  %v3296_v26 = vadd.f32 %v696_v24, %v539_v53 }
 0x111   : > { %721 = sbr.rel (%p2621_p5) target bundleno = 493 (0x1ed), region = 101 }
 0x114   : > { %v706_v28 = vpop.f32.mrf.mxu2  ;;  %v716_v29 = vpop.f32.mrf.mxu3 }
 0x115   : > { %v3298_v30 = vadd.f32 %v706_v28, %v559_v6  ;;  %v3300_v31 = vadd.f32 %v716_v29, %v579_v27 }
 0x116   : > { %vm2622_vm4 = vmpackc.low %vm3186_vm2, %vm3186_vm2  ;;  %v753_v32 = vmul.f32 %v3288_v15, %v3288_v15  ;;  %v754_v33 = vmul.f32 %v3296_v26, %v3296_v26  ;;  %v2987_v34 = vmov 1.0|1.0   ;;  %v739_v35 = vpack.c.bf16 %v3278_v4, %v3270_v57  ;;  %v771_v8 = vld [vmem:[#allocation2] sm:$0xff]  ;;  %v875_v19 = vld [vmem:[#allocation3 + $0x30] sm:$0xff] }
 0x117   : > { %2625 = vmatpush.bf16.xpose.msk.msra.mxu1 %vm2622_vm4, %v2987_v34  ;;  %2718 = vmatpush.bf16.xpose.msk.msra.mxu2 %vm2622_vm4, %v2987_v34  ;;  %v744_v37 = vpack.c.bf16 %v3298_v30, %v3290_v20  ;;  %v2988_v38 = vmov 1065369472   ;;  %v755_v39 = vmul.f32 %v3274_v0, %v3274_v0  ;;  %v756_v40 = vmul.f32 %v3282_v10, %v3282_v10  ;;  %v722_v9 = vld [vmem:[#allocation6] sm:$0x1]  ;;  %v781_v23 = vld [vmem:[#allocation2 + $0x50] sm:$0xff]  ;;  %v772_v27 = vld [vmem:[#allocation2 + $0x8] sm:$0xff] }
 0x118   : > { %2623 = vmatpush.bf16.xpose.msk.msra.mxu0 %vm2622_vm4, %v2987_v34  ;;  %2717 = vmatpush.bf16.xpose.msk.msra.mxu3 %vm2622_vm4, %v2987_v34  ;;  %v766_v36 = vpack.c.bf16 %v754_v33, %v753_v32  ;;  %v747_v41 = vmul.f32 %v3270_v57, %v3270_v57  ;;  %v748_v42 = vmul.f32 %v3278_v4, %v3278_v4  ;;  %vm852_vm5 = vcmask 64512  }
 0x119   : > { %v740_v43 = vpack.c.bf16 %v3294_v25, %v3286_v14  ;;  %v767_v44 = vpack.c.bf16 %v756_v40, %v755_v39  ;;  %v745_v46 = vpack.c.bf16 %v3284_v11, %v3276_v1  ;;  %v757_v47 = vmul.f32 %v3290_v20, %v3290_v20  ;;  %v773_v39 = vld [vmem:[#allocation2 + $0x10] sm:$0xff] }
 0x11a   : > { %v763_v45 = vpack.c.bf16 %v748_v42, %v747_v41  ;;  %v758_v48 = vmul.f32 %v3298_v30, %v3298_v30  ;;  %v749_v49 = vmul.f32 %v3286_v14, %v3286_v14  ;;  %v750_v50 = vmul.f32 %v3294_v25, %v3294_v25  ;;  %v869_v41 = vld [vmem:[#allocation3] sm:$0xff] }
 0x11b   : > { %v741_v51 = vpack.c.bf16 %v3280_v5, %v3272_v58  ;;  %v746_v54 = vpack.c.bf16 %v3300_v31, %v3292_v21  ;;  %v759_v55 = vmul.f32 %v3276_v1, %v3276_v1  ;;  %v760_v56 = vmul.f32 %v3284_v11, %v3284_v11 }
 0x11c   : > { %v768_v52 = vpack.c.bf16 %v758_v48, %v757_v47  ;;  %v764_v53 = vpack.c.bf16 %v750_v50, %v749_v49  ;;  %v751_v59 = vmul.f32 %v3272_v58, %v3272_v58  ;;  %v752_v60 = vmul.f32 %v3280_v5, %v3280_v5  ;;  %v877_v48 = vld [vmem:[#allocation3 + $0x40] sm:$0xff] }
 0x11d   : > { %v742_v61 = vpack.c.bf16 %v3296_v26, %v3288_v15  ;;  %v769_v62 = vpack.c.bf16 %v760_v56, %v759_v55  ;;  %v761_v2 = vmul.f32 %v3292_v21, %v3292_v21  ;;  %v762_v3 = vmul.f32 %v3300_v31, %v3300_v31  ;;  %v783_v49 = vld [vmem:[#allocation2 + $0x60] sm:$0xff] }
 0x11e   : > { %795 = vmatmul.bf16.vlgmr.msra.gmra.mxu1 %v739_v35  ;;  %908 = vmatmul.bf16.vlgmr.msra.gmra.mxu2 %v766_v36  ;;  %v765_v63 = vpack.c.bf16 %v752_v60, %v751_v59  ;;  %v743_v6 = vpack.c.bf16 %v3282_v10, %v3274_v0  ;;  %vm737_vm6 = vcmask 57344   ;;  %v876_v36 = vld [vmem:[#allocation3 + $0x38] sm:$0xff] }
 0x11f   : > { %731 = vmatmul.bf16.vlgmr.msra.gmra.mxu0 %v2988_v38  ;;  %820 = vmatmul.bf16.vlgmr.msra.gmra.mxu3 %v744_v37  ;;  %v770_v7 = vpack.c.bf16 %v762_v3, %v761_v2  ;;  %v782_v37 = vld [vmem:[#allocation2 + $0x58] sm:$0xff]  ;;  %v775_v3 = vld [vmem:[#allocation2 + $0x20] sm:$0xff] }
 0x120   : > { %2627 = vmatpush.bf16.xpose.msk.msrb.mxu0 %vm2622_vm4, %v2987_v34 }
 0x12e   : > { %800 = vmatmul.bf16.gmra.mxu1 %v740_v43  ;;  %913 = vmatmul.bf16.gmra.mxu2 %v767_v44 }
 0x12f   : > { %893 = vmatmul.bf16.vlgmr.msrb.gmra.mxu0 %v763_v45  ;;  %825 = vmatmul.bf16.gmra.mxu3 %v745_v46 }
 0x13e   : > { %805 = vmatmul.bf16.gmra.mxu1 %v741_v51  ;;  %918 = vmatmul.bf16.gmra.mxu2 %v768_v52  ;;  %v774_v51 = vld [vmem:[#allocation2 + $0x18] sm:$0xff] }
 0x13f   : > { %898 = vmatmul.bf16.gmra.mxu0 %v764_v53  ;;  %830 = vmatmul.bf16.gmra.mxu3 %v746_v54  ;;  %v870_v53 = vld [vmem:[#allocation3 + $0x8] sm:$0xff] }
 0x14e   : > { %810 = vmatmul.bf16.gmra.mxu1 %v742_v61  ;;  %923 = vmatmul.bf16.gmra.mxu2 %v769_v62  ;;  %v878_v62 = vld [vmem:[#allocation3 + $0x48] sm:$0xff] }
 0x14f   : > { %903 = vmatmul.bf16.gmra.mxu0 %v765_v63  ;;  %v784_v63 = vld [vmem:[#allocation2 + $0x68] sm:$0xff] }
 0x15e   : > { %815 = vmatmul.bf16.gmra.mxu1 %v743_v6  ;;  %928 = vmatmul.bf16.gmra.mxu2 %v770_v7  ;;  %v871_v7 = vld [vmem:[#allocation3 + $0x10] sm:$0xff] }
 0x19b   : > { %v796_v12 = vpop.f32.mrf.mxu1 }
 0x19c   : > { %v836_v13 = vadd.f32 %v796_v12, %v771_v8  ;;  %v732_v16 = vpop.f32.mrf.mxu0 }
 0x19d   : > { %v736_v17 = vadd.f32 %v732_v16, %v722_v9 }
 0x19e   : > { %853 = vst.msk [vmem:[#allocation2] sm:$0xff] %vm852_vm5, %v836_v13 }
 0x19f   : > { %738 = vst.msk [vmem:[#allocation6] sm:$0x1] %vm737_vm6, %v736_v17 }
 0x1a1   : > { %v909_v24 = vpop.f32.mrf.mxu2 }
 0x1a2   : > { %v940_v28 = vadd.f32 %v909_v24, %v875_v19  ;;  %v821_v29 = vpop.f32.mrf.mxu3  ;;  %v879_v19 = vld [vmem:[#allocation3 + $0x50] sm:$0xff] }
 0x1a3   : > { %v798_v32 = vpop.f32.mrf.mxu1  ;;  %v846_v33 = vadd.f32 %v821_v29, %v781_v23  ;;  %v785_v23 = vld [vmem:[#allocation2 + $0x70] sm:$0xff]  ;;  %v872_v29 = vld [vmem:[#allocation3 + $0x18] sm:$0xff] }
 0x1a4   : > { %956 = vst.msk [vmem:[#allocation3 + $0x30] sm:$0xff] %vm852_vm5, %v940_v28  ;;  %v837_v34 = vadd.f32 %v798_v32, %v772_v27  ;;  %v734_v35 = vpop.f32.mrf.mxu0  ;;  %v776_v27 = vld [vmem:[#allocation2 + $0x28] sm:$0xff] }
 0x1a5   : > { %863 = vst.msk [vmem:[#allocation2 + $0x50] sm:$0xff] %vm852_vm5, %v846_v33 }
 0x1a6   : > { %854 = vst.msk [vmem:[#allocation2 + $0x8] sm:$0xff] %vm852_vm5, %v837_v34 }
 0x1a9   : > { %v911_v38 = vpop.f32.mrf.mxu2 }
 0x1aa   : > { %v941_v40 = vadd.f32 %v911_v38, %v876_v36  ;;  %v823_v42 = vpop.f32.mrf.mxu3  ;;  %v880_v38 = vld [vmem:[#allocation3 + $0x58] sm:$0xff] }
 0x1ab   : > { %v801_v43 = vpop.f32.mrf.mxu1  ;;  %v847_v44 = vadd.f32 %v823_v42, %v782_v37 }
 0x1ac   : > { %957 = vst.msk [vmem:[#allocation3 + $0x38] sm:$0xff] %vm852_vm5, %v941_v40  ;;  %v838_v45 = vadd.f32 %v801_v43, %v773_v39  ;;  %v894_v46 = vpop.f32.mrf.mxu0  ;;  %v786_v39 = vld [vmem:[#allocation2 + $0x78] sm:$0xff]  ;;  %v873_v43 = vld [vmem:[#allocation3 + $0x20] sm:$0xff] }
 0x1ad   : > { %v934_v47 = vadd.f32 %v894_v46, %v869_v41  ;;  %864 = vst.msk [vmem:[#allocation2 + $0x58] sm:$0xff] %vm852_vm5, %v847_v44  ;;  %v777_v41 = vld [vmem:[#allocation2 + $0x30] sm:$0xff] }
 0x1ae   : > { %855 = vst.msk [vmem:[#allocation2 + $0x10] sm:$0xff] %vm852_vm5, %v838_v45 }
 0x1af   : > { %950 = vst.msk [vmem:[#allocation3] sm:$0xff] %vm852_vm5, %v934_v47 }
 0x1b1   : > { %v914_v50 = vpop.f32.mrf.mxu2 }
 0x1b2   : > { %v942_v52 = vadd.f32 %v914_v50, %v877_v48  ;;  %v826_v54 = vpop.f32.mrf.mxu3  ;;  %v881_v50 = vld [vmem:[#allocation3 + $0x60] sm:$0xff] }
 0x1b3   : > { %v803_v55 = vpop.f32.mrf.mxu1  ;;  %v848_v56 = vadd.f32 %v826_v54, %v783_v49  ;;  %v874_v54 = vld [vmem:[#allocation3 + $0x28] sm:$0xff] }
 0x1b4   : > { %958 = vst.msk [vmem:[#allocation3 + $0x40] sm:$0xff] %vm852_vm5, %v942_v52  ;;  %v839_v59 = vadd.f32 %v803_v55, %v774_v51  ;;  %v896_v60 = vpop.f32.mrf.mxu0  ;;  %v778_v52 = vld [vmem:[#allocation2 + $0x38] sm:$0xff] }
 0x1b5   : > { %v935_v61 = vadd.f32 %v896_v60, %v870_v53  ;;  %865 = vst.msk [vmem:[#allocation2 + $0x60] sm:$0xff] %vm852_vm5, %v848_v56 }
 0x1b6   : > { %856 = vst.msk [vmem:[#allocation2 + $0x18] sm:$0xff] %vm852_vm5, %v839_v59 }
 0x1b7   : > { %951 = vst.msk [vmem:[#allocation3 + $0x8] sm:$0xff] %vm852_vm5, %v935_v61  ;;  %v882_v61 = vld [vmem:[#allocation3 + $0x68] sm:$0xff] }
 0x1b9   : > { %v916_v2 = vpop.f32.mrf.mxu2 }
 0x1ba   : > { %v943_v6 = vadd.f32 %v916_v2, %v878_v62  ;;  %v828_v8 = vpop.f32.mrf.mxu3 }
 0x1bb   : > { %v806_v9 = vpop.f32.mrf.mxu1  ;;  %v849_v12 = vadd.f32 %v828_v8, %v784_v63  ;;  %v779_v63 = vld [vmem:[#allocation2 + $0x40] sm:$0xff] }
 0x1bc   : > { %959 = vst.msk [vmem:[#allocation3 + $0x48] sm:$0xff] %vm852_vm5, %v943_v6  ;;  %v840_v13 = vadd.f32 %v806_v9, %v775_v3  ;;  %v899_v16 = vpop.f32.mrf.mxu0  ;;  %v780_v9 = vld [vmem:[#allocation2 + $0x48] sm:$0xff] }
 0x1bd   : > { %v936_v17 = vadd.f32 %v899_v16, %v871_v7  ;;  %866 = vst.msk [vmem:[#allocation2 + $0x68] sm:$0xff] %vm852_vm5, %v849_v12  ;;  %v883_v7 = vld [vmem:[#allocation3 + $0x70] sm:$0xff] }
 0x1be   : > { %857 = vst.msk [vmem:[#allocation2 + $0x20] sm:$0xff] %vm852_vm5, %v840_v13 }
 0x1bf   : > { %952 = vst.msk [vmem:[#allocation3 + $0x10] sm:$0xff] %vm852_vm5, %v936_v17  ;;  %v884_v17 = vld [vmem:[#allocation3 + $0x78] sm:$0xff] }
 0x1c1   : > { %v919_v24 = vpop.f32.mrf.mxu2 }
 0x1c2   : > { %v944_v28 = vadd.f32 %v919_v24, %v879_v19  ;;  %v831_v32 = vpop.f32.mrf.mxu3 }
 0x1c3   : > { %v808_v33 = vpop.f32.mrf.mxu1  ;;  %v850_v34 = vadd.f32 %v831_v32, %v785_v23 }
 0x1c4   : > { %960 = vst.msk [vmem:[#allocation3 + $0x50] sm:$0xff] %vm852_vm5, %v944_v28  ;;  %v841_v35 = vadd.f32 %v808_v33, %v776_v27  ;;  %v901_v36 = vpop.f32.mrf.mxu0 }
 0x1c5   : > { %v937_v37 = vadd.f32 %v901_v36, %v872_v29  ;;  %867 = vst.msk [vmem:[#allocation2 + $0x70] sm:$0xff] %vm852_vm5, %v850_v34 }
 0x1c6   : > { %858 = vst.msk [vmem:[#allocation2 + $0x28] sm:$0xff] %vm852_vm5, %v841_v35 }
 0x1c7   : > { %953 = vst.msk [vmem:[#allocation3 + $0x18] sm:$0xff] %vm852_vm5, %v937_v37 }
 0x1c9   : > { %v921_v40 = vpop.f32.mrf.mxu2 }
 0x1ca   : > { %v945_v42 = vadd.f32 %v921_v40, %v880_v38  ;;  %v833_v44 = vpop.f32.mrf.mxu3 }
 0x1cb   : > { %v811_v45 = vpop.f32.mrf.mxu1  ;;  %v851_v46 = vadd.f32 %v833_v44, %v786_v39 }
 0x1cc   : > { %961 = vst.msk [vmem:[#allocation3 + $0x58] sm:$0xff] %vm852_vm5, %v945_v42  ;;  %v842_v47 = vadd.f32 %v811_v45, %v777_v41  ;;  %v904_v48 = vpop.f32.mrf.mxu0 }
 0x1cd   : > { %v938_v49 = vadd.f32 %v904_v48, %v873_v43  ;;  %868 = vst.msk [vmem:[#allocation2 + $0x78] sm:$0xff] %vm852_vm5, %v851_v46 }
 0x1ce   : > { %859 = vst.msk [vmem:[#allocation2 + $0x30] sm:$0xff] %vm852_vm5, %v842_v47 }
 0x1cf   : > { %954 = vst.msk [vmem:[#allocation3 + $0x20] sm:$0xff] %vm852_vm5, %v938_v49 }
 0x1d1   : > { %v924_v51 = vpop.f32.mrf.mxu2 }
 0x1d2   : > { %v946_v53 = vadd.f32 %v924_v51, %v881_v50 }
 0x1d3   : > { %v813_v55 = vpop.f32.mrf.mxu1 }
 0x1d4   : > { %962 = vst.msk [vmem:[#allocation3 + $0x60] sm:$0xff] %vm852_vm5, %v946_v53  ;;  %v843_v56 = vadd.f32 %v813_v55, %v778_v52  ;;  %v906_v59 = vpop.f32.mrf.mxu0 }
 0x1d5   : > { %v939_v60 = vadd.f32 %v906_v59, %v874_v54 }
 0x1d6   : > { %860 = vst.msk [vmem:[#allocation2 + $0x38] sm:$0xff] %vm852_vm5, %v843_v56 }
 0x1d7   : > { %955 = vst.msk [vmem:[#allocation3 + $0x28] sm:$0xff] %vm852_vm5, %v939_v60 }
 0x1d9   : > { %v926_v62 = vpop.f32.mrf.mxu2 }
 0x1da   : > { %v947_v2 = vadd.f32 %v926_v62, %v882_v61 }
 0x1db   : > { %v816_v3 = vpop.f32.mrf.mxu1 }
 0x1dc   : > { %963 = vst.msk [vmem:[#allocation3 + $0x68] sm:$0xff] %vm852_vm5, %v947_v2  ;;  %v844_v6 = vadd.f32 %v816_v3, %v779_v63 }
 0x1de   : > { %861 = vst.msk [vmem:[#allocation2 + $0x40] sm:$0xff] %vm852_vm5, %v844_v6 }
 0x1e1   : > { %v929_v8 = vpop.f32.mrf.mxu2 }
 0x1e2   : > { %v948_v12 = vadd.f32 %v929_v8, %v883_v7 }
 0x1e3   : > { %v818_v13 = vpop.f32.mrf.mxu1 }
 0x1e4   : > { %964 = vst.msk [vmem:[#allocation3 + $0x70] sm:$0xff] %vm852_vm5, %v948_v12  ;;  %v845_v16 = vadd.f32 %v818_v13, %v780_v9 }
 0x1e6   : > { %862 = vst.msk [vmem:[#allocation2 + $0x48] sm:$0xff] %vm852_vm5, %v845_v16 }
 0x1e9   : > { %v931_v19 = vpop.f32.mrf.mxu2 }
 0x1ea   : > { %v949_v23 = vadd.f32 %v931_v19, %v884_v17 }
 0x1ec   : > { %965 = vst.msk [vmem:[#allocation3 + $0x78] sm:$0xff] %vm852_vm5, %v949_v23 }
 0x1ed PF: > { %p2628_p6 = scmp.ne.s32.totalorder %s2970_s11, 1 }
 0x1ef   : > { %969 = sbr.rel (%p2628_p6) target bundleno = 1133 (0x46d), region = 105 }
 0x1f4   : > { %vm1343_vm7 = vcmask 1043456   ;;  %v970_v24 = vld [vmem:[#allocation6] sm:$0x1]  ;;  %v988_v41 = vld [vmem:[#allocation2 + $0x8] sm:$0xff]  ;;  %v989_v60 = vld [vmem:[#allocation2 + $0x10] sm:$0xff]  ;;  %vm1318_vm1 = vcmask 64512  }
 0x1f5   : > { %v1345_v27 = vsel %vm1343_vm7, %v3195_v22, 0  ;;  %v971_v28 = vmax.f32 %v970_v24, 1.0  ;;  %v987_v40 = vld [vmem:[#allocation2] sm:$0xff]  ;;  %v1023_v44 = vld [vmem:[#allocation3 + $0x8] sm:$0xff]  ;;  %v990_v61 = vld [vmem:[#allocation2 + $0x18] sm:$0xff] }
 0x1f6   : > { %1354 = vmatpush.bf16.msra.mxu0 %v1345_v27  ;;  %2719 = vmatpush.bf16.msra.mxu2 %v1345_v27  ;;  %v1022_v43 = vld [vmem:[#allocation3] sm:$0xff]  ;;  %v1000_v47 = vld [vmem:[#allocation2 + $0x68] sm:$0xff]  ;;  %v1024_v2 = vld [vmem:[#allocation3 + $0x10] sm:$0xff] }
 0x1f7   : > { %1435 = vmatpush.bf16.msra.mxu1 %v1345_v27  ;;  %2809 = vrcp.f32 %v971_v28  ;;  %v983_v33 = vand.u32 2147483648, %v971_v28  ;;  %vm977_vm8 = vweird.f32 %v971_v28  ;;  %v981_v35 = vand.u32 2147483647, %v971_v28  ;;  %v999_v45 = vld [vmem:[#allocation2 + $0x60] sm:$0xff]  ;;  %v1035_v49 = vld [vmem:[#allocation3 + $0x68] sm:$0xff]  ;;  %v1025_v3 = vld [vmem:[#allocation3 + $0x18] sm:$0xff] }
 0x1f8   : > { %v1034_v48 = vld [vmem:[#allocation3 + $0x60] sm:$0xff]  ;;  %v1001_v16 = vld [vmem:[#allocation2 + $0x70] sm:$0xff]  ;;  %v1002_v17 = vld [vmem:[#allocation2 + $0x78] sm:$0xff] }
 0x1f9   : > { %v984_v37 = vor.u32 1.1754944e-38, %v983_v33  ;;  %vm982_vm11 = vcmp.eq.f32.partialorder %v981_v35, 8.507059e+37 }
 0x1fa   : > { %2720 = vmatpush.bf16.msrb.mxu2 %v1345_v27 }
 0x1fd   : > { %v2810_v29 = vpop.eup %2809 }
 0x1fe   : > { %v973_v32 = vmul.f32 %v2810_v29, %v971_v28  ;;  %vm978_vm9 = vweird.f32 %v2810_v29 }
 0x1ff   : > { %vm979_vm10 = vmor %vm977_vm8, %vm978_vm9 }
 0x200   : > { %v974_v34 = vsub.f32 1.0, %v973_v32 }
 0x202   : > { %v975_v36 = vmul.f32 %v2810_v29, %v974_v34 }
 0x204   : > { %v976_v38 = vadd.f32 %v2810_v29, %v975_v36 }
 0x206   : > { %v980_v39 = vsel %vm979_vm10, %v2810_v29, %v976_v38  ;;  %v1036_v38 = vld [vmem:[#allocation3 + $0x70] sm:$0xff] }
 0x207   : > { %v985_v42 = vsel %vm982_vm11, %v984_v37, %v980_v39  ;;  %v1037_v39 = vld [vmem:[#allocation3 + $0x78] sm:$0xff] }
 0x208   : > { %v3388_v46 = vperm.slane %v985_v42, 0 }
 0x20a   : > { %v3391_v50 = vmul.f32 %v3388_v46, %v987_v40  ;;  %v3394_v51 = vmul.f32 %v3388_v46, %v988_v41  ;;  %v1038_v52 = vmul.f32 %v1022_v43, %v3388_v46  ;;  %v1039_v53 = vmul.f32 %v1023_v44, %v3388_v46 }
 0x20b   : > { %v3399_v54 = vmul.f32 %v3388_v46, %v999_v45  ;;  %v3402_v55 = vmul.f32 %v3388_v46, %v1000_v47  ;;  %v1050_v56 = vmul.f32 %v1034_v48, %v3388_v46  ;;  %v1051_v59 = vmul.f32 %v1035_v49, %v3388_v46 }
 0x20c   : > { %v1054_v62 = vmul.f32 %v3391_v50, %v3391_v50  ;;  %v1055_v63 = vmul.f32 %v3394_v51, %v3394_v51  ;;  %v3415_v12 = vmul.f32 %v3388_v46, %v989_v60  ;;  %v3418_v13 = vmul.f32 %v3388_v46, %v990_v61  ;;  %v991_v60 = vld [vmem:[#allocation2 + $0x20] sm:$0xff] }
 0x20d   : > { %v1066_v6 = vmul.f32 %v3399_v54, %v3399_v54  ;;  %v1067_v7 = vmul.f32 %v3402_v55, %v3402_v55  ;;  %v1040_v24 = vmul.f32 %v1024_v2, %v3388_v46  ;;  %v1041_v27 = vmul.f32 %v1025_v3, %v3388_v46  ;;  %v992_v2 = vld [vmem:[#allocation2 + $0x28] sm:$0xff] }
 0x20e   : > { %v1070_v8 = vsub.f32 %v1038_v52, %v1054_v62  ;;  %v1071_v9 = vsub.f32 %v1039_v53, %v1055_v63  ;;  %v1056_v32 = vmul.f32 %v3415_v12, %v3415_v12  ;;  %v1057_v33 = vmul.f32 %v3418_v13, %v3418_v13 }
 0x20f   : > { %v1082_v19 = vsub.f32 %v1050_v56, %v1066_v6  ;;  %v1083_v23 = vsub.f32 %v1051_v59, %v1067_v7  ;;  %v3427_v36 = vmul.f32 %v3388_v46, %v1001_v16  ;;  %v3430_v37 = vmul.f32 %v3388_v46, %v1002_v17 }
 0x210   : > { %v1086_v28 = vmax.f32 %v1070_v8, 0.0  ;;  %v1087_v29 = vmax.f32 %v1071_v9, 0.0  ;;  %v1072_v42 = vsub.f32 %v1040_v24, %v1056_v32  ;;  %v1073_v43 = vsub.f32 %v1041_v27, %v1057_v33  ;;  %v1026_v8 = vld [vmem:[#allocation3 + $0x20] sm:$0xff]  ;;  %v1027_v9 = vld [vmem:[#allocation3 + $0x28] sm:$0xff] }
 0x211   : > { %v1098_v34 = vmax.f32 %v1082_v19, 0.0  ;;  %v1099_v35 = vmax.f32 %v1083_v23, 0.0  ;;  %v1052_v48 = vmul.f32 %v1036_v38, %v3388_v46  ;;  %v1053_v49 = vmul.f32 %v1037_v39, %v3388_v46 }
 0x212   : > { %v3432_v40 = vadd.f32 1e-05, %v1086_v28  ;;  %v3434_v41 = vadd.f32 1e-05, %v1087_v29  ;;  %v1088_v47 = vmax.f32 %v1072_v42, 0.0  ;;  %v1089_v52 = vmax.f32 %v1073_v43, 0.0 }
 0x213   : > { %v3436_v44 = vadd.f32 1e-05, %v1098_v34  ;;  %v3438_v45 = vadd.f32 1e-05, %v1099_v35  ;;  %v1068_v56 = vmul.f32 %v3427_v36, %v3427_v36  ;;  %v1069_v59 = vmul.f32 %v3430_v37, %v3430_v37 }
 0x214   : > { %2811 = vrsqrt.f32 %v3432_v40  ;;  %v3445_v53 = vadd.f32 1e-05, %v1088_v47  ;;  %v3452_v61 = vadd.f32 1e-05, %v1089_v52  ;;  %v1278_v3 = vsub.f32 0.0, %v3391_v50 }
 0x215   : > { %2813 = vrsqrt.f32 %v3434_v41  ;;  %v1084_v62 = vsub.f32 %v1052_v48, %v1068_v56  ;;  %v1085_v63 = vsub.f32 %v1053_v49, %v1069_v59  ;;  %v1279_v6 = vsub.f32 0.0, %v3394_v51 }
 0x216   : > { %2815 = vrsqrt.f32 %v3436_v44  ;;  %v3459_v7 = vmul.f32 %v3388_v46, %v991_v60  ;;  %vm1124_vm12 = vweird.f32 %v3432_v40  ;;  %vm1134_vm13 = vweird.f32 %v3434_v41 }
 0x217   : > { %2817 = vrsqrt.f32 %v3438_v45  ;;  %v1100_v17 = vmax.f32 %v1084_v62, 0.0  ;;  %v1101_v19 = vmax.f32 %v1085_v63, 0.0  ;;  %vm1244_vm14 = vweird.f32 %v3436_v44 }
 0x218   : > { %2819 = vrsqrt.f32 %v3445_v53  ;;  %vm1254_vm15 = vweird.f32 %v3438_v45  ;;  %v3467_v27 = vmul.f32 %v3388_v46, %v992_v2  ;;  %v3473_v33 = vmul.f32 %v1026_v8, %v3388_v46 }
 0x219   : > { %2821 = vrsqrt.f32 %v3452_v61  ;;  %v3470_v32 = vadd.f32 1e-05, %v1100_v17  ;;  %v3476_v34 = vmul.f32 %v1027_v9, %v3388_v46  ;;  %v3481_v42 = vmul.f32 %v3459_v7, %v3459_v7 }
 0x21a   : > { %v2812_v16 = vpop.eup %2811  ;;  %vm1144_vm3 = vweird.f32 %v3445_v53  ;;  %v3487_v49 = vadd.f32 1e-05, %v1101_v19  ;;  %vm1154_vm5 = vweird.f32 %v3452_v61 }
 0x21b   : > { %v2814_v23 = vpop.eup %2813  ;;  %v1119_v24 = vmul.f32 %v2812_v16, %v3432_v40  ;;  %vm1125_vm0 = vweird.f32 %v2812_v16  ;;  %2823 = vrsqrt.f32 %v3470_v32  ;;  %v1059_v40 = vmul.f32 %v3467_v27, %v3467_v27 }
 0x21c   : > { %v2816_v28 = vpop.eup %2815  ;;  %v1129_v29 = vmul.f32 %v2814_v23, %v3434_v41  ;;  %vm1135_vm4 = vweird.f32 %v2814_v23  ;;  %vm3501_vm8 = vmor %vm1124_vm12, %vm1125_vm0  ;;  %2825 = vrsqrt.f32 %v3487_v49  ;;  %vm1264_vm0 = vweird.f32 %v3470_v32 }
 0x21d   : > { %v2818_v35 = vpop.eup %2817  ;;  %v1120_v38 = vmul.f32 %v2812_v16, %v1119_v24  ;;  %v1239_v39 = vmul.f32 %v2816_v28, %v3436_v44  ;;  %vm1245_vm6 = vweird.f32 %v2816_v28  ;;  %vm1136_vm9 = vmor %vm1134_vm13, %vm1135_vm4  ;;  %v1075_v50 = vsub.f32 %v3476_v34, %v1059_v40 }
 0x21e   : > { %v3483_v43 = vpop.eup %2819  ;;  %v1130_v47 = vmul.f32 %v2814_v23, %v1129_v29  ;;  %v1249_v48 = vmul.f32 %v2818_v35, %v3438_v45  ;;  %vm1255_vm7 = vweird.f32 %v2818_v35  ;;  %vm1246_vm10 = vmor %vm1244_vm14, %vm1245_vm6 }
 0x21f   : > { %v3490_v52 = vpop.eup %2821  ;;  %v1121_v56 = vmul.f32 0.5, %v1120_v38  ;;  %v1240_v59 = vmul.f32 %v2816_v28, %v1239_v39  ;;  %v1139_v60 = vmul.f32 %v3483_v43, %v3445_v53  ;;  %vm1145_vm11 = vweird.f32 %v3483_v43  ;;  %vm1256_vm12 = vmor %vm1254_vm15, %vm1255_vm7 }
 0x220   : > { %v1131_v62 = vmul.f32 0.5, %v1130_v47  ;;  %v1250_v63 = vmul.f32 %v2818_v35, %v1249_v48  ;;  %v1149_v2 = vmul.f32 %v3490_v52, %v3452_v61  ;;  %vm1155_vm13 = vweird.f32 %v3490_v52  ;;  %vm3546_vm14 = vmor %vm1144_vm3, %vm1145_vm11  ;;  %v993_v61 = vld [vmem:[#allocation2 + $0x30] sm:$0xff] }
 0x221   : > { %v1122_v8 = vsub.f32 1.5, %v1121_v56  ;;  %v1241_v9 = vmul.f32 0.5, %v1240_v59  ;;  %v1140_v17 = vmul.f32 %v3483_v43, %v1139_v60  ;;  %v3512_v56 = vpop.eup %2823  ;;  %vm3553_vm15 = vmor %vm1154_vm5, %vm1155_vm13  ;;  %vm1274_vm3 = vweird.f32 %v3487_v49 }
 0x222   : > { %v1132_v24 = vsub.f32 1.5, %v1131_v62  ;;  %v1251_v29 = vmul.f32 0.5, %v1250_v63  ;;  %v1150_v38 = vmul.f32 %v3490_v52, %v1149_v2  ;;  %v2826_v45 = vpop.eup %2825  ;;  %v1280_v53 = vsub.f32 0.0, %v3415_v12 }
 0x223   : > { %v1123_v39 = vmul.f32 %v2812_v16, %v1122_v8  ;;  %v1242_v47 = vsub.f32 1.5, %v1241_v9  ;;  %v1141_v48 = vmul.f32 0.5, %v1140_v17  ;;  %v1259_v8 = vmul.f32 %v3512_v56, %v3470_v32 }
 0x224   : > { %v1133_v59 = vmul.f32 %v2814_v23, %v1132_v24  ;;  %v1252_v60 = vsub.f32 1.5, %v1251_v29  ;;  %v1151_v62 = vmul.f32 0.5, %v1150_v38  ;;  %vm1265_vm4 = vweird.f32 %v3512_v56 }
 0x225   : > { %v1127_v41 = vsel %vm3501_vm8, %v2812_v16, %v1123_v39  ;;  %v1243_v63 = vmul.f32 %v2816_v28, %v1242_v47  ;;  %v1142_v2 = vsub.f32 1.5, %v1141_v48  ;;  %v1260_v39 = vmul.f32 %v3512_v56, %v1259_v8  ;;  %vm1266_vm6 = vmor %vm1264_vm0, %vm1265_vm4 }
 0x226   : > { %v1137_v9 = vsel %vm1136_vm9, %v2814_v23, %v1133_v59  ;;  %v1253_v17 = vmul.f32 %v2818_v35, %v1252_v60  ;;  %v1294_v44 = vmul.f32 %v1278_v3, %v1127_v41  ;;  %v1152_v24 = vsub.f32 1.5, %v1151_v62  ;;  %v994_v62 = vld [vmem:[#allocation2 + $0x38] sm:$0xff] }
 0x227   : > { %v1310_v29 = vpack.c.bf16 %v1137_v9, %v1127_v41  ;;  %v3527_v38 = vsel %vm1246_vm10, %v2816_v28, %v1243_v63  ;;  %v1295_v16 = vmul.f32 %v1279_v6, %v1137_v9  ;;  %v1074_v23 = vsub.f32 %v3473_v33, %v3481_v42  ;;  %v1028_v41 = vld [vmem:[#allocation3 + $0x30] sm:$0xff]  ;;  %v1029_v63 = vld [vmem:[#allocation3 + $0x38] sm:$0xff] }
 0x228   : > { %v3532_v19 = vsel %vm1256_vm12, %v2818_v35, %v1253_v17  ;;  %v1143_v51 = vmul.f32 %v3483_v43, %v1142_v2  ;;  %v1153_v33 = vmul.f32 %v3490_v52, %v1152_v24  ;;  %v1261_v35 = vmul.f32 0.5, %v1260_v39  ;;  %v1030_v39 = vld [vmem:[#allocation3 + $0x40] sm:$0xff] }
 0x229   : > { %2629 = vmatmul.msk.bf16.vlgmr.msra.gmra.mxu0 %vm1318_vm1, %v1310_v29  ;;  %v1316_v3 = vpack.c.bf16 %v3532_v19, %v3527_v38  ;;  %v1396_v28 = vpack.c.bf16 %v1295_v16, %v1294_v44  ;;  %v1269_v42 = vmul.f32 %v2826_v45, %v3487_v49  ;;  %v1281_v47 = vsub.f32 0.0, %v3418_v13  ;;  %v995_v29 = vld [vmem:[#allocation2 + $0x40] sm:$0xff]  ;;  %v996_v16 = vld [vmem:[#allocation2 + $0x48] sm:$0xff] }
 0x22a   : > { %v1262_v48 = vsub.f32 1.5, %v1261_v35  ;;  %v1090_v59 = vmax.f32 %v1074_v23, 0.0  ;;  %v1091_v60 = vmax.f32 %v1075_v50, 0.0  ;;  %v1147_v2 = vsel %vm3546_vm14, %v3483_v43, %v1143_v51 }
 0x22b   : > { %2635 = vmatmul.msk.bf16.vlgmr.msra.gmra.mxu2 %vm1318_vm1, %v1316_v3  ;;  %2637 = vmatmul.msk.bf16.vlgmr.msra.gmra.mxu1 %vm1318_vm1, %v1396_v28  ;;  %v1270_v40 = vmul.f32 %v2826_v45, %v1269_v42  ;;  %v1157_v8 = vsel %vm3553_vm15, %v3490_v52, %v1153_v33  ;;  %vm1275_vm5 = vweird.f32 %v2826_v45  ;;  %v3577_v44 = vmul.f32 %v3388_v46, %v993_v61  ;;  %v1031_v3 = vld [vmem:[#allocation3 + $0x48] sm:$0xff] }
 0x22c   : > { %v1263_v12 = vmul.f32 %v3512_v56, %v1262_v48  ;;  %v3572_v9 = vadd.f32 1e-05, %v1090_v59  ;;  %v3574_v17 = vadd.f32 1e-05, %v1091_v60  ;;  %v3580_v24 = vmul.f32 %v3388_v46, %v994_v62  ;;  %vm1276_vm7 = vmor %vm1274_vm3, %vm1275_vm5 }
 0x22d   : > { %v1271_v13 = vmul.f32 0.5, %v1270_v40  ;;  %v1044_v43 = vmul.f32 %v1028_v41, %v3388_v46  ;;  %v1045_v52 = vmul.f32 %v1029_v63, %v3388_v46  ;;  %v1296_v50 = vmul.f32 %v1280_v53, %v1147_v2 }
 0x22e   : > { %2827 = vrsqrt.f32 %v3572_v9  ;;  %v1297_v28 = vmul.f32 %v1281_v47, %v1157_v8  ;;  %v1060_v51 = vmul.f32 %v3577_v44, %v3577_v44  ;;  %v1061_v6 = vmul.f32 %v3580_v24, %v3580_v24 }
 0x22f   : > { %v1272_v23 = vsub.f32 1.5, %v1271_v13  ;;  %2829 = vrsqrt.f32 %v3574_v17  ;;  %v3596_v33 = vmul.f32 %v3388_v46, %v995_v29  ;;  %v3599_v34 = vmul.f32 %v3388_v46, %v996_v16 }
 0x230   : > { %v1046_v35 = vmul.f32 %v1030_v39, %v3388_v46  ;;  %v3603_v49 = vsel %vm1266_vm6, %v3512_v56, %v1263_v12  ;;  %v1076_v42 = vsub.f32 %v1044_v43, %v1060_v51  ;;  %v1077_v53 = vsub.f32 %v1045_v52, %v1061_v6 }
 0x231   : > { %v1273_v32 = vmul.f32 %v2826_v45, %v1272_v23  ;;  %v1047_v47 = vmul.f32 %v1031_v3, %v3388_v46  ;;  %v1062_v48 = vmul.f32 %v3596_v33, %v3596_v33  ;;  %v1063_v40 = vmul.f32 %v3599_v34, %v3599_v34 }
 0x232   : > { %v1311_v59 = vpack.c.bf16 %v1157_v8, %v1147_v2  ;;  %v1092_v60 = vmax.f32 %v1076_v42, 0.0  ;;  %v1093_v62 = vmax.f32 %v1077_v53, 0.0  ;;  %v1397_v63 = vpack.c.bf16 %v1297_v28, %v1296_v50  ;;  %v998_v42 = vld [vmem:[#allocation2 + $0x58] sm:$0xff] }
 0x233   : > { %v3606_v61 = vsel %vm1276_vm7, %v2826_v45, %v1273_v32  ;;  %v1078_v12 = vsub.f32 %v1046_v35, %v1062_v48  ;;  %v1079_v29 = vsub.f32 %v1047_v47, %v1063_v40  ;;  %v1290_v8 = vsub.f32 0.0, %v3399_v54  ;;  %v997_v54 = vld [vmem:[#allocation2 + $0x50] sm:$0xff] }
 0x234   : > { %v2828_v41 = vpop.eup %2827  ;;  %v1317_v56 = vpack.c.bf16 %v3606_v61, %v3603_v49  ;;  %v3615_v45 = vadd.f32 1e-05, %v1092_v60  ;;  %v3617_v52 = vadd.f32 1e-05, %v1093_v62  ;;  %vm1164_vm8 = vweird.f32 %v3572_v9  ;;  %v1032_v62 = vld [vmem:[#allocation3 + $0x50] sm:$0xff] }
 0x235   : > { %v2830_v13 = vpop.eup %2829  ;;  %v1159_v43 = vmul.f32 %v2828_v41, %v3572_v9  ;;  %vm1165_vm9 = vweird.f32 %v2828_v41  ;;  %v1094_v50 = vmax.f32 %v1078_v12, 0.0  ;;  %v1095_v3 = vmax.f32 %v1079_v29, 0.0 }
 0x236   : > { %v1169_v16 = vmul.f32 %v2830_v13, %v3574_v17  ;;  %2831 = vrsqrt.f32 %v3615_v45  ;;  %v1291_v28 = vsub.f32 0.0, %v3402_v55  ;;  %vm1174_vm10 = vweird.f32 %v3574_v17  ;;  %vm3635_vm12 = vmor %vm1164_vm8, %vm1165_vm9 }
 0x237   : > { %v1160_v2 = vmul.f32 %v2828_v41, %v1159_v43  ;;  %2833 = vrsqrt.f32 %v3617_v52  ;;  %vm1175_vm11 = vweird.f32 %v2830_v13  ;;  %v3629_v32 = vadd.f32 1e-05, %v1094_v50 }
 0x238   : > { %v1170_v39 = vmul.f32 %v2830_v13, %v1169_v16  ;;  %v3631_v35 = vadd.f32 1e-05, %v1095_v3  ;;  %v1282_v55 = vsub.f32 0.0, %v3459_v7  ;;  %v1306_v17 = vmul.f32 %v1290_v8, %v3527_v38  ;;  %vm1176_vm13 = vmor %vm1174_vm10, %vm1175_vm11  ;;  %v1033_v7 = vld [vmem:[#allocation3 + $0x58] sm:$0xff] }
 0x239   : > { %2630 = vmatmul.msk.bf16.gmra.mxu0 %vm1318_vm1, %v1311_v59  ;;  %v1161_v23 = vmul.f32 0.5, %v1160_v2  ;;  %v1283_v59 = vsub.f32 0.0, %v3467_v27  ;;  %v3643_v60 = vmul.f32 %v3388_v46, %v997_v54  ;;  %2835 = vrsqrt.f32 %v3629_v32 }
 0x23a   : > { %v1171_v51 = vmul.f32 0.5, %v1170_v39  ;;  %v3648_v12 = vmul.f32 %v3388_v46, %v998_v42  ;;  %v1307_v38 = vmul.f32 %v1291_v28, %v3532_v19  ;;  %2837 = vrsqrt.f32 %v3631_v35 }
 0x23b   : > { %2636 = vmatmul.msk.bf16.gmra.mxu2 %vm1318_vm1, %v1317_v56  ;;  %2638 = vmatmul.msk.bf16.gmra.mxu1 %vm1318_vm1, %v1397_v63  ;;  %v1162_v6 = vsub.f32 1.5, %v1161_v23  ;;  %v1048_v8 = vmul.f32 %v1032_v62, %v3388_v46  ;;  %v1049_v50 = vmul.f32 %v1033_v7, %v3388_v46  ;;  %v1064_v3 = vmul.f32 %v3643_v60, %v3643_v60 }
 0x23c   : > { %v1172_v47 = vsub.f32 1.5, %v1171_v51  ;;  %v2832_v48 = vpop.eup %2831  ;;  %v1402_v42 = vpack.c.bf16 %v1307_v38, %v1306_v17  ;;  %vm1184_vm14 = vweird.f32 %v3615_v45  ;;  %vm1194_vm0 = vweird.f32 %v3617_v52 }
 0x23d   : > { %v1163_v40 = vmul.f32 %v2828_v41, %v1162_v6  ;;  %v2834_v56 = vpop.eup %2833  ;;  %v1179_v63 = vmul.f32 %v2832_v48, %v3615_v45  ;;  %vm1185_vm15 = vweird.f32 %v2832_v48  ;;  %v1292_v45 = vsub.f32 0.0, %v3427_v36 }
 0x23e   : > { %v1173_v9 = vmul.f32 %v2830_v13, %v1172_v47  ;;  %v1189_v27 = vmul.f32 %v2834_v56, %v3617_v52  ;;  %vm1195_vm3 = vweird.f32 %v2834_v56  ;;  %vm1186_vm4 = vmor %vm1184_vm14, %vm1185_vm15  ;;  %v1293_v7 = vsub.f32 0.0, %v3430_v37 }
 0x23f   : > { %v1167_v43 = vsel %vm3635_vm12, %v2828_v41, %v1163_v40  ;;  %v1180_v2 = vmul.f32 %v2832_v48, %v1179_v63  ;;  %v1065_v41 = vmul.f32 %v3648_v12, %v3648_v12  ;;  %v3661_v54 = vpop.eup %2835  ;;  %vm1196_vm5 = vmor %vm1194_vm0, %vm1195_vm3  ;;  %v1284_v38 = vsub.f32 0.0, %v3577_v44 }
 0x240   : > { %v1177_v29 = vsel %vm1176_vm13, %v2830_v13, %v1173_v9  ;;  %v1298_v16 = vmul.f32 %v1282_v55, %v1167_v43  ;;  %v1190_v23 = vmul.f32 %v2834_v56, %v1189_v27  ;;  %v1080_v13 = vsub.f32 %v1048_v8, %v1064_v3  ;;  %v3663_v6 = vpop.eup %2837 }
 0x241   : > { %v1299_v39 = vmul.f32 %v1283_v59, %v1177_v29  ;;  %v1181_v19 = vmul.f32 0.5, %v1180_v2  ;;  %v1312_v28 = vpack.c.bf16 %v1177_v29, %v1167_v43  ;;  %v1081_v47 = vsub.f32 %v1049_v50, %v1065_v41 }
 0x242   : > { %v1191_v51 = vmul.f32 0.5, %v1190_v23  ;;  %v1096_v46 = vmax.f32 %v1080_v13, 0.0  ;;  %v1199_v9 = vmul.f32 %v3661_v54, %v3629_v32  ;;  %v1209_v63 = vmul.f32 %v3663_v6, %v3631_v35 }
 0x243   : > { %v1398_v53 = vpack.c.bf16 %v1299_v39, %v1298_v16  ;;  %v1182_v55 = vsub.f32 1.5, %v1181_v19  ;;  %v1097_v59 = vmax.f32 %v1081_v47, 0.0  ;;  %v1285_v43 = vsub.f32 0.0, %v3580_v24 }
 0x244   : > { %v1192_v40 = vsub.f32 1.5, %v1191_v51  ;;  %v1112_v52 = vadd.f32 1e-05, %v1096_v46  ;;  %v1200_v2 = vmul.f32 %v3661_v54, %v1199_v9  ;;  %v1210_v8 = vmul.f32 %v3663_v6, %v1209_v63 }
 0x245   : > { %v1183_v62 = vmul.f32 %v2832_v48, %v1182_v55  ;;  %v1113_v27 = vadd.f32 1e-05, %v1097_v59  ;;  %v1308_v39 = vmul.f32 %v1292_v45, %v3603_v49  ;;  %v1309_v23 = vmul.f32 %v1293_v7, %v3606_v61 }
 0x246   : > { %v1193_v17 = vmul.f32 %v2834_v56, %v1192_v40  ;;  %2839 = vrsqrt.f32 %v1112_v52  ;;  %v1201_v37 = vmul.f32 0.5, %v1200_v2  ;;  %v1211_v3 = vmul.f32 0.5, %v1210_v8 }
 0x247   : > { %v1187_v29 = vsel %vm1186_vm4, %v2832_v48, %v1183_v62  ;;  %2841 = vrsqrt.f32 %v1113_v27  ;;  %v1403_v19 = vpack.c.bf16 %v1309_v23, %v1308_v39  ;;  %vm1204_vm6 = vweird.f32 %v3629_v32  ;;  %vm2653_vm4 = vmpackc.low %vm3186_vm2, %vm3186_vm2 }
 0x248   : > { %v1197_v16 = vsel %vm1196_vm5, %v2834_v56, %v1193_v17  ;;  %v1300_v36 = vmul.f32 %v1284_v38, %v1187_v29  ;;  %v1202_v48 = vsub.f32 1.5, %v1201_v37  ;;  %v1212_v56 = vsub.f32 1.5, %v1211_v3 }
 0x249   : > { %2631 = vmatmul.msk.bf16.gmra.mxu0 %vm1318_vm1, %v1312_v28  ;;  %v1301_v50 = vmul.f32 %v1285_v43, %v1197_v16  ;;  %v1313_v44 = vpack.c.bf16 %v1197_v16, %v1187_v29  ;;  %vm1205_vm7 = vweird.f32 %v3661_v54  ;;  %vm1214_vm8 = vweird.f32 %v3631_v35 }
 0x24a   : > { %vm1215_vm9 = vweird.f32 %v3663_v6  ;;  %v1203_v49 = vmul.f32 %v3661_v54, %v1202_v48  ;;  %vm1206_vm10 = vmor %vm1204_vm6, %vm1205_vm7  ;;  %v1213_v61 = vmul.f32 %v3663_v6, %v1212_v56  ;;  %v1286_v32 = vsub.f32 0.0, %v3596_v33 }
 0x24b   : > { %2643 = vmatmul.msk.bf16.vlgmr.msrb.gmra.mxu2 %vm1318_vm1, %v1402_v42  ;;  %2639 = vmatmul.msk.bf16.gmra.mxu1 %vm1318_vm1, %v1398_v53  ;;  %v1399_v24 = vpack.c.bf16 %v1301_v50, %v1300_v36  ;;  %vm1216_vm11 = vmor %vm1214_vm8, %vm1215_vm9  ;;  %v1287_v42 = vsub.f32 0.0, %v3599_v34  ;;  %vm1224_vm12 = vweird.f32 %v1112_v52  ;;  %vm1234_vm14 = vweird.f32 %v1113_v27 }
 0x24c   : > { %v2840_v41 = vpop.eup %2839  ;;  %v1207_v35 = vsel %vm1206_vm10, %v3661_v54, %v1203_v49  ;;  %v1217_v53 = vsel %vm1216_vm11, %v3663_v6, %v1213_v61  ;;  %v1288_v54 = vsub.f32 0.0, %v3643_v60  ;;  %v1289_v6 = vsub.f32 0.0, %v3648_v12 }
 0x24d   : > { %v2842_v28 = vpop.eup %2841  ;;  %v1219_v51 = vmul.f32 %v2840_v41, %v1112_v52  ;;  %v1302_v40 = vmul.f32 %v1286_v32, %v1207_v35  ;;  %v1303_v46 = vmul.f32 %v1287_v42, %v1217_v53  ;;  %v1314_v17 = vpack.c.bf16 %v1217_v53, %v1207_v35 }
 0x24e   : > { %v1229_v13 = vmul.f32 %v2842_v28, %v1113_v27  ;;  %vm1225_vm13 = vweird.f32 %v2840_v41  ;;  %vm1235_vm15 = vweird.f32 %v2842_v28 }
 0x24f   : > { %v1220_v47 = vmul.f32 %v2840_v41, %v1219_v51  ;;  %v1400_v9 = vpack.c.bf16 %v1303_v46, %v1302_v40  ;;  %vm1226_vm0 = vmor %vm1224_vm12, %vm1225_vm13 }
 0x250   : > { %v1230_v55 = vmul.f32 %v2842_v28, %v1229_v13  ;;  %vm1236_vm3 = vmor %vm1234_vm14, %vm1235_vm15 }
 0x251   : > { %v1221_v59 = vmul.f32 0.5, %v1220_v47 }
 0x252   : > { %v1231_v62 = vmul.f32 0.5, %v1230_v55 }
 0x253   : > { %v1222_v63 = vsub.f32 1.5, %v1221_v59 }
 0x254   : > { %v1232_v45 = vsub.f32 1.5, %v1231_v62 }
 0x255   : > { %v1223_v33 = vmul.f32 %v2840_v41, %v1222_v63 }
 0x256   : > { %v1233_v34 = vmul.f32 %v2842_v28, %v1232_v45 }
 0x257   : > { %v1227_v7 = vsel %vm1226_vm0, %v2840_v41, %v1223_v33 }
 0x258   : > { %v1237_v38 = vsel %vm1236_vm3, %v2842_v28, %v1233_v34  ;;  %v1304_v43 = vmul.f32 %v1288_v54, %v1227_v7 }
 0x259   : > { %2632 = vmatmul.msk.bf16.gmra.mxu0 %vm1318_vm1, %v1313_v44  ;;  %v1305_v29 = vmul.f32 %v1289_v6, %v1237_v38  ;;  %v1315_v16 = vpack.c.bf16 %v1237_v38, %v1227_v7 }
 0x25b   : > { %2644 = vmatmul.msk.bf16.gmra.mxu2 %vm1318_vm1, %v1403_v19  ;;  %2640 = vmatmul.msk.bf16.gmra.mxu1 %vm1318_vm1, %v1399_v24  ;;  %v1401_v2 = vpack.c.bf16 %v1305_v29, %v1304_v43 }
 0x269   : > { %2633 = vmatmul.msk.bf16.gmra.mxu0 %vm1318_vm1, %v1314_v17 }
 0x26b   : > { %2641 = vmatmul.msk.bf16.gmra.mxu1 %vm1318_vm1, %v1400_v9 }
 0x279   : > { %2634 = vmatmul.msk.bf16.gmra.mxu0 %vm1318_vm1, %v1315_v16 }
 0x27b   : > { %2642 = vmatmul.msk.bf16.gmra.mxu1 %vm1318_vm1, %v1401_v2 }
 0x2a6   : > { %v1356_v52 = vpop.f32.mrf.mxu0 }
 0x2a7   : > { %v1477_v27 = vmul.f32 %v1356_v52, %v3270_v57 }
 0x2a8   : > { %v1437_v8 = vpop.f32.mrf.mxu1 }
 0x2a9   : > { %v1493_v39 = vadd.f32 %v1477_v27, %v1437_v8 }
 0x2ab   : > { %v1509_v37 = vmax.f32 %v1493_v39, 0.0 }
 0x2ae   : > { %v1386_v23 = vpop.f32.mrf.mxu2  ;;  %v1358_v36 = vpop.f32.mrf.mxu0 }
 0x2af   : > { %v1478_v60 = vmul.f32 %v1358_v36, %v3278_v4  ;;  %v1489_v2 = vmul.f32 %v1386_v23, %v3276_v1 }
 0x2b0   : > { %v1439_v12 = vpop.f32.mrf.mxu1 }
 0x2b1   : > { %v1494_v50 = vadd.f32 %v1478_v60, %v1439_v12 }
 0x2b3   : > { %v1510_v3 = vmax.f32 %v1494_v50, 0.0 }
 0x2b5   : > { %v3703_v44 = vpack.c.bf16 %v1510_v3, %v1509_v37 }
 0x2b6   : > { %v1388_v19 = vpop.f32.mrf.mxu2  ;;  %v1361_v24 = vpop.f32.mrf.mxu0 }
 0x2b7   : > { %v1479_v41 = vmul.f32 %v1361_v24, %v3286_v14  ;;  %v1490_v7 = vmul.f32 %v1388_v19, %v3284_v11 }
 0x2b8   : > { %v1442_v48 = vpop.f32.mrf.mxu1 }
 0x2b9   : > { %v1495_v56 = vadd.f32 %v1479_v41, %v1442_v48 }
 0x2bb   : > { %v1511_v32 = vmax.f32 %v1495_v56, 0.0 }
 0x2be   : > { %v1391_v28 = vpop.f32.mrf.mxu2  ;;  %v1363_v49 = vpop.f32.mrf.mxu0 }
 0x2bf   : > { %v1480_v61 = vmul.f32 %v1363_v49, %v3294_v25  ;;  %v1491_v6 = vmul.f32 %v1391_v28, %v3292_v21  ;;  %v1537_v49 = vld [vmem:[%s4199_s5] sm:$0xff] }
 0x2c0   : > { %v1444_v51 = vpop.f32.mrf.mxu1 }
 0x2c1   : > { %v1496_v13 = vadd.f32 %v1480_v61, %v1444_v51 }
 0x2c3   : > { %v1512_v42 = vmax.f32 %v1496_v13, 0.0 }
 0x2c5   : > { %v3707_v35 = vpack.c.bf16 %v1512_v42, %v1511_v32  ;;  %v2989_v32 = vmov 0  }
 0x2c6   : > { %v1393_v53 = vpop.f32.mrf.mxu2  ;;  %v1366_v47 = vpop.f32.mrf.mxu0  ;;  %2807 = vset.pattern.permute.xlu0 %v2989_v32  ;;  %2808 = vset.pattern.permute.xlu1 %v2989_v32 }
 0x2c7   : > { %v1481_v55 = vmul.f32 %v1366_v47, %v3272_v58  ;;  %v1492_v38 = vmul.f32 %v1393_v53, %v3300_v31  ;;  %1543 = vperm.xlu0 %2807, %v1537_v49  }
 0x2c8   : > { %v1447_v40 = vpop.f32.mrf.mxu1 }
 0x2c9   : > { %v3710_v46 = vadd.f32 %v1481_v55, %v1447_v40 }
 0x2ce   : > { %v1467_v59 = vpop.f32.mrf.mxu2  ;;  %v1368_v62 = vpop.f32.mrf.mxu0 }
 0x2cf   : > { %v1505_v39 = vadd.f32 %v1489_v2, %v1467_v59 }
 0x2d0   : > { %v1449_v17 = vpop.f32.mrf.mxu1 }
 0x2d1   : > { %v1521_v37 = vmax.f32 %v1505_v39, 0.0 }
 0x2d6   : > { %v1469_v9 = vpop.f32.mrf.mxu2  ;;  %v1371_v63 = vpop.f32.mrf.mxu0 }
 0x2d7   : > { %v1506_v52 = vadd.f32 %v1490_v7, %v1469_v9  ;;  %v1483_v40 = vmul.f32 %v1371_v63, %v3288_v15  ;;  %v1538_v63 = vld [vmem:[%s4199_s5 + $0x8] sm:$0xff] }
 0x2d8   : > { %v1452_v45 = vpop.f32.mrf.mxu1  ;;  %1548 = vperm.xlu0 %2807, %v1538_v63  }
 0x2d9   : > { %v1522_v12 = vmax.f32 %v1506_v52, 0.0 }
 0x2db   : > { %v1535_v24 = vpack.c.bf16 %v1522_v12, %v1521_v37 }
 0x2de   : > { %v1472_v33 = vpop.f32.mrf.mxu2  ;;  %v1373_v34 = vpop.f32.mrf.mxu0 }
 0x2df   : > { %v1507_v43 = vadd.f32 %v1491_v6, %v1472_v33  ;;  %v1484_v53 = vmul.f32 %v1373_v34, %v3296_v26  ;;  %v1482_v6 = vmul.f32 %v1368_v62, %v3280_v5  ;;  %v1539_v62 = vld [vmem:[%s4199_s5 + $0x10] sm:$0xff] }
 0x2e0   : > { %v1454_v54 = vpop.f32.mrf.mxu1  ;;  %1553 = vperm.xlu1 %2808, %v1539_v62  }
 0x2e1   : > { %v1523_v36 = vmax.f32 %v1507_v43, 0.0  ;;  %v1500_v7 = vadd.f32 %v1484_v53, %v1454_v54  ;;  %v1498_v2 = vadd.f32 %v1482_v6, %v1449_v17  ;;  %v1513_v54 = vmax.f32 %v3710_v46, 0.0  ;;  %v2702_v46 = vld [vmem:[%s4198_s4 + $0x8] sm:$0xff]  ;;  %v1600_v53 = vld [vmem:[#allocation4] sm:$0xff] }
 0x2e3   : > { %v1516_v52 = vmax.f32 %v1500_v7, 0.0  ;;  %v1514_v34 = vmax.f32 %v1498_v2, 0.0 }
 0x2e5   : > { %v1531_v17 = vpack.c.bf16 %v1514_v34, %v1513_v54  ;;  %v1634_v54 = vld [vmem:[#allocation5 + $0x18] sm:$0xff] }
 0x2e6   : > { %v1474_v29 = vpop.f32.mrf.mxu2  ;;  %v1376_v16 = vpop.f32.mrf.mxu0 }
 0x2e7   : > { %v1508_v27 = vadd.f32 %v1492_v38, %v1474_v29  ;;  %v1485_v61 = vmul.f32 %v1376_v16, %v3274_v0  ;;  %v1499_v29 = vadd.f32 %v1483_v40, %v1452_v45  ;;  %v1540_v45 = vld [vmem:[%s4199_s5 + $0x18] sm:$0xff]  ;;  %v1601_v40 = vld [vmem:[#allocation4 + $0x8] sm:$0xff] }
 0x2e8   : > { %v1457_v8 = vpop.f32.mrf.mxu1  ;;  %1558 = vperm.xlu1 %2808, %v1540_v45  }
 0x2e9   : > { %v1524_v60 = vmax.f32 %v1508_v27, 0.0  ;;  %v1501_v59 = vadd.f32 %v1485_v61, %v1457_v8  ;;  %v1515_v39 = vmax.f32 %v1499_v29, 0.0  ;;  %v2701_v8 = vld [vmem:[%s4198_s4] sm:$0xff] }
 0x2eb   : > { %v1536_v50 = vpack.c.bf16 %v1524_v60, %v1523_v36  ;;  %v1517_v16 = vmax.f32 %v1501_v59, 0.0  ;;  %v1532_v36 = vpack.c.bf16 %v1516_v52, %v1515_v39  ;;  %v2990_v60 = vmov 1.0|1.0  }
 0x2ec   : > { %2654 = vmatpush.bf16.xpose.msk.msra.mxu3 %vm2653_vm4, %v2990_v60 }
 0x2ed   : > { %1573 = vmatpush.bf16.msra.mxu2 %v1536_v50 }
 0x2ee   : > { %v1378_v3 = vpop.f32.mrf.mxu0 }
 0x2ef   : > { %v1486_v23 = vmul.f32 %v1378_v3, %v3282_v10 }
 0x2f0   : > { %v1459_v19 = vpop.f32.mrf.mxu1 }
 0x2f1   : > { %1574 = vmatpush.bf16.msra.mxu2 %v1535_v24  ;;  %v1502_v47 = vadd.f32 %v1486_v23, %v1459_v19 }
 0x2f3   : > { %v1518_v38 = vmax.f32 %v1502_v47, 0.0 }
 0x2f4   : > { %2656 = vmatpush.bf16.xpose.msk.msrb.mxu3 %vm2653_vm4, %v2990_v60 }
 0x2f5   : > { %v1533_v27 = vpack.c.bf16 %v1518_v38, %v1517_v16  ;;  %v1603_v38 = vld [vmem:[#allocation4 + $0x18] sm:$0xff]  ;;  %v1631_v16 = vld [vmem:[#allocation5] sm:$0xff] }
 0x2f6   : > { %v1381_v41 = vpop.f32.mrf.mxu0 }
 0x2f7   : > { %v1487_v56 = vmul.f32 %v1381_v41, %v3290_v20 }
 0x2f8   : > { %v1462_v48 = vpop.f32.mrf.mxu1 }
 0x2f9   : > { %v1503_v51 = vadd.f32 %v1487_v56, %v1462_v48 }
 0x2fb   : > { %v1519_v9 = vmax.f32 %v1503_v51, 0.0 }
 0x2fe   : > { %v1383_v28 = vpop.f32.mrf.mxu0 }
 0x2ff   : > { %v1488_v13 = vmul.f32 %v1383_v28, %v3298_v30 }
 0x300   : > { %v1464_v42 = vpop.f32.mrf.mxu1 }
 0x301   : > { %v1504_v55 = vadd.f32 %v1488_v13, %v1464_v42 }
 0x303   : > { %v1520_v33 = vmax.f32 %v1504_v55, 0.0 }
 0x305   : > { %v1534_v43 = vpack.c.bf16 %v1520_v33, %v1519_v9  ;;  %v1602_v33 = vld [vmem:[#allocation4 + $0x10] sm:$0xff] }
 0x307   : > { %1575 = vmatpush.bf16.msra.mxu2 %v1534_v43 }
 0x30b   : > { %1576 = vmatpush.bf16.msra.mxu2 %v1533_v27  ;;  %v1632_v27 = vld [vmem:[#allocation5 + $0x8] sm:$0xff] }
 0x30f   : > { %1577 = vmatpush.bf16.msra.mxu2 %v1532_v36  ;;  %v1633_v36 = vld [vmem:[#allocation5 + $0x10] sm:$0xff] }
 0x313   : > { %1578 = vmatpush.bf16.msra.mxu2 %v1531_v17 }
 0x317   : > { %1579 = vmatpush.bf16.msra.mxu2 %v3707_v35 }
 0x31b   : > { %1580 = vmatpush.bf16.msra.mxu2 %v3703_v44 }
 0x31e   : > { %1581 = vmatmul.bf16.vlgmr.msra.gmra.mxu2 %v2701_v8 }
 0x32e   : > { %1586 = vmatmul.bf16.gmra.mxu2 %v2702_v46 }
 0x339   : > { %v1544_v35 = vpop.permute.xlu0 %1543 }
 0x34a   : > { %v1549_v50 = vpop.permute.xlu0 %1548 }
 0x352   : > { %v1554_v19 = vpop.permute.xlu1 %1553 }
 0x35a   : > { %v1559_v48 = vpop.permute.xlu1 %1558 }
 0x3a1   : > { %v1582_v12 = vpop.f32.mrf.mxu2 }
 0x3a2   : > { %v1583_v3 = vadd.f32 %v1582_v12, %v1544_v35 }
 0x3a4   : > { %v1594_v61 = vmul.f32 %v1583_v3, %v1583_v3 }
 0x3a9   : > { %v1584_v37 = vpop.f32.mrf.mxu2 }
 0x3aa   : > { %v1585_v24 = vadd.f32 %v1584_v37, %v1549_v50 }
 0x3ac   : > { %v1592_v44 = vpack.c.bf16 %v1585_v24, %v1583_v3  ;;  %v1595_v49 = vmul.f32 %v1585_v24, %v1585_v24 }
 0x3ae   : > { %1612 = vmatmul.bf16.vlgmr.msra.gmra.mxu3 %v1592_v44  ;;  %v1598_v51 = vpack.c.bf16 %v1595_v49, %v1594_v61 }
 0x3b1   : > { %v1587_v41 = vpop.f32.mrf.mxu2 }
 0x3b2   : > { %v1588_v23 = vadd.f32 %v1587_v41, %v1554_v19 }
 0x3b4   : > { %v1596_v32 = vmul.f32 %v1588_v23, %v1588_v23 }
 0x3b9   : > { %v1589_v56 = vpop.f32.mrf.mxu2 }
 0x3ba   : > { %v1590_v28 = vadd.f32 %v1589_v56, %v1559_v48 }
 0x3bc   : > { %v1593_v18 = vpack.c.bf16 %v1590_v28, %v1588_v23  ;;  %v1597_v13 = vmul.f32 %v1590_v28, %v1590_v28 }
 0x3be   : > { %1617 = vmatmul.bf16.gmra.mxu3 %v1593_v18  ;;  %v1599_v42 = vpack.c.bf16 %v1597_v13, %v1596_v32 }
 0x3ce   : > { %1643 = vmatmul.bf16.vlgmr.msrb.gmra.mxu3 %v1598_v51 }
 0x3de   : > { %1648 = vmatmul.bf16.gmra.mxu3 %v1599_v42 }
 0x431   : > { %v1613_v47 = vpop.f32.mrf.mxu3 }
 0x432   : > { %v1623_v55 = vadd.f32 %v1613_v47, %v1600_v53 }
 0x434   : > { %1627 = vst.msk [vmem:[#allocation4] sm:$0xff] %vm1318_vm1, %v1623_v55 }
 0x439   : > { %v1615_v59 = vpop.f32.mrf.mxu3 }
 0x43a   : > { %v1624_v9 = vadd.f32 %v1615_v59, %v1601_v40 }
 0x43c   : > { %1628 = vst.msk [vmem:[#allocation4 + $0x8] sm:$0xff] %vm1318_vm1, %v1624_v9 }
 0x441   : > { %v1618_v6 = vpop.f32.mrf.mxu3 }
 0x442   : > { %v1625_v7 = vadd.f32 %v1618_v6, %v1602_v33 }
 0x444   : > { %1629 = vst.msk [vmem:[#allocation4 + $0x10] sm:$0xff] %vm1318_vm1, %v1625_v7 }
 0x449   : > { %v1620_v43 = vpop.f32.mrf.mxu3 }
 0x44a   : > { %v1626_v29 = vadd.f32 %v1620_v43, %v1603_v38 }
 0x44c   : > { %1630 = vst.msk [vmem:[#allocation4 + $0x18] sm:$0xff] %vm1318_vm1, %v1626_v29 }
 0x451   : > { %v1644_v2 = vpop.f32.mrf.mxu3 }
 0x452   : > { %v1654_v52 = vadd.f32 %v1644_v2, %v1631_v16 }
 0x454   : > { %1658 = vst.msk [vmem:[#allocation5] sm:$0xff] %vm1318_vm1, %v1654_v52 }
 0x459   : > { %v1646_v39 = vpop.f32.mrf.mxu3 }
 0x45a   : > { %v1655_v34 = vadd.f32 %v1646_v39, %v1632_v27 }
 0x45c   : > { %1659 = vst.msk [vmem:[#allocation5 + $0x8] sm:$0xff] %vm1318_vm1, %v1655_v34 }
 0x461   : > { %v1649_v63 = vpop.f32.mrf.mxu3 }
 0x462   : > { %v1656_v62 = vadd.f32 %v1649_v63, %v1633_v36 }
 0x464   : > { %1660 = vst.msk [vmem:[#allocation5 + $0x10] sm:$0xff] %vm1318_vm1, %v1656_v62 }
 0x469   : > { %v1651_v17 = vpop.f32.mrf.mxu3 }
 0x46a   : > { %v1657_v45 = vadd.f32 %v1651_v17, %v1634_v54 }
 0x46c   : > { %1661 = vst.msk [vmem:[#allocation5 + $0x18] sm:$0xff] %vm1318_vm1, %v1657_v45 }
 0x46d PF: > { %p2657_p7 = scmp.ne.s32.totalorder %s2970_s11, 2 }
 0x46e   : > { %s4226_s0 = scalar_lea.vmem (!%p2657_p7), [#allocation9], %s3117_s15 }
 0x46f   : > { %1665 = sbr.rel (%p2657_p7) target bundleno = 1751 (0x6d7), region = 109 }
 0x474   : > { %vm2039_vm2 = vcmask 1043456   ;;  %v1666_v8 = vld [vmem:[#allocation6] sm:$0x1]  ;;  %v1684_v48 = vld [vmem:[#allocation2 + $0x8] sm:$0xff]  ;;  %v1685_v33 = vld [vmem:[#allocation2 + $0x10] sm:$0xff]  ;;  %vm2014_vm13 = vcmask 64512  }
 0x475   : > { %v3757_v46 = vsel %vm2039_vm2, %v3195_v22, 0  ;;  %v1667_v60 = vmax.f32 %v1666_v8, 1.0  ;;  %v1683_v41 = vld [vmem:[#allocation2] sm:$0xff]  ;;  %v1719_v28 = vld [vmem:[#allocation3 + $0x8] sm:$0xff]  ;;  %v1686_v6 = vld [vmem:[#allocation2 + $0x18] sm:$0xff] }
 0x476   : > { %2050 = vmatpush.bf16.msra.mxu0 %v3757_v46  ;;  %2721 = vmatpush.bf16.msra.mxu2 %v3757_v46  ;;  %v1718_v23 = vld [vmem:[#allocation3] sm:$0xff]  ;;  %v1696_v61 = vld [vmem:[#allocation2 + $0x68] sm:$0xff]  ;;  %v1720_v43 = vld [vmem:[#allocation3 + $0x10] sm:$0xff] }
 0x477   : > { %2131 = vmatpush.bf16.msra.mxu1 %v3757_v46  ;;  %2846 = vrcp.f32 %v1667_v60  ;;  %2722 = vmatpush.bf16.msra.mxu3 %v3757_v46  ;;  %v1679_v50 = vand.u32 2147483648, %v1667_v60  ;;  %vm1673_vm1 = vweird.f32 %v1667_v60  ;;  %v1677_v22 = vand.u32 2147483647, %v1667_v60  ;;  %v1695_v18 = vld [vmem:[#allocation2 + $0x60] sm:$0xff]  ;;  %v1731_v13 = vld [vmem:[#allocation3 + $0x68] sm:$0xff]  ;;  %v1721_v29 = vld [vmem:[#allocation3 + $0x18] sm:$0xff] }
 0x478   : > { %v1730_v51 = vld [vmem:[#allocation3 + $0x60] sm:$0xff]  ;;  %v1697_v36 = vld [vmem:[#allocation2 + $0x70] sm:$0xff]  ;;  %v1698_v63 = vld [vmem:[#allocation2 + $0x78] sm:$0xff] }
 0x479   : > { %v1680_v24 = vor.u32 1.1754944e-38, %v1679_v50  ;;  %vm1678_vm7 = vcmp.eq.f32.partialorder %v1677_v22, 8.507059e+37 }
 0x47a   : > { %2723 = vmatpush.bf16.msrb.mxu2 %v3757_v46 }
 0x47b   : > { %2383 = vmatpush.bf16.msrb.mxu3 %v3757_v46 }
 0x47d   : > { %v2847_v35 = vpop.eup %2846 }
 0x47e   : > { %v1669_v12 = vmul.f32 %v2847_v35, %v1667_v60  ;;  %vm1674_vm5 = vweird.f32 %v2847_v35 }
 0x47f   : > { %vm1675_vm6 = vmor %vm1673_vm1, %vm1674_vm5 }
 0x480   : > { %v1670_v37 = vsub.f32 1.0, %v1669_v12 }
 0x482   : > { %v1671_v3 = vmul.f32 %v2847_v35, %v1670_v37 }
 0x484   : > { %v1672_v44 = vadd.f32 %v2847_v35, %v1671_v3 }
 0x486   : > { %v1676_v19 = vsel %vm1675_vm6, %v2847_v35, %v1672_v44  ;;  %v1733_v44 = vld [vmem:[#allocation3 + $0x78] sm:$0xff] }
 0x487   : > { %v1681_v56 = vsel %vm1678_vm7, %v1680_v24, %v1676_v19  ;;  %v1732_v24 = vld [vmem:[#allocation3 + $0x70] sm:$0xff] }
 0x488   : > { %v3765_v49 = vperm.slane %v1681_v56, 0 }
 0x48a   : > { %v3768_v32 = vmul.f32 %v3765_v49, %v1683_v41  ;;  %v3771_v42 = vmul.f32 %v3765_v49, %v1684_v48  ;;  %v1734_v53 = vmul.f32 %v1718_v23, %v3765_v49  ;;  %v1735_v47 = vmul.f32 %v1719_v28, %v3765_v49 }
 0x48b   : > { %v3776_v55 = vmul.f32 %v3765_v49, %v1695_v18  ;;  %v3779_v40 = vmul.f32 %v3765_v49, %v1696_v61  ;;  %v1746_v59 = vmul.f32 %v1730_v51, %v3765_v49  ;;  %v1747_v9 = vmul.f32 %v1731_v13, %v3765_v49 }
 0x48c   : > { %v1750_v7 = vmul.f32 %v3768_v32, %v3768_v32  ;;  %v1751_v38 = vmul.f32 %v3771_v42, %v3771_v42  ;;  %v3792_v39 = vmul.f32 %v3765_v49, %v1685_v33  ;;  %v3795_v34 = vmul.f32 %v3765_v49, %v1686_v6  ;;  %v1688_v6 = vld [vmem:[#allocation2 + $0x28] sm:$0xff] }
 0x48d   : > { %v1762_v16 = vmul.f32 %v3776_v55, %v3776_v55  ;;  %v1763_v2 = vmul.f32 %v3779_v40, %v3779_v40  ;;  %v1736_v17 = vmul.f32 %v1720_v43, %v3765_v49  ;;  %v1737_v45 = vmul.f32 %v1721_v29, %v3765_v49 }
 0x48e   : > { %v1766_v52 = vsub.f32 %v1734_v53, %v1750_v7  ;;  %v1767_v27 = vsub.f32 %v1735_v47, %v1751_v38  ;;  %v1752_v35 = vmul.f32 %v3792_v39, %v3792_v39  ;;  %v1753_v12 = vmul.f32 %v3795_v34, %v3795_v34 }
 0x48f   : > { %v1778_v62 = vsub.f32 %v1746_v59, %v1762_v16  ;;  %v1779_v54 = vsub.f32 %v1747_v9, %v1763_v2  ;;  %v3804_v22 = vmul.f32 %v3765_v49, %v1697_v36  ;;  %v3807_v3 = vmul.f32 %v3765_v49, %v1698_v63  ;;  %v1687_v9 = vld [vmem:[#allocation2 + $0x20] sm:$0xff] }
 0x490   : > { %v1782_v8 = vmax.f32 %v1766_v52, 0.0  ;;  %v1783_v60 = vmax.f32 %v1767_v27, 0.0  ;;  %v1768_v48 = vsub.f32 %v1736_v17, %v1752_v35  ;;  %v1769_v56 = vsub.f32 %v1737_v45, %v1753_v12  ;;  %v1722_v2 = vld [vmem:[#allocation3 + $0x20] sm:$0xff]  ;;  %v1723_v52 = vld [vmem:[#allocation3 + $0x28] sm:$0xff] }
 0x491   : > { %v1794_v50 = vmax.f32 %v1778_v62, 0.0  ;;  %v1795_v37 = vmax.f32 %v1779_v54, 0.0  ;;  %v1748_v61 = vmul.f32 %v1732_v24, %v3765_v49  ;;  %v1749_v51 = vmul.f32 %v1733_v44, %v3765_v49 }
 0x492   : > { %v3809_v19 = vadd.f32 1e-05, %v1782_v8  ;;  %v3811_v41 = vadd.f32 1e-05, %v1783_v60  ;;  %v1784_v18 = vmax.f32 %v1768_v48, 0.0  ;;  %v1785_v13 = vmax.f32 %v1769_v56, 0.0 }
 0x493   : > { %v3813_v23 = vadd.f32 1e-05, %v1794_v50  ;;  %v3815_v28 = vadd.f32 1e-05, %v1795_v37  ;;  %v1764_v47 = vmul.f32 %v3804_v22, %v3804_v22  ;;  %v1765_v59 = vmul.f32 %v3807_v3, %v3807_v3 }
 0x494   : > { %2848 = vrsqrt.f32 %v3809_v19  ;;  %v3822_v53 = vadd.f32 1e-05, %v1784_v18  ;;  %v3829_v33 = vadd.f32 1e-05, %v1785_v13  ;;  %v1974_v43 = vsub.f32 0.0, %v3768_v32 }
 0x495   : > { %2850 = vrsqrt.f32 %v3811_v41  ;;  %v1780_v7 = vsub.f32 %v1748_v61, %v1764_v47  ;;  %v1781_v38 = vsub.f32 %v1749_v51, %v1765_v59  ;;  %v1975_v29 = vsub.f32 0.0, %v3771_v42 }
 0x496   : > { %2852 = vrsqrt.f32 %v3813_v23  ;;  %v3836_v16 = vmul.f32 %v3765_v49, %v1687_v9  ;;  %vm1820_vm8 = vweird.f32 %v3809_v19  ;;  %vm1830_vm9 = vweird.f32 %v3811_v41 }
 0x497   : > { %2854 = vrsqrt.f32 %v3815_v28  ;;  %v1796_v36 = vmax.f32 %v1780_v7, 0.0  ;;  %v3841_v63 = vmul.f32 %v3765_v49, %v1688_v6  ;;  %vm1940_vm10 = vweird.f32 %v3813_v23 }
 0x498   : > { %2856 = vrsqrt.f32 %v3822_v53  ;;  %vm1950_vm11 = vweird.f32 %v3815_v28  ;;  %v1797_v17 = vmax.f32 %v1781_v38, 0.0  ;;  %v3850_v35 = vmul.f32 %v1722_v2, %v3765_v49 }
 0x499   : > { %2858 = vrsqrt.f32 %v3829_v33  ;;  %v3847_v60 = vadd.f32 1e-05, %v1796_v36  ;;  %v3853_v12 = vmul.f32 %v1723_v52, %v3765_v49  ;;  %v3858_v44 = vmul.f32 %v3836_v16, %v3836_v16 }
 0x49a   : > { %v2849_v27 = vpop.eup %2848  ;;  %v3866_v61 = vmul.f32 %v3841_v63, %v3841_v63  ;;  %vm1840_vm14 = vweird.f32 %v3822_v53  ;;  %v3873_v9 = vadd.f32 1e-05, %v1797_v17  ;;  %vm1850_vm0 = vweird.f32 %v3829_v33 }
 0x49b   : > { %v2851_v62 = vpop.eup %2850  ;;  %v1815_v54 = vmul.f32 %v2849_v27, %v3809_v19  ;;  %vm1821_vm12 = vweird.f32 %v2849_v27  ;;  %2860 = vrsqrt.f32 %v3847_v60  ;;  %v1986_v32 = vsub.f32 0.0, %v3776_v55 }
 0x49c   : > { %v2853_v45 = vpop.eup %2852  ;;  %v1825_v8 = vmul.f32 %v2851_v62, %v3811_v41  ;;  %vm1831_vm15 = vweird.f32 %v2851_v62  ;;  %vm3882_vm4 = vmor %vm1820_vm8, %vm1821_vm12  ;;  %2862 = vrsqrt.f32 %v3873_v9  ;;  %v1976_v55 = vsub.f32 0.0, %v3792_v39  ;;  %v1724_v39 = vld [vmem:[#allocation3 + $0x30] sm:$0xff] }
 0x49d   : > { %v2855_v50 = vpop.eup %2854  ;;  %v1816_v37 = vmul.f32 %v2849_v27, %v1815_v54  ;;  %v1935_v24 = vmul.f32 %v2853_v45, %v3813_v23  ;;  %vm1941_vm3 = vweird.f32 %v2853_v45  ;;  %vm1832_vm1 = vmor %vm1830_vm9, %vm1831_vm15 }
 0x49e   : > { %v3860_v48 = vpop.eup %2856  ;;  %v1826_v56 = vmul.f32 %v2851_v62, %v1825_v8  ;;  %v1945_v18 = vmul.f32 %v2855_v50, %v3815_v28  ;;  %vm1951_vm2 = vweird.f32 %v2855_v50  ;;  %vm1942_vm5 = vmor %vm1940_vm10, %vm1941_vm3 }
 0x49f   : > { %v3868_v51 = vpop.eup %2858  ;;  %v1817_v13 = vmul.f32 0.5, %v1816_v37  ;;  %v1936_v47 = vmul.f32 %v2853_v45, %v1935_v24  ;;  %v1835_v59 = vmul.f32 %v3860_v48, %v3822_v53  ;;  %vm1952_vm6 = vmor %vm1950_vm11, %vm1951_vm2  ;;  %vm1841_vm7 = vweird.f32 %v3860_v48 }
 0x4a0   : > { %v1827_v6 = vmul.f32 0.5, %v1826_v56  ;;  %v1946_v7 = vmul.f32 %v2855_v50, %v1945_v18  ;;  %v1845_v38 = vmul.f32 %v3868_v51, %v3829_v33  ;;  %vm1851_vm8 = vweird.f32 %v3868_v51  ;;  %vm3919_vm9 = vmor %vm1840_vm14, %vm1841_vm7 }
 0x4a1   : > { %v1818_v2 = vsub.f32 1.5, %v1817_v13  ;;  %v1937_v52 = vmul.f32 0.5, %v1936_v47  ;;  %v1836_v36 = vmul.f32 %v3860_v48, %v1835_v59  ;;  %v3890_v13 = vpop.eup %2860  ;;  %vm1852_vm10 = vmor %vm1850_vm0, %vm1851_vm8  ;;  %v1977_v53 = vsub.f32 0.0, %v3795_v34 }
 0x4a2   : > { %v1828_v17 = vsub.f32 1.5, %v1827_v6  ;;  %v1947_v8 = vmul.f32 0.5, %v1946_v7  ;;  %v1846_v37 = vmul.f32 %v3868_v51, %v1845_v38  ;;  %v1770_v6 = vsub.f32 %v3850_v35, %v3858_v44  ;;  %v3912_v54 = vpop.eup %2862 }
 0x4a3   : > { %v1819_v24 = vmul.f32 %v2849_v27, %v1818_v2  ;;  %v1938_v56 = vsub.f32 1.5, %v1937_v52  ;;  %v1837_v18 = vmul.f32 0.5, %v1836_v36  ;;  %v1955_v2 = vmul.f32 %v3890_v13, %v3847_v60 }
 0x4a4   : > { %v1829_v19 = vmul.f32 %v2851_v62, %v1828_v17  ;;  %v1948_v47 = vsub.f32 1.5, %v1947_v8  ;;  %v1847_v59 = vmul.f32 0.5, %v1846_v37  ;;  %vm1960_vm11 = vweird.f32 %v3847_v60 }
 0x4a5   : > { %v1823_v7 = vsel %vm3882_vm4, %v2849_v27, %v1819_v24  ;;  %v1939_v41 = vmul.f32 %v2853_v45, %v1938_v56  ;;  %v1838_v38 = vsub.f32 1.5, %v1837_v18  ;;  %v1956_v28 = vmul.f32 %v3890_v13, %v1955_v2  ;;  %v1689_v18 = vld [vmem:[#allocation2 + $0x30] sm:$0xff] }
 0x4a6   : > { %v1833_v52 = vsel %vm1832_vm1, %v2851_v62, %v1829_v19  ;;  %v1949_v23 = vmul.f32 %v2855_v50, %v1948_v47  ;;  %v1990_v36 = vmul.f32 %v1974_v43, %v1823_v7  ;;  %v1848_v17 = vsub.f32 1.5, %v1847_v59  ;;  %v1690_v19 = vld [vmem:[#allocation2 + $0x38] sm:$0xff] }
 0x4a7   : > { %v2006_v8 = vpack.c.bf16 %v1833_v52, %v1823_v7  ;;  %v1943_v35 = vsel %vm1942_vm5, %v2853_v45, %v1939_v41  ;;  %v1991_v27 = vmul.f32 %v1975_v29, %v1833_v52  ;;  %v1771_v62 = vsub.f32 %v3853_v12, %v3866_v61  ;;  %v1725_v41 = vld [vmem:[#allocation3 + $0x38] sm:$0xff] }
 0x4a8   : > { %v1953_v44 = vsel %vm1952_vm6, %v2855_v50, %v1949_v23  ;;  %v1839_v42 = vmul.f32 %v3860_v48, %v1838_v38  ;;  %v1849_v50 = vmul.f32 %v3868_v51, %v1848_v17  ;;  %v1957_v37 = vmul.f32 0.5, %v1956_v28  ;;  %v1691_v23 = vld [vmem:[#allocation2 + $0x40] sm:$0xff]  ;;  %v1692_v17 = vld [vmem:[#allocation2 + $0x48] sm:$0xff] }
 0x4a9   : > { %2658 = vmatmul.msk.bf16.vlgmr.msra.gmra.mxu0 %vm2014_vm13, %v2006_v8  ;;  %v2012_v43 = vpack.c.bf16 %v1953_v44, %v1943_v35  ;;  %v2092_v45 = vpack.c.bf16 %v1991_v27, %v1990_v36  ;;  %v1987_v12 = vsub.f32 0.0, %v3779_v40  ;;  %v1965_v24 = vmul.f32 %v3912_v54, %v3873_v9  ;;  %v1726_v8 = vld [vmem:[#allocation3 + $0x40] sm:$0xff] }
 0x4aa   : > { %v1958_v61 = vsub.f32 1.5, %v1957_v37  ;;  %v1786_v40 = vmax.f32 %v1770_v6, 0.0  ;;  %v1787_v56 = vmax.f32 %v1771_v62, 0.0  ;;  %v3936_v47 = vmul.f32 %v1986_v32, %v1943_v35 }
 0x4ab   : > { %2664 = vmatmul.msk.bf16.vlgmr.msra.gmra.mxu2 %vm2014_vm13, %v2012_v43  ;;  %2666 = vmatmul.msk.bf16.vlgmr.msra.gmra.mxu1 %vm2014_vm13, %v2092_v45  ;;  %v1843_v33 = vsel %vm3919_vm9, %v3860_v48, %v1839_v42  ;;  %vm1961_vm12 = vweird.f32 %v3890_v13  ;;  %vm1970_vm14 = vweird.f32 %v3873_v9  ;;  %v1853_v34 = vsel %vm1852_vm10, %v3868_v51, %v1849_v50  ;;  %v1727_v42 = vld [vmem:[#allocation3 + $0x48] sm:$0xff] }
 0x4ac   : > { %v1966_v59 = vmul.f32 %v3912_v54, %v1965_v24  ;;  %v3945_v7 = vadd.f32 1e-05, %v1786_v40  ;;  %v3947_v6 = vadd.f32 1e-05, %v1787_v56  ;;  %v2003_v38 = vmul.f32 %v1987_v12, %v1953_v44  ;;  %vm1962_vm15 = vmor %vm1960_vm11, %vm1961_vm12 }
 0x4ad   : > { %v1959_v2 = vmul.f32 %v3890_v13, %v1958_v61  ;;  %v3951_v52 = vmul.f32 %v3765_v49, %v1689_v18  ;;  %v3954_v48 = vmul.f32 %v3765_v49, %v1690_v19  ;;  %vm1971_vm0 = vweird.f32 %v3912_v54 }
 0x4ae   : > { %v1967_v51 = vmul.f32 0.5, %v1966_v59  ;;  %2864 = vrsqrt.f32 %v3945_v7  ;;  %v1740_v36 = vmul.f32 %v1724_v39, %v3765_v49  ;;  %v1992_v35 = vmul.f32 %v1976_v55, %v1843_v33  ;;  %vm1972_vm3 = vmor %vm1970_vm14, %vm1971_vm0 }
 0x4af   : > { %v1993_v27 = vmul.f32 %v1977_v53, %v1853_v34  ;;  %2866 = vrsqrt.f32 %v3947_v6  ;;  %v1741_v44 = vmul.f32 %v1725_v41, %v3765_v49  ;;  %v1756_v60 = vmul.f32 %v3951_v52, %v3951_v52 }
 0x4b0   : > { %v1968_v28 = vsub.f32 1.5, %v1967_v51  ;;  %v1757_v62 = vmul.f32 %v3954_v48, %v3954_v48  ;;  %v3968_v32 = vmul.f32 %v3765_v49, %v1691_v23  ;;  %v1963_v43 = vsel %vm1962_vm15, %v3890_v13, %v1959_v2 }
 0x4b1   : > { %v3974_v45 = vmul.f32 %v3765_v49, %v1692_v17  ;;  %v1742_v29 = vmul.f32 %v1726_v8, %v3765_v49  ;;  %v1772_v37 = vsub.f32 %v1740_v36, %v1756_v60  ;;  %v2007_v53 = vpack.c.bf16 %v1853_v34, %v1843_v33 }
 0x4b2   : > { %v1969_v50 = vmul.f32 %v3912_v54, %v1968_v28  ;;  %v1773_v12 = vsub.f32 %v1741_v44, %v1757_v62  ;;  %v1758_v55 = vmul.f32 %v3968_v32, %v3968_v32  ;;  %v2098_v61 = vpack.c.bf16 %v2003_v38, %v3936_v47 }
 0x4b3   : > { %v2093_v13 = vpack.c.bf16 %v1993_v27, %v1992_v35  ;;  %v1788_v40 = vmax.f32 %v1772_v37, 0.0  ;;  %v1743_v18 = vmul.f32 %v1727_v42, %v3765_v49  ;;  %v1759_v41 = vmul.f32 %v3974_v45, %v3974_v45  ;;  %v1693_v35 = vld [vmem:[#allocation2 + $0x50] sm:$0xff] }
 0x4b4   : > { %v2865_v24 = vpop.eup %2864  ;;  %v1973_v9 = vsel %vm1972_vm3, %v3912_v54, %v1969_v50  ;;  %v1789_v56 = vmax.f32 %v1773_v12, 0.0  ;;  %v1774_v2 = vsub.f32 %v1742_v29, %v1758_v55  ;;  %v1988_v38 = vsub.f32 0.0, %v3804_v22  ;;  %v1729_v12 = vld [vmem:[#allocation3 + $0x58] sm:$0xff] }
 0x4b5   : > { %v2867_v19 = vpop.eup %2866  ;;  %v2013_v39 = vpack.c.bf16 %v1973_v9, %v1963_v43  ;;  %v1855_v59 = vmul.f32 %v2865_v24, %v3945_v7  ;;  %v3987_v34 = vadd.f32 1e-05, %v1788_v40  ;;  %vm1860_vm4 = vweird.f32 %v3945_v7 }
 0x4b6   : > { %v1865_v33 = vmul.f32 %v2867_v19, %v3947_v6  ;;  %v3989_v47 = vadd.f32 1e-05, %v1789_v56  ;;  %vm1861_vm2 = vweird.f32 %v2865_v24  ;;  %v1775_v36 = vsub.f32 %v1743_v18, %v1759_v41 }
 0x4b7   : > { %2665 = vmatmul.msk.bf16.vlgmr.msra.gmra.mxu3 %vm2014_vm13, %v2013_v39  ;;  %v1856_v54 = vmul.f32 %v2865_v24, %v1855_v59  ;;  %2868 = vrsqrt.f32 %v3987_v34  ;;  %v1790_v17 = vmax.f32 %v1774_v2, 0.0  ;;  %vm1870_vm1 = vweird.f32 %v3947_v6  ;;  %vm4007_vm6 = vmor %vm1860_vm4, %vm1861_vm2  ;;  %v1728_v6 = vld [vmem:[#allocation3 + $0x50] sm:$0xff] }
 0x4b8   : > { %v1866_v23 = vmul.f32 %v2867_v19, %v1865_v33  ;;  %2410 = vmatpush.bf16.msra.mxu3 %v3757_v46  ;;  %2870 = vrsqrt.f32 %v3989_v47  ;;  %vm1871_vm5 = vweird.f32 %v2867_v19  ;;  %v1989_v22 = vsub.f32 0.0, %v3807_v3  ;;  %v1694_v46 = vld [vmem:[#allocation2 + $0x58] sm:$0xff] }
 0x4b9   : > { %2659 = vmatmul.msk.bf16.gmra.mxu0 %vm2014_vm13, %v2007_v53  ;;  %v1857_v51 = vmul.f32 0.5, %v1856_v54  ;;  %v1791_v44 = vmax.f32 %v1775_v36, 0.0  ;;  %v4002_v28 = vadd.f32 1e-05, %v1790_v17  ;;  %v4012_v42 = vmul.f32 %v3765_v49, %v1693_v35  ;;  %vm1872_vm7 = vmor %vm1870_vm1, %vm1871_vm5 }
 0x4ba   : > { %v1867_v8 = vmul.f32 0.5, %v1866_v23  ;;  %v1978_v3 = vsub.f32 0.0, %v3836_v16  ;;  %v1979_v50 = vsub.f32 0.0, %v3841_v63  ;;  %v2004_v53 = vmul.f32 %v1988_v38, %v1963_v43 }
 0x4bb   : > { %2672 = vmatmul.msk.bf16.vlgmr.msrb.gmra.mxu2 %vm2014_vm13, %v2098_v61  ;;  %2667 = vmatmul.msk.bf16.gmra.mxu1 %vm2014_vm13, %v2093_v13  ;;  %v1858_v27 = vsub.f32 1.5, %v1857_v51  ;;  %v4016_v37 = vadd.f32 1e-05, %v1791_v44  ;;  %v2005_v61 = vmul.f32 %v1989_v22, %v1973_v9  ;;  %v4019_v13 = vmul.f32 %v3765_v49, %v1694_v46 }
 0x4bc   : > { %v1868_v62 = vsub.f32 1.5, %v1867_v8  ;;  %2872 = vrsqrt.f32 %v4002_v28  ;;  %v1744_v16 = vmul.f32 %v1728_v6, %v3765_v49  ;;  %v1745_v59 = vmul.f32 %v1729_v12, %v3765_v49 }
 0x4bd   : > { %v1859_v29 = vmul.f32 %v2865_v24, %v1858_v27  ;;  %v2869_v55 = vpop.eup %2868  ;;  %v1760_v43 = vmul.f32 %v4012_v42, %v4012_v42  ;;  %2874 = vrsqrt.f32 %v4016_v37  ;;  %v1761_v33 = vmul.f32 %v4019_v13, %v4019_v13 }
 0x4be   : > { %v1869_v7 = vmul.f32 %v2867_v19, %v1868_v62  ;;  %v2871_v40 = vpop.eup %2870  ;;  %v1875_v18 = vmul.f32 %v2869_v55, %v3987_v34  ;;  %v2099_v36 = vpack.c.bf16 %v2005_v61, %v2004_v53  ;;  %vm1880_vm8 = vweird.f32 %v3987_v34 }
 0x4bf   : > { %v1863_v56 = vsel %vm4007_vm6, %v2865_v24, %v1859_v29  ;;  %v1885_v39 = vmul.f32 %v2871_v40, %v3989_v47  ;;  %v1777_v8 = vsub.f32 %v1745_v59, %v1761_v33  ;;  %vm1881_vm9 = vweird.f32 %v2869_v55 }
 0x4c0   : > { %v1873_v63 = vsel %vm1872_vm7, %v2867_v19, %v1869_v7  ;;  %v1994_v9 = vmul.f32 %v1978_v3, %v1863_v56  ;;  %v1876_v2 = vmul.f32 %v2869_v55, %v1875_v18  ;;  %v1776_v19 = vsub.f32 %v1744_v16, %v1760_v43  ;;  %vm1882_vm12 = vmor %vm1880_vm8, %vm1881_vm9 }
 0x4c1   : > { %v1995_v41 = vmul.f32 %v1979_v50, %v1873_v63  ;;  %v1886_v24 = vmul.f32 %v2871_v40, %v1885_v39  ;;  %v2008_v54 = vpack.c.bf16 %v1873_v63, %v1863_v56  ;;  %vm1890_vm10 = vweird.f32 %v3989_v47 }
 0x4c2   : > { %v1877_v38 = vmul.f32 0.5, %v1876_v2  ;;  %v2873_v51 = vpop.eup %2872  ;;  %vm1891_vm11 = vweird.f32 %v2871_v40  ;;  %v1792_v44 = vmax.f32 %v1776_v19, 0.0  ;;  %v1793_v46 = vmax.f32 %v1777_v8, 0.0 }
 0x4c3   : > { %v1887_v23 = vmul.f32 0.5, %v1886_v24  ;;  %v2094_v17 = vpack.c.bf16 %v1995_v41, %v1994_v9  ;;  %v2875_v27 = vpop.eup %2874  ;;  %v1895_v6 = vmul.f32 %v2873_v51, %v4002_v28  ;;  %vm1892_vm14 = vmor %vm1890_vm10, %vm1891_vm11  ;;  %v1980_v34 = vsub.f32 0.0, %v3951_v52 }
 0x4c4   : > { %v1878_v22 = vsub.f32 1.5, %v1877_v38  ;;  %v1905_v29 = vmul.f32 %v2875_v27, %v4016_v37  ;;  %v1808_v3 = vadd.f32 1e-05, %v1792_v44  ;;  %v1981_v47 = vsub.f32 0.0, %v3954_v48 }
 0x4c5   : > { %v1888_v35 = vsub.f32 1.5, %v1887_v23  ;;  %v1809_v50 = vadd.f32 1e-05, %v1793_v46  ;;  %v1896_v53 = vmul.f32 %v2873_v51, %v1895_v6  ;;  %vm1900_vm15 = vweird.f32 %v4002_v28 }
 0x4c6   : > { %v1879_v60 = vmul.f32 %v2869_v55, %v1878_v22  ;;  %v1906_v61 = vmul.f32 %v2875_v27, %v1905_v29  ;;  %2876 = vrsqrt.f32 %v1808_v3  ;;  %vm1901_vm0 = vweird.f32 %v2873_v51 }
 0x4c7   : > { %v1889_v62 = vmul.f32 %v2871_v40, %v1888_v35  ;;  %2878 = vrsqrt.f32 %v1809_v50  ;;  %v1897_v16 = vmul.f32 0.5, %v1896_v53  ;;  %vm1910_vm3 = vweird.f32 %v4016_v37  ;;  %vm1902_vm2 = vmor %vm1900_vm15, %vm1901_vm0 }
 0x4c8   : > { %v1883_v12 = vsel %vm1882_vm12, %v2869_v55, %v1879_v60  ;;  %v1907_v63 = vmul.f32 0.5, %v1906_v61  ;;  %vm1911_vm4 = vweird.f32 %v2875_v27  ;;  %v1982_v24 = vsub.f32 0.0, %v3968_v32 }
 0x4c9   : > { %2660 = vmatmul.msk.bf16.gmra.mxu0 %vm2014_vm13, %v2008_v54  ;;  %v1893_v7 = vsel %vm1892_vm14, %v2871_v40, %v1889_v62  ;;  %v1996_v56 = vmul.f32 %v1980_v34, %v1883_v12  ;;  %v1898_v9 = vsub.f32 1.5, %v1897_v16  ;;  %vm1912_vm1 = vmor %vm1910_vm3, %vm1911_vm4  ;;  %v1983_v33 = vsub.f32 0.0, %v3974_v45 }
 0x4ca   : > { %v1997_v18 = vmul.f32 %v1981_v47, %v1893_v7  ;;  %v2009_v39 = vpack.c.bf16 %v1893_v7, %v1883_v12  ;;  %v1908_v41 = vsub.f32 1.5, %v1907_v63  ;;  %vm1920_vm5 = vweird.f32 %v1808_v3 }
 0x4cb   : > { %2673 = vmatmul.msk.bf16.gmra.mxu2 %vm2014_vm13, %v2099_v36  ;;  %2668 = vmatmul.msk.bf16.gmra.mxu1 %vm2014_vm13, %v2094_v17  ;;  %v1899_v52 = vmul.f32 %v2873_v51, %v1898_v9  ;;  %vm1930_vm7 = vweird.f32 %v1809_v50 }
 0x4cc   : > { %v2095_v59 = vpack.c.bf16 %v1997_v18, %v1996_v56  ;;  %v2877_v43 = vpop.eup %2876  ;;  %v1909_v48 = vmul.f32 %v2875_v27, %v1908_v41  ;;  %v2289_v41 = vld [vmem:[#allocation4 + $0x8] sm:$0xff] }
 0x4cd   : > { %v2879_v2 = vpop.eup %2878  ;;  %v1915_v55 = vmul.f32 %v2877_v43, %v1808_v3  ;;  %v1903_v54 = vsel %vm1902_vm2, %v2873_v51, %v1899_v52  ;;  %vm1921_vm6 = vweird.f32 %v2877_v43  ;;  %v1984_v51 = vsub.f32 0.0, %v4012_v42 }
 0x4ce   : > { %v1925_v40 = vmul.f32 %v2879_v2, %v1809_v50  ;;  %v1913_v38 = vsel %vm1912_vm1, %v2875_v27, %v1909_v48  ;;  %v1998_v19 = vmul.f32 %v1982_v24, %v1903_v54  ;;  %vm1931_vm8 = vweird.f32 %v2879_v2  ;;  %vm1922_vm9 = vmor %vm1920_vm5, %vm1921_vm6  ;;  %v2297_v24 = vld [vmem:[#allocation5 + $0x8] sm:$0xff] }
 0x4cf   : > { %v1916_v23 = vmul.f32 %v2877_v43, %v1915_v55  ;;  %v1999_v36 = vmul.f32 %v1983_v33, %v1913_v38  ;;  %v2010_v8 = vpack.c.bf16 %v1913_v38, %v1903_v54  ;;  %vm1932_vm10 = vmor %vm1930_vm7, %vm1931_vm8  ;;  %v1985_v27 = vsub.f32 0.0, %v4019_v13 }
 0x4d0   : > { %v1926_v28 = vmul.f32 %v2879_v2, %v1925_v40  ;;  %v2296_v40 = vld [vmem:[#allocation5] sm:$0xff] }
 0x4d1   : > { %v1917_v37 = vmul.f32 0.5, %v1916_v23  ;;  %v2096_v22 = vpack.c.bf16 %v1999_v36, %v1998_v19  ;;  %v2300_v54 = vmul.f32 %v2296_v40, %v3765_v49 }
 0x4d2   : > { %v1927_v17 = vmul.f32 0.5, %v1926_v28 }
 0x4d3   : > { %v1918_v35 = vsub.f32 1.5, %v1917_v37 }
 0x4d4   : > { %v1928_v44 = vsub.f32 1.5, %v1927_v17 }
 0x4d5   : > { %v1919_v32 = vmul.f32 %v2877_v43, %v1918_v35 }
 0x4d6   : > { %v1929_v45 = vmul.f32 %v2879_v2, %v1928_v44 }
 0x4d7   : > { %v1923_v46 = vsel %vm1922_vm9, %v2877_v43, %v1919_v32 }
 0x4d8   : > { %v1933_v60 = vsel %vm1932_vm10, %v2879_v2, %v1929_v45  ;;  %v2000_v62 = vmul.f32 %v1984_v51, %v1923_v46 }
 0x4d9   : > { %2661 = vmatmul.msk.bf16.gmra.mxu0 %vm2014_vm13, %v2009_v39  ;;  %v2001_v6 = vmul.f32 %v1985_v27, %v1933_v60  ;;  %v2011_v29 = vpack.c.bf16 %v1933_v60, %v1923_v46 }
 0x4db   : > { %2669 = vmatmul.msk.bf16.gmra.mxu1 %vm2014_vm13, %v2095_v59  ;;  %v2097_v34 = vpack.c.bf16 %v2001_v6, %v2000_v62  ;;  %v2290_v62 = vld [vmem:[#allocation4 + $0x10] sm:$0xff]  ;;  %v2291_v6 = vld [vmem:[#allocation4 + $0x18] sm:$0xff] }
 0x4e9   : > { %2662 = vmatmul.msk.bf16.gmra.mxu0 %vm2014_vm13, %v2010_v8 }
 0x4eb   : > { %2670 = vmatmul.msk.bf16.gmra.mxu1 %vm2014_vm13, %v2096_v22 }
 0x4f9   : > { %2663 = vmatmul.msk.bf16.gmra.mxu0 %vm2014_vm13, %v2011_v29 }
 0x4fb   : > { %2671 = vmatmul.msk.bf16.gmra.mxu1 %vm2014_vm13, %v2097_v34 }
 0x526   : > { %v2052_v3 = vpop.f32.mrf.mxu0 }
 0x527   : > { %v2173_v47 = vmul.f32 %v2052_v3, %v3270_v57  ;;  %v2288_v57 = vld [vmem:[#allocation4] sm:$0xff] }
 0x528   : > { %v2133_v50 = vpop.f32.mrf.mxu1  ;;  %v4062_v48 = vmul.f32 %v2288_v57, %v3765_v49 }
 0x529   : > { %v2189_v12 = vadd.f32 %v2173_v47, %v2133_v50  ;;  %v4082_v47 = vmul.f32 %v2290_v62, %v3765_v49  ;;  %v4085_v50 = vmul.f32 %v2291_v6, %v3765_v49 }
 0x52a   : > { %v2304_v38 = vmul.f32 %v4062_v48, %v4062_v48 }
 0x52b   : > { %v2205_v56 = vmax.f32 %v2189_v12, 0.0  ;;  %v2307_v57 = vmul.f32 %v4085_v50, %v4085_v50 }
 0x52c   : > { %v2308_v19 = vsub.f32 %v2300_v54, %v2304_v38 }
 0x52e   : > { %v4055_v7 = vpop.f32.mrf.mxu2  ;;  %v2054_v42 = vpop.f32.mrf.mxu0  ;;  %v2312_v8 = vmax.f32 %v2308_v19, 0.0 }
 0x52f   : > { %v2174_v13 = vmul.f32 %v2054_v42, %v3278_v4  ;;  %v4065_v4 = vmul.f32 %v2289_v41, %v3765_v49 }
 0x530   : > { %v2135_v53 = vpop.f32.mrf.mxu1  ;;  %v2316_v45 = vadd.f32 1e-05, %v2312_v8 }
 0x531   : > { %v2190_v61 = vadd.f32 %v2174_v13, %v2135_v53  ;;  %v2305_v23 = vmul.f32 %v4065_v4, %v4065_v4  ;;  %v2298_v13 = vld [vmem:[#allocation5 + $0x10] sm:$0xff]  ;;  %v2299_v53 = vld [vmem:[#allocation5 + $0x18] sm:$0xff] }
 0x532   : > { %2880 = vrsqrt.f32 %v2316_v45  ;;  %vm2326_vm11 = vweird.f32 %v2316_v45 }
 0x533   : > { %v2206_v18 = vmax.f32 %v2190_v61, 0.0 }
 0x535   : > { %v4058_v16 = vpack.c.bf16 %v2206_v18, %v2205_v56 }
 0x536   : > { %v2084_v63 = vpop.f32.mrf.mxu2  ;;  %v2057_v39 = vpop.f32.mrf.mxu0 }
 0x537   : > { %v2175_v59 = vmul.f32 %v2057_v39, %v3286_v14  ;;  %v2301_v14 = vmul.f32 %v2297_v24, %v3765_v49  ;;  %v2302_v39 = vmul.f32 %v2298_v13, %v3765_v49  ;;  %v2186_v41 = vmul.f32 %v2084_v63, %v3284_v11 }
 0x538   : > { %v2138_v43 = vpop.f32.mrf.mxu1  ;;  %v2881_v29 = vpop.eup %2880 }
 0x539   : > { %v2191_v9 = vadd.f32 %v2175_v59, %v2138_v43  ;;  %v2309_v36 = vsub.f32 %v2301_v14, %v2305_v23  ;;  %v2321_v42 = vmul.f32 %v2881_v29, %v2316_v45  ;;  %v2303_v59 = vmul.f32 %v2299_v53, %v3765_v49 }
 0x53a   : > { %v2087_v35 = vpop.f32.mrf.mxu3  ;;  %v2306_v43 = vmul.f32 %v4082_v47, %v4082_v47  ;;  %vm2327_vm12 = vweird.f32 %v2881_v29 }
 0x53b   : > { %v2207_v37 = vmax.f32 %v2191_v9, 0.0  ;;  %v2322_v9 = vmul.f32 %v2881_v29, %v2321_v42  ;;  %v2311_v54 = vsub.f32 %v2303_v59, %v2307_v57  ;;  %vm2328_vm0 = vmor %vm2326_vm11, %vm2327_vm12 }
 0x53d   : > { %v2315_v23 = vmax.f32 %v2311_v54, 0.0 }
 0x53e   : > { %v2163_v2 = vpop.f32.mrf.mxu2  ;;  %v2059_v52 = vpop.f32.mrf.mxu0 }
 0x53f   : > { %v2176_v55 = vmul.f32 %v2059_v52, %v3294_v25  ;;  %v2313_v25 = vmax.f32 %v2309_v36, 0.0 }
 0x540   : > { %v2140_v33 = vpop.f32.mrf.mxu1 }
 0x541   : > { %v2192_v28 = vadd.f32 %v2176_v55, %v2140_v33  ;;  %v2317_v51 = vadd.f32 1e-05, %v2313_v25  ;;  %v2310_v55 = vsub.f32 %v2302_v39, %v2306_v43  ;;  %v2323_v33 = vmul.f32 0.5, %v2322_v9 }
 0x542   : > { %v2089_v56 = vpop.f32.mrf.mxu3 }
 0x543   : > { %v2208_v17 = vmax.f32 %v2192_v28, 0.0  ;;  %2882 = vrsqrt.f32 %v2317_v51  ;;  %v2188_v24 = vmul.f32 %v2089_v56, %v3300_v31  ;;  %v2314_v14 = vmax.f32 %v2310_v55, 0.0 }
 0x544   : > { %v2324_v38 = vsub.f32 1.5, %v2323_v33  ;;  %vm2336_vm14 = vweird.f32 %v2317_v51  ;;  %v2361_v33 = vsub.f32 0.0, %v4065_v4 }
 0x545   : > { %v4074_v22 = vpack.c.bf16 %v2208_v17, %v2207_v37 }
 0x546   : > { %v2165_v44 = vpop.f32.mrf.mxu2  ;;  %v2062_v32 = vpop.f32.mrf.mxu0  ;;  %v2325_v63 = vmul.f32 %v2881_v29, %v2324_v38 }
 0x547   : > { %v2177_v27 = vmul.f32 %v2062_v32, %v3272_v58  ;;  %v2187_v58 = vmul.f32 %v2087_v35, %v3292_v21  ;;  %v2185_v21 = vmul.f32 %v4055_v7, %v3276_v1  ;;  %v2202_v19 = vadd.f32 %v2186_v41, %v2165_v44 }
 0x548   : > { %v2143_v46 = vpop.f32.mrf.mxu1  ;;  %v2318_v1 = vadd.f32 1e-05, %v2314_v14  ;;  %v2319_v35 = vadd.f32 1e-05, %v2315_v23 }
 0x549   : > { %v4077_v60 = vadd.f32 %v2177_v27, %v2143_v46  ;;  %v2883_v12 = vpop.eup %2882  ;;  %v2201_v28 = vadd.f32 %v2185_v21, %v2163_v2  ;;  %v2329_v2 = vsel %vm2328_vm0, %v2881_v29, %v2325_v63  ;;  %v2218_v32 = vmax.f32 %v2202_v19, 0.0 }
 0x54a   : > { %v2331_v18 = vmul.f32 %v2883_v12, %v2317_v51  ;;  %vm2337_vm15 = vweird.f32 %v2883_v12  ;;  %2884 = vrsqrt.f32 %v2318_v1  ;;  %vm2346_vm4 = vweird.f32 %v2318_v1 }
 0x54b   : > { %vm2338_vm3 = vmor %vm2336_vm14, %vm2337_vm15  ;;  %v2217_v44 = vmax.f32 %v2201_v28, 0.0  ;;  %2886 = vrsqrt.f32 %v2319_v35  ;;  %vm2356_vm5 = vweird.f32 %v2319_v35 }
 0x54c   : > { %v2332_v52 = vmul.f32 %v2883_v12, %v2331_v18 }
 0x54e   : > { %v2168_v34 = vpop.f32.mrf.mxu2  ;;  %v4079_v3 = vpop.f32.mrf.mxu0  ;;  %v2333_v49 = vmul.f32 0.5, %v2332_v52 }
 0x54f   : > { %v2203_v40 = vadd.f32 %v2187_v58, %v2168_v34  ;;  %v2231_v34 = vpack.c.bf16 %v2218_v32, %v2217_v44 }
 0x550   : > { %v4088_v61 = vpop.f32.mrf.mxu1  ;;  %v2334_v17 = vsub.f32 1.5, %v2333_v49  ;;  %v2885_v6 = vpop.eup %2884 }
 0x551   : > { %v2219_v7 = vmax.f32 %v2203_v40, 0.0  ;;  %v2341_v58 = vmul.f32 %v2885_v6, %v2318_v1  ;;  %v2887_v42 = vpop.eup %2886  ;;  %vm2347_vm2 = vweird.f32 %v2885_v6 }
 0x552   : > { %v2335_v31 = vmul.f32 %v2883_v12, %v2334_v17  ;;  %v2351_v53 = vmul.f32 %v2887_v42, %v2319_v35  ;;  %vm2348_vm1 = vmor %vm2346_vm4, %vm2347_vm2  ;;  %vm2357_vm6 = vweird.f32 %v2887_v42  ;;  %v2362_v35 = vsub.f32 0.0, %v4082_v47 }
 0x553   : > { %v2342_v13 = vmul.f32 %v2885_v6, %v2341_v58  ;;  %vm2358_vm7 = vmor %vm2356_vm5, %vm2357_vm6 }
 0x554   : > { %v2339_v46 = vsel %vm2338_vm3, %v2883_v12, %v2335_v31  ;;  %v2352_v56 = vmul.f32 %v2887_v42, %v2351_v53 }
 0x555   : > { %v2368_v62 = vpack.c.bf16 %v2339_v46, %v2329_v2  ;;  %v2343_v29 = vmul.f32 0.5, %v2342_v13  ;;  %v2365_v38 = vmul.f32 %v2361_v33, %v2339_v46  ;;  %v2704_v13 = vld [vmem:[%s4198_s4 + $0x8] sm:$0xff] }
 0x556   : > { %v2170_v36 = vpop.f32.mrf.mxu2  ;;  %v4100_v37 = vpop.f32.mrf.mxu0  ;;  %v2353_v12 = vmul.f32 0.5, %v2352_v56 }
 0x557   : > { %v2204_v11 = vadd.f32 %v2188_v24, %v2170_v36  ;;  %2682 = vmatmul.msk.bf16.vlgmr.msrb.gmra.mxu3 %vm2014_vm13, %v2368_v62  ;;  %v2344_v39 = vsub.f32 1.5, %v2343_v29  ;;  %v2360_v24 = vsub.f32 0.0, %v4062_v48 }
 0x558   : > { %v4102_v8 = vpop.f32.mrf.mxu1  ;;  %v2354_v9 = vsub.f32 1.5, %v2353_v12 }
 0x559   : > { %v2220_v25 = vmax.f32 %v2204_v11, 0.0  ;;  %v2345_v43 = vmul.f32 %v2885_v6, %v2344_v39  ;;  %v2364_v14 = vmul.f32 %v2360_v24, %v2329_v2  ;;  %v2991_v11 = vmov 0  }
 0x55a   : > { %v2355_v21 = vmul.f32 %v2887_v42, %v2354_v9  ;;  %2844 = vset.pattern.permute.xlu1 %v2991_v11  ;;  %2843 = vset.pattern.permute.xlu0 %v2991_v11  ;;  %v2178_v2 = vmul.f32 %v4079_v3, %v3280_v5  ;;  %v2233_v5 = vld [vmem:[%s4199_s5] sm:$0xff]  ;;  %v2235_v3 = vld [vmem:[%s4199_s5 + $0x10] sm:$0xff] }
 0x55b   : > { %v2232_v27 = vpack.c.bf16 %v2220_v25, %v2219_v7  ;;  %v2349_v57 = vsel %vm2348_vm1, %v2885_v6, %v2345_v43  ;;  %v2395_v28 = vpack.c.bf16 %v2365_v38, %v2364_v14  ;;  %2845 = vset.pattern.permute.xlu2 %v2991_v11  ;;  %2239 = vperm.xlu1 %2844, %v2233_v5   ;;  %v2437_v9 = vld [vmem:[#allocation7] sm:$0x1] }
 0x55c   : > { %v2359_v41 = vsel %vm2358_vm7, %v2887_v42, %v2355_v21  ;;  %v2366_v62 = vmul.f32 %v2362_v35, %v2349_v57  ;;  %2249 = vperm.xlu0 %2843, %v2235_v3   ;;  %v2236_v42 = vld [vmem:[%s4199_s5 + $0x18] sm:$0xff]  ;;  %2440 = vperm.xlu2 %2845, %v2437_v9  }
 0x55d   : > { %2269 = vmatpush.bf16.msra.mxu2 %v2232_v27  ;;  %v2369_v55 = vpack.c.bf16 %v2359_v41, %v2349_v57 }
 0x55e   : > { %v2069_v45 = vpop.f32.mrf.mxu0 }
 0x55f   : > { %v2180_v4 = vmul.f32 %v2069_v45, %v3296_v26 }
 0x560   : > { %v2150_v51 = vpop.f32.mrf.mxu1 }
 0x561   : > { %2270 = vmatpush.bf16.msra.mxu2 %v2231_v34  ;;  %v2196_v44 = vadd.f32 %v2180_v4, %v2150_v51  ;;  %v2234_v51 = vld [vmem:[%s4199_s5 + $0x8] sm:$0xff] }
 0x563   : > { %2244 = vperm.xlu1 %2844, %v2234_v51  }
 0x564   : > { %2254 = vperm.xlu0 %2843, %v2236_v42  }
 0x566   : > { %v2072_v18 = vpop.f32.mrf.mxu0 }
 0x567   : > { %2683 = vmatmul.msk.bf16.gmra.mxu3 %vm2014_vm13, %v2369_v55  ;;  %v2181_v17 = vmul.f32 %v2072_v18, %v3274_v0 }
 0x568   : > { %v2153_v59 = vpop.f32.mrf.mxu1 }
 0x569   : > { %v2197_v31 = vadd.f32 %v2181_v17, %v2153_v59 }
 0x56b   : > { %v2213_v46 = vmax.f32 %v2197_v31, 0.0 }
 0x56e   : > { %v2074_v52 = vpop.f32.mrf.mxu0 }
 0x56f   : > { %v2182_v19 = vmul.f32 %v2074_v52, %v3282_v10  ;;  %v2179_v10 = vmul.f32 %v4100_v37, %v3288_v15  ;;  %v2194_v15 = vadd.f32 %v2178_v2, %v4088_v61  ;;  %v2212_v37 = vmax.f32 %v2196_v44, 0.0 }
 0x570   : > { %v2155_v40 = vpop.f32.mrf.mxu1 }
 0x571   : > { %v2198_v63 = vadd.f32 %v2182_v19, %v2155_v40  ;;  %v2195_v26 = vadd.f32 %v2179_v10, %v4102_v8  ;;  %v2209_v8 = vmax.f32 %v4077_v60, 0.0  ;;  %v2703_v60 = vld [vmem:[%s4198_s4] sm:$0xff] }
 0x572   : > { %v2434_v10 = vld [vmem:[%s4200_s6] sm:$0x1] }
 0x573   : > { %v2214_v32 = vmax.f32 %v2198_v63, 0.0  ;;  %v2211_v34 = vmax.f32 %v2195_v26, 0.0 }
 0x575   : > { %v2229_v6 = vpack.c.bf16 %v2214_v32, %v2213_v46  ;;  %v2228_v58 = vpack.c.bf16 %v2212_v37, %v2211_v34 }
 0x576   : > { %v2077_v54 = vpop.f32.mrf.mxu0 }
 0x577   : > { %v2183_v23 = vmul.f32 %v2077_v54, %v3290_v20  ;;  %2684 = vmatmul.msk.bf16.vlgmr.msra.gmra.mxu3 %vm2014_vm13, %v2395_v28 }
 0x578   : > { %v2158_v49 = vpop.f32.mrf.mxu1 }
 0x579   : > { %v2199_v1 = vadd.f32 %v2183_v23, %v2158_v49 }
 0x57b   : > { %v2215_v25 = vmax.f32 %v2199_v1, 0.0 }
 0x57e   : > { %v2079_v36 = vpop.f32.mrf.mxu0 }
 0x57f   : > { %v2184_v7 = vmul.f32 %v2079_v36, %v3298_v30  ;;  %v2363_v30 = vsub.f32 0.0, %v4085_v50  ;;  %v2210_v50 = vmax.f32 %v2194_v15, 0.0 }
 0x580   : > { %v2160_v48 = vpop.f32.mrf.mxu1 }
 0x581   : > { %v2200_v20 = vadd.f32 %v2184_v7, %v2160_v48  ;;  %v2367_v45 = vmul.f32 %v2363_v30, %v2359_v41  ;;  %v2227_v61 = vpack.c.bf16 %v2210_v50, %v2209_v8 }
 0x583   : > { %v2216_v0 = vmax.f32 %v2200_v20, 0.0  ;;  %v2396_v47 = vpack.c.bf16 %v2367_v45, %v2366_v62 }
 0x585   : > { %v2230_v27 = vpack.c.bf16 %v2216_v0, %v2215_v25 }
 0x587   : > { %2271 = vmatpush.bf16.msra.mxu2 %v2230_v27  ;;  %2685 = vmatmul.msk.bf16.gmra.mxu3 %vm2014_vm13, %v2396_v47  ;;  %vm2444_vm13 = vcmask 261120  }
 0x58b   : > { %2272 = vmatpush.bf16.msra.mxu2 %v2229_v6 }
 0x58f   : > { %2273 = vmatpush.bf16.msra.mxu2 %v2228_v58 }
 0x593   : > { %2274 = vmatpush.bf16.msra.mxu2 %v2227_v61 }
 0x597   : > { %2275 = vmatpush.bf16.msra.mxu2 %v4074_v22 }
 0x59b   : > { %2276 = vmatpush.bf16.msra.mxu2 %v4058_v16 }
 0x59e   : > { %2277 = vmatmul.bf16.vlgmr.msra.gmra.mxu2 %v2703_v60 }
 0x5ae   : > { %2282 = vmatmul.bf16.gmra.mxu2 %v2704_v13 }
 0x5b6   : > { %v2441_v31 = vpop.permute.xlu2 %2440 }
 0x5b7   : > { %v2443_v25 = vperm.slane %v2441_v31, 0 }
 0x5cd   : > { %v2240_v12 = vpop.permute.xlu1 %2239 }
 0x5ce   : > { %v2250_v57 = vpop.permute.xlu0 %2249 }
 0x5d5   : > { %v2245_v16 = vpop.permute.xlu1 %2244 }
 0x5d6   : > { %v2255_v33 = vpop.permute.xlu0 %2254 }
 0x5da   : > { %v2385_v53 = vpop.f32.mrf.mxu3 }
 0x5e2   : > { %v2387_v29 = vpop.f32.mrf.mxu3 }
 0x5ea   : > { %v2390_v56 = vpop.f32.mrf.mxu3 }
 0x5f2   : > { %v2392_v18 = vpop.f32.mrf.mxu3 }
 0x5fa   : > { %v2412_v39 = vpop.f32.mrf.mxu3 }
 0x602   : > { %v2414_v59 = vpop.f32.mrf.mxu3 }
 0x60a   : > { %v2417_v41 = vpop.f32.mrf.mxu3 }
 0x612   : > { %v2419_v19 = vpop.f32.mrf.mxu3 }
 0x621   : > { %v2278_v22 = vpop.f32.mrf.mxu2 }
 0x622   : > { %v2279_v40 = vadd.f32 %v2278_v22, %v2240_v12 }
 0x624   : > { %v2422_v38 = vmul.f32 %v2385_v53, %v2279_v40 }
 0x626   : > { %v2426_v1 = vadd.f32 %v2422_v38, %v2412_v39 }
 0x628   : > { %v2430_v63 = vmax.f32 %v2426_v1, 0.0 }
 0x629   : > { %v2280_v43 = vpop.f32.mrf.mxu2 }
 0x62a   : > { %v2281_v55 = vadd.f32 %v2280_v43, %v2245_v16 }
 0x62c   : > { %v2423_v49 = vmul.f32 %v2387_v29, %v2281_v55 }
 0x62e   : > { %v2427_v36 = vadd.f32 %v2423_v49, %v2414_v59 }
 0x630   : > { %v2431_v48 = vmax.f32 %v2427_v36, 0.0 }
 0x631   : > { %v2283_v21 = vpop.f32.mrf.mxu2 }
 0x632   : > { %v2284_v52 = vadd.f32 %v2283_v21, %v2250_v57  ;;  %v2435_v20 = vpack.c.bf16 %v2431_v48, %v2430_v63 }
 0x634   : > { %v2424_v24 = vmul.f32 %v2390_v56, %v2284_v52 }
 0x636   : > { %v2428_v23 = vadd.f32 %v2424_v24, %v2417_v41 }
 0x638   : > { %v2432_v7 = vmax.f32 %v2428_v23, 0.0 }
 0x639   : > { %v2285_v54 = vpop.f32.mrf.mxu2 }
 0x63a   : > { %v2286_v14 = vadd.f32 %v2285_v54, %v2255_v33 }
 0x63c   : > { %v2425_v28 = vmul.f32 %v2392_v18, %v2286_v14 }
 0x63e   : > { %v2429_v17 = vadd.f32 %v2425_v28, %v2419_v19 }
 0x640   : > { %v2433_v11 = vmax.f32 %v2429_v17, 0.0 }
 0x642   : > { %v2436_v4 = vpack.c.bf16 %v2433_v11, %v2432_v7 }
 0x644   : > { %2454 = vmatpush.bf16.msrb.mxu2 %v2436_v4 }
 0x648   : > { %2455 = vmatpush.bf16.msrb.mxu2 %v2435_v20 }
 0x64b   : > { %2686 = vmatmul.msk.bf16.vlgmr.msrb.gmra.mxu2 %vm2444_vm13, %v2434_v10 }
 0x6ce   : > { %v2457_v0 = vpop.f32.mrf.mxu2 }
 0x6cf   : > { %v2458_v35 = vadd.f32 %v2457_v0, %v2443_v25 }
 0x6d1   : > { %2461 = vst [vmem:[%s4226_s0] sm:$0x1] %v2458_v35 }
 0x6d6   : > { %v2459_v30 = vpop.f32.mrf.mxu2 }
 0x6d7 PF: > { %s2471_s24 = scalar_lea.hbm %s4202_s8, %s2966_s10  ;;  %s4227_s19 = scalar_lea.vmem [#allocation9], %s3117_s15 }
 0x6d8   : > { %s2473_s25 = sshll.u32 %s4227_s19, 4  ;;  %s2475_s27 = sshll.u32 %s2471_s24, 4  ;;  %s2474_s25 = int_to_ptr.vmem [resolvable:$true] %s2473_s25  ;;  %s2476_s27 = int_to_ptr.hbm [resolvable:$true] %s2475_s27 }
 0x6d9   : > { %s2463_s1 = scalar_lea.sflag [#allocation10], %s3117_s15  ;;  %s2902_s28 = sshra.s32 %s2476_s27, 4  ;;  %s2903_s28 = int_to_ptr.hbm [resolvable:$true] %s2902_s28 }
 0x6da   : > { %s2904_s7 = scalar_lea.hbm %s2903_s28, 1  ;;  %s2908_s0 = scalar_lea.hbm %s4202_s8, 4 }
 0x6db   : > { %p2905_p9 = scmp.ne.s32.totalorder %s2903_s28, %s2904_s7  ;;  %p2909_p13 = scmp.lt.s32.totalorder %s2903_s28, %s4202_s8 }
 0x6dc   : > { %p2910_p0 = scmp.lt.s32.totalorder %s2908_s0, %s2904_s7 }
 0x6dd   : > { %p2906_p11 = pnand %p2905_p9, %p3100_p8 }
 0x6de   : > { %p2911_p1 = por %p2910_p0, %p2909_p13 }
 0x6df   : > { %p2907_p12 = pneg %p2906_p11 }
 0x6e1   : > { %p2912_p2 = pnand %p2911_p1, %p2907_p12 }
 0x6e3   : > { %2915 = shalt.err (!%p2912_p2)
}
 0x6e4   : > { %2724 = dma.vmem_to_hbm [thread:$0]  (%p3100_p8), %s2474_s25, 16, %s2476_s27, %s2463_s1  }
 0x6e5 PF: > { %p2730_p3 = scmp.ge.s32.totalorder %s2982_s14, 2  ;;  %s2487_s10 = sand.u32 1, %s2954_s29  }
 0x6e6   : > { %s2488_s15 = scalar_lea.sflag [#allocation10], %s2487_s10 }
 0x6e7   : > { %p2727_p4 = pnand %p2730_p3, %p3104_p10 }
 0x6e9   : > { %p2728_p5 = pneg %p2727_p4 }
 0x6eb   : > { %2949 = dma.done.wait (%p2728_p5), %s2488_s15, 16  }
 0x6ec   : > { %2951 = vsyncadd (%p2728_p5), %s2488_s15, 4294967280  ;;  %s23_s14 = sadd.s32 1, %s2982_s14   ;;  %s4228_s29 = smov %s2958_s30 }
 0x6ed   : > { %p20_p6 = scmp.ge.s32.totalorder %s23_s14, 14   ;;  %s4229_s30 = smov %s2962_s9 }
 0x6ee   : > { %s4230_s9 = smov %s3098_s20  ;;  %s4231_s10 = smov %s2974_s12 }
 0x6ef   : > { %s4232_s11 = smov %s2978_s13  ;;  %s4233_s12 = smov %s4236_s16 }
 0x6f0   : > { %s4234_s13 = smov %s4240_s17  ;;  %22 = sbr.rel (!%p20_p6) target bundleno = 8 (0x8), region = 152 }
 0x6f5   :  { %2493 = vsyncpa [#allocation10], 1 }
 0x6f6   :  { %2495 = vsyncpa [#allocation10 + $0x1], 1 }

</bundles_post_ra>
